<compile_context>
chip_gen: v5e
topology: v5e:2x2
jax: 0.10.0
libtpu: 0.0.40
codegen_flags: <defaults>
</compile_context>

<pallas_src>
import functools

import jax
import jax.numpy as jnp
from jax import lax
from jax.experimental import pallas as pl
from jax.experimental.pallas import tpu as pltpu


def encoder_layer_kernel(
    x_ref, mask_ref,
    wq_ref, bq_ref, wk_ref, bk_ref, wv_ref, bv_ref,
    wo_h_ref, bo_ref,
    w1_ref, b1_ref, w2_ref, b2_ref,
    ln1_g_ref, ln1_b_ref, ln2_g_ref, ln2_b_ref,
    out_ref,
    *, n_heads, b_tile, seq_len, eps=1e-5,
):
    S = seq_len
    x3 = x_ref[...]                          # (b_tile, S, H) f32
    H = x3.shape[-1]
    hd = H // n_heads
    M = b_tile * S
    inv_scale = jnp.float32(1.0 / (hd ** 0.5))

    x2d = x3.reshape(M, H)                   # fold batch rows into matmul M dim (free major merge)
    xb = x2d.astype(jnp.bfloat16)            # bf16 operands, f32 accumulation

    # ---- fused QKV projections: three full-width (M,H)x(H,H) bf16 matmuls ----
    q = jnp.dot(xb, wq_ref[...], preferred_element_type=jnp.float32) + bq_ref[...]
    k = jnp.dot(xb, wk_ref[...], preferred_element_type=jnp.float32) + bk_ref[...]
    v = jnp.dot(xb, wv_ref[...], preferred_element_type=jnp.float32) + bv_ref[...]

    # ---- additive key-padding bias, built once and broadcast over heads & query rows ----
    mask = mask_ref[...]                                                  # (b_tile, 1, S)
    bias = jnp.where(mask == 0.0, jnp.float32(-1e10), jnp.float32(0.0))   # (b_tile, 1, S)

    # ---- per-head attention (static unroll over n_heads).
    # One static lane slice per tensor per head (hd < 128 forces a relayout somewhere),
    # then single-batch-dim einsums; softmax normalized after the PV matmul.
    attn = None
    for h in range(n_heads):
        sl = slice(h * hd, (h + 1) * hd)
        qh = q[:, sl].reshape(b_tile, S, hd).astype(jnp.bfloat16)
        kh = k[:, sl].reshape(b_tile, S, hd).astype(jnp.bfloat16)
        vh = v[:, sl].reshape(b_tile, S, hd).astype(jnp.bfloat16)

        s = jnp.einsum("bqd,bkd->bqk", qh, kh,
                       preferred_element_type=jnp.float32)                # (b_tile, S, S)
        s = s * inv_scale + bias
        m = jnp.max(s, axis=-1, keepdims=True)
        p = jnp.exp(s - m)
        l = jnp.sum(p, axis=-1, keepdims=True)
        ctx = jnp.einsum("bqk,bkd->bqd", p.astype(jnp.bfloat16), vh,
                         preferred_element_type=jnp.float32)              # (b_tile, S, hd)
        ctx = ctx * pl.reciprocal(l, approx=True)                         # EUP, post-PV normalize

        # Output projection accumulated per head: (M,hd) x (hd,H) bf16 matmul, f32 accum.
        # Merging heads into one K=H matmul would require a lane-merge relayout of ctx;
        # with hd << 128 the per-head accumulation (no concats / stacks) is kept instead.
        part = jnp.dot(ctx.reshape(M, hd).astype(jnp.bfloat16), wo_h_ref[h],
                       preferred_element_type=jnp.float32)
        attn = part if attn is None else attn + part
    attn = attn + bo_ref[...]

    # ---- residual + LayerNorm 1 (f32; dropout == identity) ----
    y = x2d + attn
    mu = jnp.mean(y, axis=-1, keepdims=True)
    var = jnp.mean((y - mu) * (y - mu), axis=-1, keepdims=True)
    y = (y - mu) * lax.rsqrt(var + jnp.float32(eps)) * ln1_g_ref[...] + ln1_b_ref[...]

    # ---- positionwise FFN: Linear -> ReLU -> Linear (bf16 matmuls, f32 accum) ----
    hmid = jnp.dot(y.astype(jnp.bfloat16), w1_ref[...],
                   preferred_element_type=jnp.float32) + b1_ref[...]
    hmid = jnp.maximum(hmid, 0.0)
    ff = jnp.dot(hmid.astype(jnp.bfloat16), w2_ref[...],
                 preferred_element_type=jnp.float32) + b2_ref[...]

    # ---- residual + LayerNorm 2 ----
    z = y + ff
    mu2 = jnp.mean(z, axis=-1, keepdims=True)
    var2 = jnp.mean((z - mu2) * (z - mu2), axis=-1, keepdims=True)
    out = (z - mu2) * lax.rsqrt(var2 + jnp.float32(eps)) * ln2_g_ref[...] + ln2_b_ref[...]
    out_ref[...] = out.reshape(b_tile, S, H)


def encoder_layer(src, src_mask, params, n_heads, *, b_tile=None,
                  single_buffer_weights=True, vmem_limit_bytes=48 * 1024 * 1024):
    B, S, H = src.shape
    P = params["w1"].shape[1]
    assert H % n_heads == 0
    hd = H // n_heads

    if b_tile is None:
        # Keep grid extent >= 2 so the "parallel" axis can be sharded across both v7x TCs.
        b_tile = B // 2 if (B % 2 == 0 and B >= 2) else B
    assert B % b_tile == 0, "b_tile must divide batch size"

    # Wrapper-side layout/dtype plumbing (free): bf16 matmul weights, per-head Wo slices.
    bf16 = jnp.bfloat16
    wq = params["wq"].astype(bf16)
    wk = params["wk"].astype(bf16)
    wv = params["wv"].astype(bf16)
    wo_heads = params["wo"].reshape(n_heads, hd, H).astype(bf16)
    w1 = params["w1"].astype(bf16)
    w2 = params["w2"].astype(bf16)

    # Grid-invariant weights/biases: single-buffer (Buffered(1)) so double-buffering does
    # not double the resident weight VMEM (matters on v7x's 64 MiB / TC budget).
    weight_kwargs = {}
    if single_buffer_weights and hasattr(pl, "Buffered"):
        weight_kwargs = dict(pipeline_mode=pl.Buffered(1))

    def full(shape):
        nd = len(shape)
        return pl.BlockSpec(shape, lambda i, _nd=nd: (0,) * _nd, **weight_kwargs)

    in_specs = [
        pl.BlockSpec((b_tile, S, H), lambda i: (i, 0, 0)),      # src block for this batch tile
        pl.BlockSpec((b_tile, 1, S), lambda i: (i, 0, 0)),      # mask block
        full((H, H)), full((1, H)),                             # Wq, bq
        full((H, H)), full((1, H)),                             # Wk, bk
        full((H, H)), full((1, H)),                             # Wv, bv
        full((n_heads, hd, H)), full((1, H)),                   # Wo (per-head), bo
        full((H, P)), full((1, P)),                             # W1, b1
        full((P, H)), full((1, H)),                             # W2, b2
        full((1, H)), full((1, H)),                             # ln1 gamma, beta
        full((1, H)), full((1, H)),                             # ln2 gamma, beta
    ]

    kernel = functools.partial(
        encoder_layer_kernel, n_heads=n_heads, b_tile=b_tile, seq_len=S)

    out = pl.pallas_call(
        kernel,
        out_shape=jax.ShapeDtypeStruct((B, S, H), jnp.float32),
        grid=(B // b_tile,),
        in_specs=in_specs,
        out_specs=pl.BlockSpec((b_tile, S, H), lambda i: (i, 0, 0)),
        compiler_params=pltpu.CompilerParams(
            dimension_semantics=("parallel",),
            vmem_limit_bytes=vmem_limit_bytes,
        ),
    )(
        src, src_mask,
        wq, params["bq"], wk, params["bk"], wv, params["bv"],
        wo_heads, params["bo"],
        w1, params["b1"], w2, params["b2"],
        params["ln1_g"], params["ln1_b"], params["ln2_g"], params["ln2_b"],
    )
    return out
    # TODO(synk): for production S add a KV-block grid axis with online softmax (flash-style)
    # and K/N tiling of W1/W2 so the working set fits v7x's 64 MiB VMEM at H=1024 / P=4096.


def reference_encoder_layer(src, src_mask, p, n_heads, eps=1e-5):
    """Pure-JAX f32 reference mirroring the PyTorch forward (dropout = identity)."""
    B, S, H = src.shape
    hd = H // n_heads
    q = src @ p["wq"] + p["bq"]
    k = src @ p["wk"] + p["bk"]
    v = src @ p["wv"] + p["bv"]
    qh = q.reshape(B, S, n_heads, hd).transpose(0, 2, 1, 3)
    kh = k.reshape(B, S, n_heads, hd).transpose(0, 2, 1, 3)
    vh = v.reshape(B, S, n_heads, hd).transpose(0, 2, 1, 3)
    e = (qh @ kh.transpose(0, 1, 3, 2)) / jnp.sqrt(jnp.float32(hd))      # (B, nh, S, S)
    m = src_mask[:, :, None, :]                                          # (B, 1, 1, S)
    e = jnp.where(m == 0.0, -1e10, e)
    a = jax.nn.softmax(e, axis=-1)
    o = (a @ vh).transpose(0, 2, 1, 3).reshape(B, S, H)
    o = o @ p["wo"] + p["bo"]

    def ln(x, g, b):
        mu = jnp.mean(x, axis=-1, keepdims=True)
        var = jnp.mean((x - mu) ** 2, axis=-1, keepdims=True)
        return (x - mu) * lax.rsqrt(var + eps) * g + b

    y = ln(src + o, p["ln1_g"], p["ln1_b"])
    ff = jnp.maximum(y @ p["w1"] + p["b1"], 0.0) @ p["w2"] + p["b2"]
    return ln(y + ff, p["ln2_g"], p["ln2_b"])


def make_params(key, hid_dim, pf_dim):
    ks = jax.random.split(key, 12)
    n = lambda k, shape, s=0.05: (s * jax.random.normal(k, shape)).astype(jnp.float32)
    return {
        "wq": n(ks[0], (hid_dim, hid_dim)), "bq": n(ks[1], (1, hid_dim)),
        "wk": n(ks[2], (hid_dim, hid_dim)), "bk": n(ks[3], (1, hid_dim)),
        "wv": n(ks[4], (hid_dim, hid_dim)), "bv": n(ks[5], (1, hid_dim)),
        "wo": n(ks[6], (hid_dim, hid_dim)), "bo": n(ks[7], (1, hid_dim)),
        "w1": n(ks[8], (hid_dim, pf_dim)),  "b1": n(ks[9], (1, pf_dim)),
        "w2": n(ks[10], (pf_dim, hid_dim)), "b2": n(ks[11], (1, hid_dim)),
        "ln1_g": jnp.ones((1, hid_dim), jnp.float32), "ln1_b": jnp.zeros((1, hid_dim), jnp.float32),
        "ln2_g": jnp.ones((1, hid_dim), jnp.float32), "ln2_b": jnp.zeros((1, hid_dim), jnp.float32),
    }


if __name__ == "__main__":
    # Small but lane-dense demo shapes (H, P multiples of 128; S a multiple of 8).
    B, S, H, NH, P = 4, 16, 128, 4, 256
    key = jax.random.PRNGKey(0)
    k_src, k_par = jax.random.split(key)

    src = jax.random.normal(k_src, (B, S, H), dtype=jnp.float32)
    # Padding mask: per-sequence valid lengths; 1.0 = attend, 0.0 = masked.
    lengths = jnp.array([16, 11, 16, 5], dtype=jnp.int32)
    src_mask = (jnp.arange(S)[None, :] < lengths[:, None]).astype(jnp.float32)[:, None, :]  # (B,1,S)

    params = make_params(k_par, H, P)

    # TODO(synk): dropout is a no-op here (inference); stochastic dropout would need pltpu.prng_*.
    run = functools.partial(encoder_layer, src, src_mask, params, NH, b_tile=2)
    try:
        out = jax.block_until_ready(run())
    except Exception:
        # Fallback if this JAX build rejects single-buffered (pl.Buffered(1)) weight specs.
        out = jax.block_until_ready(run(single_buffer_weights=False))

    ref = reference_encoder_layer(src, src_mask, params, NH)
    assert out.shape == (B, S, H)
    # bf16 matmul operands (f32 accumulation) + approximate EUP reciprocal in the softmax
    # normalization => compare against the pure-f32 reference at ~1e-2 tolerance; genuine
    # bugs show up as O(0.1 - 1) errors.
    assert jnp.allclose(out, ref, rtol=2e-2, atol=2e-2), (
        "Pallas output mismatch vs JAX reference: max abs err = "
        f"{jnp.max(jnp.abs(out - ref))}")

    print("KERNEL_OK")
</pallas_src>

<mosaic_0001>
module attributes {stable_mosaic.version = 11 : i64} {
  func.func @encoder_layer_kernel(%arg0: i32, %arg1: memref<2x16x128xf32, #tpu.memory_space<vmem>>, %arg2: memref<2x1x16xf32, #tpu.memory_space<vmem>>, %arg3: memref<128x128xbf16, #tpu.memory_space<vmem>>, %arg4: memref<1x128xf32, #tpu.memory_space<vmem>>, %arg5: memref<128x128xbf16, #tpu.memory_space<vmem>>, %arg6: memref<1x128xf32, #tpu.memory_space<vmem>>, %arg7: memref<128x128xbf16, #tpu.memory_space<vmem>>, %arg8: memref<1x128xf32, #tpu.memory_space<vmem>>, %arg9: memref<4x32x128xbf16, #tpu.memory_space<vmem>>, %arg10: memref<1x128xf32, #tpu.memory_space<vmem>>, %arg11: memref<128x256xbf16, #tpu.memory_space<vmem>>, %arg12: memref<1x256xf32, #tpu.memory_space<vmem>>, %arg13: memref<256x128xbf16, #tpu.memory_space<vmem>>, %arg14: memref<1x128xf32, #tpu.memory_space<vmem>>, %arg15: memref<1x128xf32, #tpu.memory_space<vmem>>, %arg16: memref<1x128xf32, #tpu.memory_space<vmem>>, %arg17: memref<1x128xf32, #tpu.memory_space<vmem>>, %arg18: memref<1x128xf32, #tpu.memory_space<vmem>>, %arg19: memref<2x16x128xf32, #tpu.memory_space<vmem>>) attributes {dimension_semantics = [#tpu.dimension_semantics<parallel>], iteration_bounds = array<i64: 2>, scalar_prefetch = 0 : i64, scratch_operands = 0 : i64, tpu.core_type = #tpu.core_type<tc>, window_params = [{transform_indices = @transform_0, window_bounds = array<i64: 2, 16, 128>}, {transform_indices = @transform_1, window_bounds = array<i64: 2, 1, 16>}, {pipeline_mode = #tpu.pipeline_mode<synchronous>, transform_indices = @transform_2, window_bounds = array<i64: 128, 128>}, {pipeline_mode = #tpu.pipeline_mode<synchronous>, transform_indices = @transform_3, window_bounds = array<i64: 1, 128>}, {pipeline_mode = #tpu.pipeline_mode<synchronous>, transform_indices = @transform_4, window_bounds = array<i64: 128, 128>}, {pipeline_mode = #tpu.pipeline_mode<synchronous>, transform_indices = @transform_5, window_bounds = array<i64: 1, 128>}, {pipeline_mode = #tpu.pipeline_mode<synchronous>, transform_indices = @transform_6, window_bounds = array<i64: 128, 128>}, {pipeline_mode = #tpu.pipeline_mode<synchronous>, transform_indices = @transform_7, window_bounds = array<i64: 1, 128>}, {pipeline_mode = #tpu.pipeline_mode<synchronous>, transform_indices = @transform_8, window_bounds = array<i64: 4, 32, 128>}, {pipeline_mode = #tpu.pipeline_mode<synchronous>, transform_indices = @transform_9, window_bounds = array<i64: 1, 128>}, {pipeline_mode = #tpu.pipeline_mode<synchronous>, transform_indices = @transform_10, window_bounds = array<i64: 128, 256>}, {pipeline_mode = #tpu.pipeline_mode<synchronous>, transform_indices = @transform_11, window_bounds = array<i64: 1, 256>}, {pipeline_mode = #tpu.pipeline_mode<synchronous>, transform_indices = @transform_12, window_bounds = array<i64: 256, 128>}, {pipeline_mode = #tpu.pipeline_mode<synchronous>, transform_indices = @transform_13, window_bounds = array<i64: 1, 128>}, {pipeline_mode = #tpu.pipeline_mode<synchronous>, transform_indices = @transform_14, window_bounds = array<i64: 1, 128>}, {pipeline_mode = #tpu.pipeline_mode<synchronous>, transform_indices = @transform_15, window_bounds = array<i64: 1, 128>}, {pipeline_mode = #tpu.pipeline_mode<synchronous>, transform_indices = @transform_16, window_bounds = array<i64: 1, 128>}, {pipeline_mode = #tpu.pipeline_mode<synchronous>, transform_indices = @transform_17, window_bounds = array<i64: 1, 128>}, {transform_indices = @transform_18, window_bounds = array<i64: 2, 16, 128>}]} {
    %c0 = arith.constant 0 : index
    %c0_0 = arith.constant 0 : index
    %c0_1 = arith.constant 0 : index
    %0 = vector.load %arg1[%c0, %c0_0, %c0_1] : memref<2x16x128xf32, #tpu.memory_space<vmem>>, vector<2x16x128xf32>
    %1 = vector.shape_cast %0 : vector<2x16x128xf32> to vector<32x128xf32>
    %2 = arith.truncf %1 : vector<32x128xf32> to vector<32x128xbf16>
    %c0_2 = arith.constant 0 : index
    %c0_3 = arith.constant 0 : index
    %3 = vector.load %arg3[%c0_2, %c0_3] : memref<128x128xbf16, #tpu.memory_space<vmem>>, vector<128x128xbf16>
    %cst = arith.constant dense<0.000000e+00> : vector<32x128xf32>
    %4 = tpu.matmul %2, %3, %cst {dimension_numbers = #tpu.dot_dimension_numbers<[1], [0], [0], [1], [0, 0, 1, 1], [], []>} : vector<32x128xbf16>, vector<128x128xbf16>, vector<32x128xf32> -> vector<32x128xf32>
    %c0_4 = arith.constant 0 : index
    %c0_5 = arith.constant 0 : index
    %5 = vector.load %arg4[%c0_4, %c0_5] : memref<1x128xf32, #tpu.memory_space<vmem>>, vector<1x128xf32>
    %6 = vector.broadcast %5 : vector<1x128xf32> to vector<32x128xf32>
    %7 = arith.addf %4, %6 : vector<32x128xf32>
    %c0_6 = arith.constant 0 : index
    %c0_7 = arith.constant 0 : index
    %8 = vector.load %arg5[%c0_6, %c0_7] : memref<128x128xbf16, #tpu.memory_space<vmem>>, vector<128x128xbf16>
    %cst_8 = arith.constant dense<0.000000e+00> : vector<32x128xf32>
    %9 = tpu.matmul %2, %8, %cst_8 {dimension_numbers = #tpu.dot_dimension_numbers<[1], [0], [0], [1], [0, 0, 1, 1], [], []>} : vector<32x128xbf16>, vector<128x128xbf16>, vector<32x128xf32> -> vector<32x128xf32>
    %c0_9 = arith.constant 0 : index
    %c0_10 = arith.constant 0 : index
    %10 = vector.load %arg6[%c0_9, %c0_10] : memref<1x128xf32, #tpu.memory_space<vmem>>, vector<1x128xf32>
    %11 = vector.broadcast %10 : vector<1x128xf32> to vector<32x128xf32>
    %12 = arith.addf %9, %11 : vector<32x128xf32>
    %c0_11 = arith.constant 0 : index
    %c0_12 = arith.constant 0 : index
    %13 = vector.load %arg7[%c0_11, %c0_12] : memref<128x128xbf16, #tpu.memory_space<vmem>>, vector<128x128xbf16>
    %cst_13 = arith.constant dense<0.000000e+00> : vector<32x128xf32>
    %14 = tpu.matmul %2, %13, %cst_13 {dimension_numbers = #tpu.dot_dimension_numbers<[1], [0], [0], [1], [0, 0, 1, 1], [], []>} : vector<32x128xbf16>, vector<128x128xbf16>, vector<32x128xf32> -> vector<32x128xf32>
    %c0_14 = arith.constant 0 : index
    %c0_15 = arith.constant 0 : index
    %15 = vector.load %arg8[%c0_14, %c0_15] : memref<1x128xf32, #tpu.memory_space<vmem>>, vector<1x128xf32>
    %16 = vector.broadcast %15 : vector<1x128xf32> to vector<32x128xf32>
    %17 = arith.addf %14, %16 : vector<32x128xf32>
    %c0_16 = arith.constant 0 : index
    %c0_17 = arith.constant 0 : index
    %c0_18 = arith.constant 0 : index
    %18 = vector.load %arg2[%c0_16, %c0_17, %c0_18] : memref<2x1x16xf32, #tpu.memory_space<vmem>>, vector<2x1x16xf32>
    %cst_19 = arith.constant 0.000000e+00 : f32
    %19 = vector.broadcast %cst_19 : f32 to vector<2x1x16xf32>
    %20 = arith.cmpf oeq, %18, %19 : vector<2x1x16xf32>
    %cst_20 = arith.constant -1.000000e+10 : f32
    %cst_21 = arith.constant 0.000000e+00 : f32
    %21 = vector.broadcast %cst_20 : f32 to vector<2x1x16xf32>
    %22 = vector.broadcast %cst_21 : f32 to vector<2x1x16xf32>
    %23 = arith.select %20, %21, %22 : vector<2x1x16xi1>, vector<2x1x16xf32>
    %24 = vector.extract_strided_slice %7 {offsets = [0, 0], sizes = [32, 32], strides = [1, 1]} : vector<32x128xf32> to vector<32x32xf32>
    %25 = vector.shape_cast %24 : vector<32x32xf32> to vector<2x16x32xf32>
    %26 = arith.truncf %25 : vector<2x16x32xf32> to vector<2x16x32xbf16>
    %27 = vector.extract_strided_slice %12 {offsets = [0, 0], sizes = [32, 32], strides = [1, 1]} : vector<32x128xf32> to vector<32x32xf32>
    %28 = vector.shape_cast %27 : vector<32x32xf32> to vector<2x16x32xf32>
    %29 = arith.truncf %28 : vector<2x16x32xf32> to vector<2x16x32xbf16>
    %30 = vector.extract_strided_slice %17 {offsets = [0, 0], sizes = [32, 32], strides = [1, 1]} : vector<32x128xf32> to vector<32x32xf32>
    %31 = vector.shape_cast %30 : vector<32x32xf32> to vector<2x16x32xf32>
    %32 = arith.truncf %31 : vector<2x16x32xf32> to vector<2x16x32xbf16>
    "tpu.trace_start"() <{level = 10 : i32, message = "bqd,bkd->bqk"}> : () -> ()
    %cst_22 = arith.constant dense<0.000000e+00> : vector<2x16x16xf32>
    %33 = tpu.matmul %26, %29, %cst_22 {dimension_numbers = #tpu.dot_dimension_numbers<[2], [2], [1], [1], [0, 0, 0, 1, 1, 1], [0], [0]>} : vector<2x16x32xbf16>, vector<2x16x32xbf16>, vector<2x16x16xf32> -> vector<2x16x16xf32>
    "tpu.trace_stop"() : () -> ()
    %cst_23 = arith.constant 0.176776692 : f32
    %34 = vector.broadcast %cst_23 : f32 to vector<2x16x16xf32>
    %35 = arith.mulf %33, %34 : vector<2x16x16xf32>
    %36 = vector.broadcast %23 : vector<2x1x16xf32> to vector<2x16x16xf32>
    %37 = arith.addf %35, %36 : vector<2x16x16xf32>
    %cst_24 = arith.constant dense<0xFF800000> : vector<2x16xf32>
    %38 = vector.multi_reduction <maximumf>, %37, %cst_24 [2] : vector<2x16x16xf32> to vector<2x16xf32>
    %39 = vector.shape_cast %38 : vector<2x16xf32> to vector<2x16x1xf32>
    %40 = vector.broadcast %39 : vector<2x16x1xf32> to vector<2x16x16xf32>
    %41 = arith.subf %37, %40 : vector<2x16x16xf32>
    %42 = math.exp %41 : vector<2x16x16xf32>
    %cst_25 = arith.constant dense<0.000000e+00> : vector<2x16xf32>
    %43 = vector.multi_reduction <add>, %42, %cst_25 [2] : vector<2x16x16xf32> to vector<2x16xf32>
    %44 = vector.shape_cast %43 : vector<2x16xf32> to vector<2x16x1xf32>
    %45 = arith.truncf %42 : vector<2x16x16xf32> to vector<2x16x16xbf16>
    "tpu.trace_start"() <{level = 10 : i32, message = "bqk,bkd->bqd"}> : () -> ()
    %cst_26 = arith.constant dense<0.000000e+00> : vector<2x16x32xf32>
    %46 = tpu.matmul %45, %32, %cst_26 {dimension_numbers = #tpu.dot_dimension_numbers<[2], [1], [1], [2], [0, 0, 0, 1, 1, 2], [0], [0]>} : vector<2x16x16xbf16>, vector<2x16x32xbf16>, vector<2x16x32xf32> -> vector<2x16x32xf32>
    "tpu.trace_stop"() : () -> ()
    %47 = tpu.reciprocal %44 {approx = true} : vector<2x16x1xf32> -> vector<2x16x1xf32>
    %48 = vector.broadcast %47 : vector<2x16x1xf32> to vector<2x16x32xf32>
    %49 = arith.mulf %46, %48 : vector<2x16x32xf32>
    %50 = vector.shape_cast %49 : vector<2x16x32xf32> to vector<32x32xf32>
    %51 = arith.truncf %50 : vector<32x32xf32> to vector<32x32xbf16>
    %c0_27 = arith.constant 0 : index
    %c0_28 = arith.constant 0 : index
    %c0_29 = arith.constant 0 : index
    %52 = vector.load %arg9[%c0_27, %c0_28, %c0_29] : memref<4x32x128xbf16, #tpu.memory_space<vmem>>, vector<1x32x128xbf16>
    %53 = vector.shape_cast %52 : vector<1x32x128xbf16> to vector<32x128xbf16>
    %cst_30 = arith.constant dense<0.000000e+00> : vector<32x128xf32>
    %54 = tpu.matmul %51, %53, %cst_30 {dimension_numbers = #tpu.dot_dimension_numbers<[1], [0], [0], [1], [0, 0, 1, 1], [], []>} : vector<32x32xbf16>, vector<32x128xbf16>, vector<32x128xf32> -> vector<32x128xf32>
    %55 = vector.extract_strided_slice %7 {offsets = [0, 32], sizes = [32, 32], strides = [1, 1]} : vector<32x128xf32> to vector<32x32xf32>
    %56 = vector.shape_cast %55 : vector<32x32xf32> to vector<2x16x32xf32>
    %57 = arith.truncf %56 : vector<2x16x32xf32> to vector<2x16x32xbf16>
    %58 = vector.extract_strided_slice %12 {offsets = [0, 32], sizes = [32, 32], strides = [1, 1]} : vector<32x128xf32> to vector<32x32xf32>
    %59 = vector.shape_cast %58 : vector<32x32xf32> to vector<2x16x32xf32>
    %60 = arith.truncf %59 : vector<2x16x32xf32> to vector<2x16x32xbf16>
    %61 = vector.extract_strided_slice %17 {offsets = [0, 32], sizes = [32, 32], strides = [1, 1]} : vector<32x128xf32> to vector<32x32xf32>
    %62 = vector.shape_cast %61 : vector<32x32xf32> to vector<2x16x32xf32>
    %63 = arith.truncf %62 : vector<2x16x32xf32> to vector<2x16x32xbf16>
    "tpu.trace_start"() <{level = 10 : i32, message = "bqd,bkd->bqk"}> : () -> ()
    %cst_31 = arith.constant dense<0.000000e+00> : vector<2x16x16xf32>
    %64 = tpu.matmul %57, %60, %cst_31 {dimension_numbers = #tpu.dot_dimension_numbers<[2], [2], [1], [1], [0, 0, 0, 1, 1, 1], [0], [0]>} : vector<2x16x32xbf16>, vector<2x16x32xbf16>, vector<2x16x16xf32> -> vector<2x16x16xf32>
    "tpu.trace_stop"() : () -> ()
    %cst_32 = arith.constant 0.176776692 : f32
    %65 = vector.broadcast %cst_32 : f32 to vector<2x16x16xf32>
    %66 = arith.mulf %64, %65 : vector<2x16x16xf32>
    %67 = vector.broadcast %23 : vector<2x1x16xf32> to vector<2x16x16xf32>
    %68 = arith.addf %66, %67 : vector<2x16x16xf32>
    %cst_33 = arith.constant dense<0xFF800000> : vector<2x16xf32>
    %69 = vector.multi_reduction <maximumf>, %68, %cst_33 [2] : vector<2x16x16xf32> to vector<2x16xf32>
    %70 = vector.shape_cast %69 : vector<2x16xf32> to vector<2x16x1xf32>
    %71 = vector.broadcast %70 : vector<2x16x1xf32> to vector<2x16x16xf32>
    %72 = arith.subf %68, %71 : vector<2x16x16xf32>
    %73 = math.exp %72 : vector<2x16x16xf32>
    %cst_34 = arith.constant dense<0.000000e+00> : vector<2x16xf32>
    %74 = vector.multi_reduction <add>, %73, %cst_34 [2] : vector<2x16x16xf32> to vector<2x16xf32>
    %75 = vector.shape_cast %74 : vector<2x16xf32> to vector<2x16x1xf32>
    %76 = arith.truncf %73 : vector<2x16x16xf32> to vector<2x16x16xbf16>
    "tpu.trace_start"() <{level = 10 : i32, message = "bqk,bkd->bqd"}> : () -> ()
    %cst_35 = arith.constant dense<0.000000e+00> : vector<2x16x32xf32>
    %77 = tpu.matmul %76, %63, %cst_35 {dimension_numbers = #tpu.dot_dimension_numbers<[2], [1], [1], [2], [0, 0, 0, 1, 1, 2], [0], [0]>} : vector<2x16x16xbf16>, vector<2x16x32xbf16>, vector<2x16x32xf32> -> vector<2x16x32xf32>
    "tpu.trace_stop"() : () -> ()
    %78 = tpu.reciprocal %75 {approx = true} : vector<2x16x1xf32> -> vector<2x16x1xf32>
    %79 = vector.broadcast %78 : vector<2x16x1xf32> to vector<2x16x32xf32>
    %80 = arith.mulf %77, %79 : vector<2x16x32xf32>
    %81 = vector.shape_cast %80 : vector<2x16x32xf32> to vector<32x32xf32>
    %82 = arith.truncf %81 : vector<32x32xf32> to vector<32x32xbf16>
    %c1 = arith.constant 1 : index
    %c0_36 = arith.constant 0 : index
    %c0_37 = arith.constant 0 : index
    %83 = vector.load %arg9[%c1, %c0_36, %c0_37] : memref<4x32x128xbf16, #tpu.memory_space<vmem>>, vector<1x32x128xbf16>
    %84 = vector.shape_cast %83 : vector<1x32x128xbf16> to vector<32x128xbf16>
    %cst_38 = arith.constant dense<0.000000e+00> : vector<32x128xf32>
    %85 = tpu.matmul %82, %84, %cst_38 {dimension_numbers = #tpu.dot_dimension_numbers<[1], [0], [0], [1], [0, 0, 1, 1], [], []>} : vector<32x32xbf16>, vector<32x128xbf16>, vector<32x128xf32> -> vector<32x128xf32>
    %86 = arith.addf %54, %85 : vector<32x128xf32>
    %87 = vector.extract_strided_slice %7 {offsets = [0, 64], sizes = [32, 32], strides = [1, 1]} : vector<32x128xf32> to vector<32x32xf32>
    %88 = vector.shape_cast %87 : vector<32x32xf32> to vector<2x16x32xf32>
    %89 = arith.truncf %88 : vector<2x16x32xf32> to vector<2x16x32xbf16>
    %90 = vector.extract_strided_slice %12 {offsets = [0, 64], sizes = [32, 32], strides = [1, 1]} : vector<32x128xf32> to vector<32x32xf32>
    %91 = vector.shape_cast %90 : vector<32x32xf32> to vector<2x16x32xf32>
    %92 = arith.truncf %91 : vector<2x16x32xf32> to vector<2x16x32xbf16>
    %93 = vector.extract_strided_slice %17 {offsets = [0, 64], sizes = [32, 32], strides = [1, 1]} : vector<32x128xf32> to vector<32x32xf32>
    %94 = vector.shape_cast %93 : vector<32x32xf32> to vector<2x16x32xf32>
    %95 = arith.truncf %94 : vector<2x16x32xf32> to vector<2x16x32xbf16>
    "tpu.trace_start"() <{level = 10 : i32, message = "bqd,bkd->bqk"}> : () -> ()
    %cst_39 = arith.constant dense<0.000000e+00> : vector<2x16x16xf32>
    %96 = tpu.matmul %89, %92, %cst_39 {dimension_numbers = #tpu.dot_dimension_numbers<[2], [2], [1], [1], [0, 0, 0, 1, 1, 1], [0], [0]>} : vector<2x16x32xbf16>, vector<2x16x32xbf16>, vector<2x16x16xf32> -> vector<2x16x16xf32>
    "tpu.trace_stop"() : () -> ()
    %cst_40 = arith.constant 0.176776692 : f32
    %97 = vector.broadcast %cst_40 : f32 to vector<2x16x16xf32>
    %98 = arith.mulf %96, %97 : vector<2x16x16xf32>
    %99 = vector.broadcast %23 : vector<2x1x16xf32> to vector<2x16x16xf32>
    %100 = arith.addf %98, %99 : vector<2x16x16xf32>
    %cst_41 = arith.constant dense<0xFF800000> : vector<2x16xf32>
    %101 = vector.multi_reduction <maximumf>, %100, %cst_41 [2] : vector<2x16x16xf32> to vector<2x16xf32>
    %102 = vector.shape_cast %101 : vector<2x16xf32> to vector<2x16x1xf32>
    %103 = vector.broadcast %102 : vector<2x16x1xf32> to vector<2x16x16xf32>
    %104 = arith.subf %100, %103 : vector<2x16x16xf32>
    %105 = math.exp %104 : vector<2x16x16xf32>
    %cst_42 = arith.constant dense<0.000000e+00> : vector<2x16xf32>
    %106 = vector.multi_reduction <add>, %105, %cst_42 [2] : vector<2x16x16xf32> to vector<2x16xf32>
    %107 = vector.shape_cast %106 : vector<2x16xf32> to vector<2x16x1xf32>
    %108 = arith.truncf %105 : vector<2x16x16xf32> to vector<2x16x16xbf16>
    "tpu.trace_start"() <{level = 10 : i32, message = "bqk,bkd->bqd"}> : () -> ()
    %cst_43 = arith.constant dense<0.000000e+00> : vector<2x16x32xf32>
    %109 = tpu.matmul %108, %95, %cst_43 {dimension_numbers = #tpu.dot_dimension_numbers<[2], [1], [1], [2], [0, 0, 0, 1, 1, 2], [0], [0]>} : vector<2x16x16xbf16>, vector<2x16x32xbf16>, vector<2x16x32xf32> -> vector<2x16x32xf32>
    "tpu.trace_stop"() : () -> ()
    %110 = tpu.reciprocal %107 {approx = true} : vector<2x16x1xf32> -> vector<2x16x1xf32>
    %111 = vector.broadcast %110 : vector<2x16x1xf32> to vector<2x16x32xf32>
    %112 = arith.mulf %109, %111 : vector<2x16x32xf32>
    %113 = vector.shape_cast %112 : vector<2x16x32xf32> to vector<32x32xf32>
    %114 = arith.truncf %113 : vector<32x32xf32> to vector<32x32xbf16>
    %c2 = arith.constant 2 : index
    %c0_44 = arith.constant 0 : index
    %c0_45 = arith.constant 0 : index
    %115 = vector.load %arg9[%c2, %c0_44, %c0_45] : memref<4x32x128xbf16, #tpu.memory_space<vmem>>, vector<1x32x128xbf16>
    %116 = vector.shape_cast %115 : vector<1x32x128xbf16> to vector<32x128xbf16>
    %cst_46 = arith.constant dense<0.000000e+00> : vector<32x128xf32>
    %117 = tpu.matmul %114, %116, %cst_46 {dimension_numbers = #tpu.dot_dimension_numbers<[1], [0], [0], [1], [0, 0, 1, 1], [], []>} : vector<32x32xbf16>, vector<32x128xbf16>, vector<32x128xf32> -> vector<32x128xf32>
    %118 = arith.addf %86, %117 : vector<32x128xf32>
    %119 = vector.extract_strided_slice %7 {offsets = [0, 96], sizes = [32, 32], strides = [1, 1]} : vector<32x128xf32> to vector<32x32xf32>
    %120 = vector.shape_cast %119 : vector<32x32xf32> to vector<2x16x32xf32>
    %121 = arith.truncf %120 : vector<2x16x32xf32> to vector<2x16x32xbf16>
    %122 = vector.extract_strided_slice %12 {offsets = [0, 96], sizes = [32, 32], strides = [1, 1]} : vector<32x128xf32> to vector<32x32xf32>
    %123 = vector.shape_cast %122 : vector<32x32xf32> to vector<2x16x32xf32>
    %124 = arith.truncf %123 : vector<2x16x32xf32> to vector<2x16x32xbf16>
    %125 = vector.extract_strided_slice %17 {offsets = [0, 96], sizes = [32, 32], strides = [1, 1]} : vector<32x128xf32> to vector<32x32xf32>
    %126 = vector.shape_cast %125 : vector<32x32xf32> to vector<2x16x32xf32>
    %127 = arith.truncf %126 : vector<2x16x32xf32> to vector<2x16x32xbf16>
    "tpu.trace_start"() <{level = 10 : i32, message = "bqd,bkd->bqk"}> : () -> ()
    %cst_47 = arith.constant dense<0.000000e+00> : vector<2x16x16xf32>
    %128 = tpu.matmul %121, %124, %cst_47 {dimension_numbers = #tpu.dot_dimension_numbers<[2], [2], [1], [1], [0, 0, 0, 1, 1, 1], [0], [0]>} : vector<2x16x32xbf16>, vector<2x16x32xbf16>, vector<2x16x16xf32> -> vector<2x16x16xf32>
    "tpu.trace_stop"() : () -> ()
    %cst_48 = arith.constant 0.176776692 : f32
    %129 = vector.broadcast %cst_48 : f32 to vector<2x16x16xf32>
    %130 = arith.mulf %128, %129 : vector<2x16x16xf32>
    %131 = vector.broadcast %23 : vector<2x1x16xf32> to vector<2x16x16xf32>
    %132 = arith.addf %130, %131 : vector<2x16x16xf32>
    %cst_49 = arith.constant dense<0xFF800000> : vector<2x16xf32>
    %133 = vector.multi_reduction <maximumf>, %132, %cst_49 [2] : vector<2x16x16xf32> to vector<2x16xf32>
    %134 = vector.shape_cast %133 : vector<2x16xf32> to vector<2x16x1xf32>
    %135 = vector.broadcast %134 : vector<2x16x1xf32> to vector<2x16x16xf32>
    %136 = arith.subf %132, %135 : vector<2x16x16xf32>
    %137 = math.exp %136 : vector<2x16x16xf32>
    %cst_50 = arith.constant dense<0.000000e+00> : vector<2x16xf32>
    %138 = vector.multi_reduction <add>, %137, %cst_50 [2] : vector<2x16x16xf32> to vector<2x16xf32>
    %139 = vector.shape_cast %138 : vector<2x16xf32> to vector<2x16x1xf32>
    %140 = arith.truncf %137 : vector<2x16x16xf32> to vector<2x16x16xbf16>
    "tpu.trace_start"() <{level = 10 : i32, message = "bqk,bkd->bqd"}> : () -> ()
    %cst_51 = arith.constant dense<0.000000e+00> : vector<2x16x32xf32>
    %141 = tpu.matmul %140, %127, %cst_51 {dimension_numbers = #tpu.dot_dimension_numbers<[2], [1], [1], [2], [0, 0, 0, 1, 1, 2], [0], [0]>} : vector<2x16x16xbf16>, vector<2x16x32xbf16>, vector<2x16x32xf32> -> vector<2x16x32xf32>
    "tpu.trace_stop"() : () -> ()
    %142 = tpu.reciprocal %139 {approx = true} : vector<2x16x1xf32> -> vector<2x16x1xf32>
    %143 = vector.broadcast %142 : vector<2x16x1xf32> to vector<2x16x32xf32>
    %144 = arith.mulf %141, %143 : vector<2x16x32xf32>
    %145 = vector.shape_cast %144 : vector<2x16x32xf32> to vector<32x32xf32>
    %146 = arith.truncf %145 : vector<32x32xf32> to vector<32x32xbf16>
    %c3 = arith.constant 3 : index
    %c0_52 = arith.constant 0 : index
    %c0_53 = arith.constant 0 : index
    %147 = vector.load %arg9[%c3, %c0_52, %c0_53] : memref<4x32x128xbf16, #tpu.memory_space<vmem>>, vector<1x32x128xbf16>
    %148 = vector.shape_cast %147 : vector<1x32x128xbf16> to vector<32x128xbf16>
    %cst_54 = arith.constant dense<0.000000e+00> : vector<32x128xf32>
    %149 = tpu.matmul %146, %148, %cst_54 {dimension_numbers = #tpu.dot_dimension_numbers<[1], [0], [0], [1], [0, 0, 1, 1], [], []>} : vector<32x32xbf16>, vector<32x128xbf16>, vector<32x128xf32> -> vector<32x128xf32>
    %150 = arith.addf %118, %149 : vector<32x128xf32>
    %c0_55 = arith.constant 0 : index
    %c0_56 = arith.constant 0 : index
    %151 = vector.load %arg10[%c0_55, %c0_56] : memref<1x128xf32, #tpu.memory_space<vmem>>, vector<1x128xf32>
    %152 = vector.broadcast %151 : vector<1x128xf32> to vector<32x128xf32>
    %153 = arith.addf %150, %152 : vector<32x128xf32>
    %154 = arith.addf %1, %153 : vector<32x128xf32>
    %cst_57 = arith.constant dense<0.000000e+00> : vector<32xf32>
    %155 = vector.multi_reduction <add>, %154, %cst_57 [1] : vector<32x128xf32> to vector<32xf32>
    %156 = vector.shape_cast %155 : vector<32xf32> to vector<32x1xf32>
    %cst_58 = arith.constant 1.280000e+02 : f32
    %157 = vector.broadcast %cst_58 : f32 to vector<32x1xf32>
    %158 = arith.divf %156, %157 : vector<32x1xf32>
    %159 = vector.broadcast %158 : vector<32x1xf32> to vector<32x128xf32>
    %160 = arith.subf %154, %159 : vector<32x128xf32>
    %161 = vector.broadcast %158 : vector<32x1xf32> to vector<32x128xf32>
    %162 = arith.subf %154, %161 : vector<32x128xf32>
    %163 = arith.mulf %160, %162 : vector<32x128xf32>
    %cst_59 = arith.constant dense<0.000000e+00> : vector<32xf32>
    %164 = vector.multi_reduction <add>, %163, %cst_59 [1] : vector<32x128xf32> to vector<32xf32>
    %165 = vector.shape_cast %164 : vector<32xf32> to vector<32x1xf32>
    %cst_60 = arith.constant 1.280000e+02 : f32
    %166 = vector.broadcast %cst_60 : f32 to vector<32x1xf32>
    %167 = arith.divf %165, %166 : vector<32x1xf32>
    %168 = vector.broadcast %158 : vector<32x1xf32> to vector<32x128xf32>
    %169 = arith.subf %154, %168 : vector<32x128xf32>
    %cst_61 = arith.constant 9.99999974E-6 : f32
    %170 = vector.broadcast %cst_61 : f32 to vector<32x1xf32>
    %171 = arith.addf %167, %170 : vector<32x1xf32>
    %172 = math.rsqrt %171 : vector<32x1xf32>
    %173 = vector.broadcast %172 : vector<32x1xf32> to vector<32x128xf32>
    %174 = arith.mulf %169, %173 : vector<32x128xf32>
    %c0_62 = arith.constant 0 : index
    %c0_63 = arith.constant 0 : index
    %175 = vector.load %arg15[%c0_62, %c0_63] : memref<1x128xf32, #tpu.memory_space<vmem>>, vector<1x128xf32>
    %176 = vector.broadcast %175 : vector<1x128xf32> to vector<32x128xf32>
    %177 = arith.mulf %174, %176 : vector<32x128xf32>
    %c0_64 = arith.constant 0 : index
    %c0_65 = arith.constant 0 : index
    %178 = vector.load %arg16[%c0_64, %c0_65] : memref<1x128xf32, #tpu.memory_space<vmem>>, vector<1x128xf32>
    %179 = vector.broadcast %178 : vector<1x128xf32> to vector<32x128xf32>
    %180 = arith.addf %177, %179 : vector<32x128xf32>
    %181 = arith.truncf %180 : vector<32x128xf32> to vector<32x128xbf16>
    %c0_66 = arith.constant 0 : index
    %c0_67 = arith.constant 0 : index
    %182 = vector.load %arg11[%c0_66, %c0_67] : memref<128x256xbf16, #tpu.memory_space<vmem>>, vector<128x256xbf16>
    %cst_68 = arith.constant dense<0.000000e+00> : vector<32x256xf32>
    %183 = tpu.matmul %181, %182, %cst_68 {dimension_numbers = #tpu.dot_dimension_numbers<[1], [0], [0], [1], [0, 0, 1, 1], [], []>} : vector<32x128xbf16>, vector<128x256xbf16>, vector<32x256xf32> -> vector<32x256xf32>
    %c0_69 = arith.constant 0 : index
    %c0_70 = arith.constant 0 : index
    %184 = vector.load %arg12[%c0_69, %c0_70] : memref<1x256xf32, #tpu.memory_space<vmem>>, vector<1x256xf32>
    %185 = vector.broadcast %184 : vector<1x256xf32> to vector<32x256xf32>
    %186 = arith.addf %183, %185 : vector<32x256xf32>
    %cst_71 = arith.constant 0.000000e+00 : f32
    %187 = vector.broadcast %cst_71 : f32 to vector<32x256xf32>
    %188 = arith.maximumf %186, %187 : vector<32x256xf32>
    %189 = arith.truncf %188 : vector<32x256xf32> to vector<32x256xbf16>
    %c0_72 = arith.constant 0 : index
    %c0_73 = arith.constant 0 : index
    %190 = vector.load %arg13[%c0_72, %c0_73] : memref<256x128xbf16, #tpu.memory_space<vmem>>, vector<256x128xbf16>
    %cst_74 = arith.constant dense<0.000000e+00> : vector<32x128xf32>
    %191 = tpu.matmul %189, %190, %cst_74 {dimension_numbers = #tpu.dot_dimension_numbers<[1], [0], [0], [1], [0, 0, 1, 1], [], []>} : vector<32x256xbf16>, vector<256x128xbf16>, vector<32x128xf32> -> vector<32x128xf32>
    %c0_75 = arith.constant 0 : index
    %c0_76 = arith.constant 0 : index
    %192 = vector.load %arg14[%c0_75, %c0_76] : memref<1x128xf32, #tpu.memory_space<vmem>>, vector<1x128xf32>
    %193 = vector.broadcast %192 : vector<1x128xf32> to vector<32x128xf32>
    %194 = arith.addf %191, %193 : vector<32x128xf32>
    %195 = arith.addf %180, %194 : vector<32x128xf32>
    %cst_77 = arith.constant dense<0.000000e+00> : vector<32xf32>
    %196 = vector.multi_reduction <add>, %195, %cst_77 [1] : vector<32x128xf32> to vector<32xf32>
    %197 = vector.shape_cast %196 : vector<32xf32> to vector<32x1xf32>
    %cst_78 = arith.constant 1.280000e+02 : f32
    %198 = vector.broadcast %cst_78 : f32 to vector<32x1xf32>
    %199 = arith.divf %197, %198 : vector<32x1xf32>
    %200 = vector.broadcast %199 : vector<32x1xf32> to vector<32x128xf32>
    %201 = arith.subf %195, %200 : vector<32x128xf32>
    %202 = vector.broadcast %199 : vector<32x1xf32> to vector<32x128xf32>
    %203 = arith.subf %195, %202 : vector<32x128xf32>
    %204 = arith.mulf %201, %203 : vector<32x128xf32>
    %cst_79 = arith.constant dense<0.000000e+00> : vector<32xf32>
    %205 = vector.multi_reduction <add>, %204, %cst_79 [1] : vector<32x128xf32> to vector<32xf32>
    %206 = vector.shape_cast %205 : vector<32xf32> to vector<32x1xf32>
    %cst_80 = arith.constant 1.280000e+02 : f32
    %207 = vector.broadcast %cst_80 : f32 to vector<32x1xf32>
    %208 = arith.divf %206, %207 : vector<32x1xf32>
    %209 = vector.broadcast %199 : vector<32x1xf32> to vector<32x128xf32>
    %210 = arith.subf %195, %209 : vector<32x128xf32>
    %cst_81 = arith.constant 9.99999974E-6 : f32
    %211 = vector.broadcast %cst_81 : f32 to vector<32x1xf32>
    %212 = arith.addf %208, %211 : vector<32x1xf32>
    %213 = math.rsqrt %212 : vector<32x1xf32>
    %214 = vector.broadcast %213 : vector<32x1xf32> to vector<32x128xf32>
    %215 = arith.mulf %210, %214 : vector<32x128xf32>
    %c0_82 = arith.constant 0 : index
    %c0_83 = arith.constant 0 : index
    %216 = vector.load %arg17[%c0_82, %c0_83] : memref<1x128xf32, #tpu.memory_space<vmem>>, vector<1x128xf32>
    %217 = vector.broadcast %216 : vector<1x128xf32> to vector<32x128xf32>
    %218 = arith.mulf %215, %217 : vector<32x128xf32>
    %c0_84 = arith.constant 0 : index
    %c0_85 = arith.constant 0 : index
    %219 = vector.load %arg18[%c0_84, %c0_85] : memref<1x128xf32, #tpu.memory_space<vmem>>, vector<1x128xf32>
    %220 = vector.broadcast %219 : vector<1x128xf32> to vector<32x128xf32>
    %221 = arith.addf %218, %220 : vector<32x128xf32>
    %222 = vector.shape_cast %221 : vector<32x128xf32> to vector<2x16x128xf32>
    %c0_86 = arith.constant 0 : index
    %c0_87 = arith.constant 0 : index
    %c0_88 = arith.constant 0 : index
    %223 = vector.load %arg19[%c0_86, %c0_87, %c0_88] : memref<2x16x128xf32, #tpu.memory_space<vmem>>, vector<2x16x128xf32>
    tpu.vector_store %arg19[%c0_86, %c0_87, %c0_88], %222 {strides = array<i32>} : memref<2x16x128xf32, #tpu.memory_space<vmem>>, vector<2x16x128xf32>,
    return
  }
  func.func @transform_0(%arg0: i32) -> (i32, i32, i32) {
    %c0_i32 = arith.constant 0 : i32
    %c0_i32_0 = arith.constant 0 : i32
    %c0_i32_1 = arith.constant 0 : i32
    return %arg0, %c0_i32, %c0_i32_0 : i32, i32, i32
  }
  func.func @transform_1(%arg0: i32) -> (i32, i32, i32) {
    %c0_i32 = arith.constant 0 : i32
    %c0_i32_0 = arith.constant 0 : i32
    %c0_i32_1 = arith.constant 0 : i32
    return %arg0, %c0_i32, %c0_i32_0 : i32, i32, i32
  }
  func.func @transform_2(%arg0: i32) -> (i32, i32) {
    %c0_i32 = arith.constant 0 : i32
    %c0_i32_0 = arith.constant 0 : i32
    %c0_i32_1 = arith.constant 0 : i32
    return %c0_i32, %c0_i32_0 : i32, i32
  }
  func.func @transform_3(%arg0: i32) -> (i32, i32) {
    %c0_i32 = arith.constant 0 : i32
    %c0_i32_0 = arith.constant 0 : i32
    %c0_i32_1 = arith.constant 0 : i32
    return %c0_i32, %c0_i32_0 : i32, i32
  }
  func.func @transform_4(%arg0: i32) -> (i32, i32) {
    %c0_i32 = arith.constant 0 : i32
    %c0_i32_0 = arith.constant 0 : i32
    %c0_i32_1 = arith.constant 0 : i32
    return %c0_i32, %c0_i32_0 : i32, i32
  }
  func.func @transform_5(%arg0: i32) -> (i32, i32) {
    %c0_i32 = arith.constant 0 : i32
    %c0_i32_0 = arith.constant 0 : i32
    %c0_i32_1 = arith.constant 0 : i32
    return %c0_i32, %c0_i32_0 : i32, i32
  }
  func.func @transform_6(%arg0: i32) -> (i32, i32) {
    %c0_i32 = arith.constant 0 : i32
    %c0_i32_0 = arith.constant 0 : i32
    %c0_i32_1 = arith.constant 0 : i32
    return %c0_i32, %c0_i32_0 : i32, i32
  }
  func.func @transform_7(%arg0: i32) -> (i32, i32) {
    %c0_i32 = arith.constant 0 : i32
    %c0_i32_0 = arith.constant 0 : i32
    %c0_i32_1 = arith.constant 0 : i32
    return %c0_i32, %c0_i32_0 : i32, i32
  }
  func.func @transform_8(%arg0: i32) -> (i32, i32, i32) {
    %c0_i32 = arith.constant 0 : i32
    %c0_i32_0 = arith.constant 0 : i32
    %c0_i32_1 = arith.constant 0 : i32
    %c0_i32_2 = arith.constant 0 : i32
    return %c0_i32, %c0_i32_0, %c0_i32_1 : i32, i32, i32
  }
  func.func @transform_9(%arg0: i32) -> (i32, i32) {
    %c0_i32 = arith.constant 0 : i32
    %c0_i32_0 = arith.constant 0 : i32
    %c0_i32_1 = arith.constant 0 : i32
    return %c0_i32, %c0_i32_0 : i32, i32
  }
  func.func @transform_10(%arg0: i32) -> (i32, i32) {
    %c0_i32 = arith.constant 0 : i32
    %c0_i32_0 = arith.constant 0 : i32
    %c0_i32_1 = arith.constant 0 : i32
    return %c0_i32, %c0_i32_0 : i32, i32
  }
  func.func @transform_11(%arg0: i32) -> (i32, i32) {
    %c0_i32 = arith.constant 0 : i32
    %c0_i32_0 = arith.constant 0 : i32
    %c0_i32_1 = arith.constant 0 : i32
    return %c0_i32, %c0_i32_0 : i32, i32
  }
  func.func @transform_12(%arg0: i32) -> (i32, i32) {
    %c0_i32 = arith.constant 0 : i32
    %c0_i32_0 = arith.constant 0 : i32
    %c0_i32_1 = arith.constant 0 : i32
    return %c0_i32, %c0_i32_0 : i32, i32
  }
  func.func @transform_13(%arg0: i32) -> (i32, i32) {
    %c0_i32 = arith.constant 0 : i32
    %c0_i32_0 = arith.constant 0 : i32
    %c0_i32_1 = arith.constant 0 : i32
    return %c0_i32, %c0_i32_0 : i32, i32
  }
  func.func @transform_14(%arg0: i32) -> (i32, i32) {
    %c0_i32 = arith.constant 0 : i32
    %c0_i32_0 = arith.constant 0 : i32
    %c0_i32_1 = arith.constant 0 : i32
    return %c0_i32, %c0_i32_0 : i32, i32
  }
  func.func @transform_15(%arg0: i32) -> (i32, i32) {
    %c0_i32 = arith.constant 0 : i32
    %c0_i32_0 = arith.constant 0 : i32
    %c0_i32_1 = arith.constant 0 : i32
    return %c0_i32, %c0_i32_0 : i32, i32
  }
  func.func @transform_16(%arg0: i32) -> (i32, i32) {
    %c0_i32 = arith.constant 0 : i32
    %c0_i32_0 = arith.constant 0 : i32
    %c0_i32_1 = arith.constant 0 : i32
    return %c0_i32, %c0_i32_0 : i32, i32
  }
  func.func @transform_17(%arg0: i32) -> (i32, i32) {
    %c0_i32 = arith.constant 0 : i32
    %c0_i32_0 = arith.constant 0 : i32
    %c0_i32_1 = arith.constant 0 : i32
    return %c0_i32, %c0_i32_0 : i32, i32
  }
  func.func @transform_18(%arg0: i32) -> (i32, i32, i32) {
    %c0_i32 = arith.constant 0 : i32
    %c0_i32_0 = arith.constant 0 : i32
    %c0_i32_1 = arith.constant 0 : i32
    return %arg0, %c0_i32, %c0_i32_0 : i32, i32, i32
  }
}

module attributes {stable_mosaic.version = 11 : i64} {
  func.func @encoder_layer_kernel(%arg0: i32, %arg1: memref<2x16x128xf32, #tpu.memory_space<vmem>>, %arg2: memref<2x1x16xf32, #tpu.memory_space<vmem>>, %arg3: memref<128x128xbf16, #tpu.memory_space<vmem>>, %arg4: memref<1x128xf32, #tpu.memory_space<vmem>>, %arg5: memref<128x128xbf16, #tpu.memory_space<vmem>>, %arg6: memref<1x128xf32, #tpu.memory_space<vmem>>, %arg7: memref<128x128xbf16, #tpu.memory_space<vmem>>, %arg8: memref<1x128xf32, #tpu.memory_space<vmem>>, %arg9: memref<4x32x128xbf16, #tpu.memory_space<vmem>>, %arg10: memref<1x128xf32, #tpu.memory_space<vmem>>, %arg11: memref<128x256xbf16, #tpu.memory_space<vmem>>, %arg12: memref<1x256xf32, #tpu.memory_space<vmem>>, %arg13: memref<256x128xbf16, #tpu.memory_space<vmem>>, %arg14: memref<1x128xf32, #tpu.memory_space<vmem>>, %arg15: memref<1x128xf32, #tpu.memory_space<vmem>>, %arg16: memref<1x128xf32, #tpu.memory_space<vmem>>, %arg17: memref<1x128xf32, #tpu.memory_space<vmem>>, %arg18: memref<1x128xf32, #tpu.memory_space<vmem>>, %arg19: memref<2x16x128xf32, #tpu.memory_space<vmem>>) attributes {dimension_semantics = [#tpu.dimension_semantics<parallel>], iteration_bounds = array<i64: 2>, scalar_prefetch = 0 : i64, scratch_operands = 0 : i64, tpu.core_type = #tpu.core_type<tc>, window_params = [{transform_indices = @transform_0, window_bounds = array<i64: 2, 16, 128>}, {transform_indices = @transform_1, window_bounds = array<i64: 2, 1, 16>}, {pipeline_mode = #tpu.pipeline_mode<synchronous>, transform_indices = @transform_2, window_bounds = array<i64: 128, 128>}, {pipeline_mode = #tpu.pipeline_mode<synchronous>, transform_indices = @transform_3, window_bounds = array<i64: 1, 128>}, {pipeline_mode = #tpu.pipeline_mode<synchronous>, transform_indices = @transform_4, window_bounds = array<i64: 128, 128>}, {pipeline_mode = #tpu.pipeline_mode<synchronous>, transform_indices = @transform_5, window_bounds = array<i64: 1, 128>}, {pipeline_mode = #tpu.pipeline_mode<synchronous>, transform_indices = @transform_6, window_bounds = array<i64: 128, 128>}, {pipeline_mode = #tpu.pipeline_mode<synchronous>, transform_indices = @transform_7, window_bounds = array<i64: 1, 128>}, {pipeline_mode = #tpu.pipeline_mode<synchronous>, transform_indices = @transform_8, window_bounds = array<i64: 4, 32, 128>}, {pipeline_mode = #tpu.pipeline_mode<synchronous>, transform_indices = @transform_9, window_bounds = array<i64: 1, 128>}, {pipeline_mode = #tpu.pipeline_mode<synchronous>, transform_indices = @transform_10, window_bounds = array<i64: 128, 256>}, {pipeline_mode = #tpu.pipeline_mode<synchronous>, transform_indices = @transform_11, window_bounds = array<i64: 1, 256>}, {pipeline_mode = #tpu.pipeline_mode<synchronous>, transform_indices = @transform_12, window_bounds = array<i64: 256, 128>}, {pipeline_mode = #tpu.pipeline_mode<synchronous>, transform_indices = @transform_13, window_bounds = array<i64: 1, 128>}, {pipeline_mode = #tpu.pipeline_mode<synchronous>, transform_indices = @transform_14, window_bounds = array<i64: 1, 128>}, {pipeline_mode = #tpu.pipeline_mode<synchronous>, transform_indices = @transform_15, window_bounds = array<i64: 1, 128>}, {pipeline_mode = #tpu.pipeline_mode<synchronous>, transform_indices = @transform_16, window_bounds = array<i64: 1, 128>}, {pipeline_mode = #tpu.pipeline_mode<synchronous>, transform_indices = @transform_17, window_bounds = array<i64: 1, 128>}, {transform_indices = @transform_18, window_bounds = array<i64: 2, 16, 128>}]} {
    %c0 = arith.constant 0 : index
    %c0_0 = arith.constant 0 : index
    %c0_1 = arith.constant 0 : index
    %0 = vector.load %arg1[%c0, %c0_0, %c0_1] : memref<2x16x128xf32, #tpu.memory_space<vmem>>, vector<2x16x128xf32>
    %1 = vector.shape_cast %0 : vector<2x16x128xf32> to vector<32x128xf32>
    %2 = arith.truncf %1 : vector<32x128xf32> to vector<32x128xbf16>
    %c0_2 = arith.constant 0 : index
    %c0_3 = arith.constant 0 : index
    %3 = vector.load %arg3[%c0_2, %c0_3] : memref<128x128xbf16, #tpu.memory_space<vmem>>, vector<128x128xbf16>
    %cst = arith.constant dense<0.000000e+00> : vector<32x128xf32>
    %4 = tpu.matmul %2, %3, %cst {dimension_numbers = #tpu.dot_dimension_numbers<[1], [0], [0], [1], [0, 0, 1, 1], [], []>} : vector<32x128xbf16>, vector<128x128xbf16>, vector<32x128xf32> -> vector<32x128xf32>
    %c0_4 = arith.constant 0 : index
    %c0_5 = arith.constant 0 : index
    %5 = vector.load %arg4[%c0_4, %c0_5] : memref<1x128xf32, #tpu.memory_space<vmem>>, vector<1x128xf32>
    %6 = vector.broadcast %5 : vector<1x128xf32> to vector<32x128xf32>
    %7 = arith.addf %4, %6 : vector<32x128xf32>
    %c0_6 = arith.constant 0 : index
    %c0_7 = arith.constant 0 : index
    %8 = vector.load %arg5[%c0_6, %c0_7] : memref<128x128xbf16, #tpu.memory_space<vmem>>, vector<128x128xbf16>
    %cst_8 = arith.constant dense<0.000000e+00> : vector<32x128xf32>
    %9 = tpu.matmul %2, %8, %cst_8 {dimension_numbers = #tpu.dot_dimension_numbers<[1], [0], [0], [1], [0, 0, 1, 1], [], []>} : vector<32x128xbf16>, vector<128x128xbf16>, vector<32x128xf32> -> vector<32x128xf32>
    %c0_9 = arith.constant 0 : index
    %c0_10 = arith.constant 0 : index
    %10 = vector.load %arg6[%c0_9, %c0_10] : memref<1x128xf32, #tpu.memory_space<vmem>>, vector<1x128xf32>
    %11 = vector.broadcast %10 : vector<1x128xf32> to vector<32x128xf32>
    %12 = arith.addf %9, %11 : vector<32x128xf32>
    %c0_11 = arith.constant 0 : index
    %c0_12 = arith.constant 0 : index
    %13 = vector.load %arg7[%c0_11, %c0_12] : memref<128x128xbf16, #tpu.memory_space<vmem>>, vector<128x128xbf16>
    %cst_13 = arith.constant dense<0.000000e+00> : vector<32x128xf32>
    %14 = tpu.matmul %2, %13, %cst_13 {dimension_numbers = #tpu.dot_dimension_numbers<[1], [0], [0], [1], [0, 0, 1, 1], [], []>} : vector<32x128xbf16>, vector<128x128xbf16>, vector<32x128xf32> -> vector<32x128xf32>
    %c0_14 = arith.constant 0 : index
    %c0_15 = arith.constant 0 : index
    %15 = vector.load %arg8[%c0_14, %c0_15] : memref<1x128xf32, #tpu.memory_space<vmem>>, vector<1x128xf32>
    %16 = vector.broadcast %15 : vector<1x128xf32> to vector<32x128xf32>
    %17 = arith.addf %14, %16 : vector<32x128xf32>
    %c0_16 = arith.constant 0 : index
    %c0_17 = arith.constant 0 : index
    %c0_18 = arith.constant 0 : index
    %18 = vector.load %arg2[%c0_16, %c0_17, %c0_18] : memref<2x1x16xf32, #tpu.memory_space<vmem>>, vector<2x1x16xf32>
    %cst_19 = arith.constant 0.000000e+00 : f32
    %19 = vector.broadcast %cst_19 : f32 to vector<2x1x16xf32>
    %20 = arith.cmpf oeq, %18, %19 : vector<2x1x16xf32>
    %cst_20 = arith.constant -1.000000e+10 : f32
    %cst_21 = arith.constant 0.000000e+00 : f32
    %21 = vector.broadcast %cst_20 : f32 to vector<2x1x16xf32>
    %22 = vector.broadcast %cst_21 : f32 to vector<2x1x16xf32>
    %23 = arith.select %20, %21, %22 : vector<2x1x16xi1>, vector<2x1x16xf32>
    %24 = vector.extract_strided_slice %7 {offsets = [0, 0], sizes = [32, 32], strides = [1, 1]} : vector<32x128xf32> to vector<32x32xf32>
    %25 = vector.shape_cast %24 : vector<32x32xf32> to vector<2x16x32xf32>
    %26 = arith.truncf %25 : vector<2x16x32xf32> to vector<2x16x32xbf16>
    %27 = vector.extract_strided_slice %12 {offsets = [0, 0], sizes = [32, 32], strides = [1, 1]} : vector<32x128xf32> to vector<32x32xf32>
    %28 = vector.shape_cast %27 : vector<32x32xf32> to vector<2x16x32xf32>
    %29 = arith.truncf %28 : vector<2x16x32xf32> to vector<2x16x32xbf16>
    %30 = vector.extract_strided_slice %17 {offsets = [0, 0], sizes = [32, 32], strides = [1, 1]} : vector<32x128xf32> to vector<32x32xf32>
    %31 = vector.shape_cast %30 : vector<32x32xf32> to vector<2x16x32xf32>
    %32 = arith.truncf %31 : vector<2x16x32xf32> to vector<2x16x32xbf16>
    "tpu.trace_start"() <{level = 10 : i32, message = "bqd,bkd->bqk"}> : () -> ()
    %cst_22 = arith.constant dense<0.000000e+00> : vector<2x16x16xf32>
    %33 = tpu.matmul %26, %29, %cst_22 {dimension_numbers = #tpu.dot_dimension_numbers<[2], [2], [1], [1], [0, 0, 0, 1, 1, 1], [0], [0]>} : vector<2x16x32xbf16>, vector<2x16x32xbf16>, vector<2x16x16xf32> -> vector<2x16x16xf32>
    "tpu.trace_stop"() : () -> ()
    %cst_23 = arith.constant 0.176776692 : f32
    %34 = vector.broadcast %cst_23 : f32 to vector<2x16x16xf32>
    %35 = arith.mulf %33, %34 : vector<2x16x16xf32>
    %36 = vector.broadcast %23 : vector<2x1x16xf32> to vector<2x16x16xf32>
    %37 = arith.addf %35, %36 : vector<2x16x16xf32>
    %cst_24 = arith.constant dense<0xFF800000> : vector<2x16xf32>
    %38 = vector.multi_reduction <maximumf>, %37, %cst_24 [2] : vector<2x16x16xf32> to vector<2x16xf32>
    %39 = vector.shape_cast %38 : vector<2x16xf32> to vector<2x16x1xf32>
    %40 = vector.broadcast %39 : vector<2x16x1xf32> to vector<2x16x16xf32>
    %41 = arith.subf %37, %40 : vector<2x16x16xf32>
    %42 = math.exp %41 : vector<2x16x16xf32>
    %cst_25 = arith.constant dense<0.000000e+00> : vector<2x16xf32>
    %43 = vector.multi_reduction <add>, %42, %cst_25 [2] : vector<2x16x16xf32> to vector<2x16xf32>
    %44 = vector.shape_cast %43 : vector<2x16xf32> to vector<2x16x1xf32>
    %45 = arith.truncf %42 : vector<2x16x16xf32> to vector<2x16x16xbf16>
    "tpu.trace_start"() <{level = 10 : i32, message = "bqk,bkd->bqd"}> : () -> ()
    %cst_26 = arith.constant dense<0.000000e+00> : vector<2x16x32xf32>
    %46 = tpu.matmul %45, %32, %cst_26 {dimension_numbers = #tpu.dot_dimension_numbers<[2], [1], [1], [2], [0, 0, 0, 1, 1, 2], [0], [0]>} : vector<2x16x16xbf16>, vector<2x16x32xbf16>, vector<2x16x32xf32> -> vector<2x16x32xf32>
    "tpu.trace_stop"() : () -> ()
    %47 = tpu.reciprocal %44 {approx = true} : vector<2x16x1xf32> -> vector<2x16x1xf32>
    %48 = vector.broadcast %47 : vector<2x16x1xf32> to vector<2x16x32xf32>
    %49 = arith.mulf %46, %48 : vector<2x16x32xf32>
    %50 = vector.shape_cast %49 : vector<2x16x32xf32> to vector<32x32xf32>
    %51 = arith.truncf %50 : vector<32x32xf32> to vector<32x32xbf16>
    %c0_27 = arith.constant 0 : index
    %c0_28 = arith.constant 0 : index
    %c0_29 = arith.constant 0 : index
    %52 = vector.load %arg9[%c0_27, %c0_28, %c0_29] : memref<4x32x128xbf16, #tpu.memory_space<vmem>>, vector<1x32x128xbf16>
    %53 = vector.shape_cast %52 : vector<1x32x128xbf16> to vector<32x128xbf16>
    %cst_30 = arith.constant dense<0.000000e+00> : vector<32x128xf32>
    %54 = tpu.matmul %51, %53, %cst_30 {dimension_numbers = #tpu.dot_dimension_numbers<[1], [0], [0], [1], [0, 0, 1, 1], [], []>} : vector<32x32xbf16>, vector<32x128xbf16>, vector<32x128xf32> -> vector<32x128xf32>
    %55 = vector.extract_strided_slice %7 {offsets = [0, 32], sizes = [32, 32], strides = [1, 1]} : vector<32x128xf32> to vector<32x32xf32>
    %56 = vector.shape_cast %55 : vector<32x32xf32> to vector<2x16x32xf32>
    %57 = arith.truncf %56 : vector<2x16x32xf32> to vector<2x16x32xbf16>
    %58 = vector.extract_strided_slice %12 {offsets = [0, 32], sizes = [32, 32], strides = [1, 1]} : vector<32x128xf32> to vector<32x32xf32>
    %59 = vector.shape_cast %58 : vector<32x32xf32> to vector<2x16x32xf32>
    %60 = arith.truncf %59 : vector<2x16x32xf32> to vector<2x16x32xbf16>
    %61 = vector.extract_strided_slice %17 {offsets = [0, 32], sizes = [32, 32], strides = [1, 1]} : vector<32x128xf32> to vector<32x32xf32>
    %62 = vector.shape_cast %61 : vector<32x32xf32> to vector<2x16x32xf32>
    %63 = arith.truncf %62 : vector<2x16x32xf32> to vector<2x16x32xbf16>
    "tpu.trace_start"() <{level = 10 : i32, message = "bqd,bkd->bqk"}> : () -> ()
    %cst_31 = arith.constant dense<0.000000e+00> : vector<2x16x16xf32>
    %64 = tpu.matmul %57, %60, %cst_31 {dimension_numbers = #tpu.dot_dimension_numbers<[2], [2], [1], [1], [0, 0, 0, 1, 1, 1], [0], [0]>} : vector<2x16x32xbf16>, vector<2x16x32xbf16>, vector<2x16x16xf32> -> vector<2x16x16xf32>
    "tpu.trace_stop"() : () -> ()
    %cst_32 = arith.constant 0.176776692 : f32
    %65 = vector.broadcast %cst_32 : f32 to vector<2x16x16xf32>
    %66 = arith.mulf %64, %65 : vector<2x16x16xf32>
    %67 = vector.broadcast %23 : vector<2x1x16xf32> to vector<2x16x16xf32>
    %68 = arith.addf %66, %67 : vector<2x16x16xf32>
    %cst_33 = arith.constant dense<0xFF800000> : vector<2x16xf32>
    %69 = vector.multi_reduction <maximumf>, %68, %cst_33 [2] : vector<2x16x16xf32> to vector<2x16xf32>
    %70 = vector.shape_cast %69 : vector<2x16xf32> to vector<2x16x1xf32>
    %71 = vector.broadcast %70 : vector<2x16x1xf32> to vector<2x16x16xf32>
    %72 = arith.subf %68, %71 : vector<2x16x16xf32>
    %73 = math.exp %72 : vector<2x16x16xf32>
    %cst_34 = arith.constant dense<0.000000e+00> : vector<2x16xf32>
    %74 = vector.multi_reduction <add>, %73, %cst_34 [2] : vector<2x16x16xf32> to vector<2x16xf32>
    %75 = vector.shape_cast %74 : vector<2x16xf32> to vector<2x16x1xf32>
    %76 = arith.truncf %73 : vector<2x16x16xf32> to vector<2x16x16xbf16>
    "tpu.trace_start"() <{level = 10 : i32, message = "bqk,bkd->bqd"}> : () -> ()
    %cst_35 = arith.constant dense<0.000000e+00> : vector<2x16x32xf32>
    %77 = tpu.matmul %76, %63, %cst_35 {dimension_numbers = #tpu.dot_dimension_numbers<[2], [1], [1], [2], [0, 0, 0, 1, 1, 2], [0], [0]>} : vector<2x16x16xbf16>, vector<2x16x32xbf16>, vector<2x16x32xf32> -> vector<2x16x32xf32>
    "tpu.trace_stop"() : () -> ()
    %78 = tpu.reciprocal %75 {approx = true} : vector<2x16x1xf32> -> vector<2x16x1xf32>
    %79 = vector.broadcast %78 : vector<2x16x1xf32> to vector<2x16x32xf32>
    %80 = arith.mulf %77, %79 : vector<2x16x32xf32>
    %81 = vector.shape_cast %80 : vector<2x16x32xf32> to vector<32x32xf32>
    %82 = arith.truncf %81 : vector<32x32xf32> to vector<32x32xbf16>
    %c1 = arith.constant 1 : index
    %c0_36 = arith.constant 0 : index
    %c0_37 = arith.constant 0 : index
    %83 = vector.load %arg9[%c1, %c0_36, %c0_37] : memref<4x32x128xbf16, #tpu.memory_space<vmem>>, vector<1x32x128xbf16>
    %84 = vector.shape_cast %83 : vector<1x32x128xbf16> to vector<32x128xbf16>
    %cst_38 = arith.constant dense<0.000000e+00> : vector<32x128xf32>
    %85 = tpu.matmul %82, %84, %cst_38 {dimension_numbers = #tpu.dot_dimension_numbers<[1], [0], [0], [1], [0, 0, 1, 1], [], []>} : vector<32x32xbf16>, vector<32x128xbf16>, vector<32x128xf32> -> vector<32x128xf32>
    %86 = arith.addf %54, %85 : vector<32x128xf32>
    %87 = vector.extract_strided_slice %7 {offsets = [0, 64], sizes = [32, 32], strides = [1, 1]} : vector<32x128xf32> to vector<32x32xf32>
    %88 = vector.shape_cast %87 : vector<32x32xf32> to vector<2x16x32xf32>
    %89 = arith.truncf %88 : vector<2x16x32xf32> to vector<2x16x32xbf16>
    %90 = vector.extract_strided_slice %12 {offsets = [0, 64], sizes = [32, 32], strides = [1, 1]} : vector<32x128xf32> to vector<32x32xf32>
    %91 = vector.shape_cast %90 : vector<32x32xf32> to vector<2x16x32xf32>
    %92 = arith.truncf %91 : vector<2x16x32xf32> to vector<2x16x32xbf16>
    %93 = vector.extract_strided_slice %17 {offsets = [0, 64], sizes = [32, 32], strides = [1, 1]} : vector<32x128xf32> to vector<32x32xf32>
    %94 = vector.shape_cast %93 : vector<32x32xf32> to vector<2x16x32xf32>
    %95 = arith.truncf %94 : vector<2x16x32xf32> to vector<2x16x32xbf16>
    "tpu.trace_start"() <{level = 10 : i32, message = "bqd,bkd->bqk"}> : () -> ()
    %cst_39 = arith.constant dense<0.000000e+00> : vector<2x16x16xf32>
    %96 = tpu.matmul %89, %92, %cst_39 {dimension_numbers = #tpu.dot_dimension_numbers<[2], [2], [1], [1], [0, 0, 0, 1, 1, 1], [0], [0]>} : vector<2x16x32xbf16>, vector<2x16x32xbf16>, vector<2x16x16xf32> -> vector<2x16x16xf32>
    "tpu.trace_stop"() : () -> ()
    %cst_40 = arith.constant 0.176776692 : f32
    %97 = vector.broadcast %cst_40 : f32 to vector<2x16x16xf32>
    %98 = arith.mulf %96, %97 : vector<2x16x16xf32>
    %99 = vector.broadcast %23 : vector<2x1x16xf32> to vector<2x16x16xf32>
    %100 = arith.addf %98, %99 : vector<2x16x16xf32>
    %cst_41 = arith.constant dense<0xFF800000> : vector<2x16xf32>
    %101 = vector.multi_reduction <maximumf>, %100, %cst_41 [2] : vector<2x16x16xf32> to vector<2x16xf32>
    %102 = vector.shape_cast %101 : vector<2x16xf32> to vector<2x16x1xf32>
    %103 = vector.broadcast %102 : vector<2x16x1xf32> to vector<2x16x16xf32>
    %104 = arith.subf %100, %103 : vector<2x16x16xf32>
    %105 = math.exp %104 : vector<2x16x16xf32>
    %cst_42 = arith.constant dense<0.000000e+00> : vector<2x16xf32>
    %106 = vector.multi_reduction <add>, %105, %cst_42 [2] : vector<2x16x16xf32> to vector<2x16xf32>
    %107 = vector.shape_cast %106 : vector<2x16xf32> to vector<2x16x1xf32>
    %108 = arith.truncf %105 : vector<2x16x16xf32> to vector<2x16x16xbf16>
    "tpu.trace_start"() <{level = 10 : i32, message = "bqk,bkd->bqd"}> : () -> ()
    %cst_43 = arith.constant dense<0.000000e+00> : vector<2x16x32xf32>
    %109 = tpu.matmul %108, %95, %cst_43 {dimension_numbers = #tpu.dot_dimension_numbers<[2], [1], [1], [2], [0, 0, 0, 1, 1, 2], [0], [0]>} : vector<2x16x16xbf16>, vector<2x16x32xbf16>, vector<2x16x32xf32> -> vector<2x16x32xf32>
    "tpu.trace_stop"() : () -> ()
    %110 = tpu.reciprocal %107 {approx = true} : vector<2x16x1xf32> -> vector<2x16x1xf32>
    %111 = vector.broadcast %110 : vector<2x16x1xf32> to vector<2x16x32xf32>
    %112 = arith.mulf %109, %111 : vector<2x16x32xf32>
    %113 = vector.shape_cast %112 : vector<2x16x32xf32> to vector<32x32xf32>
    %114 = arith.truncf %113 : vector<32x32xf32> to vector<32x32xbf16>
    %c2 = arith.constant 2 : index
    %c0_44 = arith.constant 0 : index
    %c0_45 = arith.constant 0 : index
    %115 = vector.load %arg9[%c2, %c0_44, %c0_45] : memref<4x32x128xbf16, #tpu.memory_space<vmem>>, vector<1x32x128xbf16>
    %116 = vector.shape_cast %115 : vector<1x32x128xbf16> to vector<32x128xbf16>
    %cst_46 = arith.constant dense<0.000000e+00> : vector<32x128xf32>
    %117 = tpu.matmul %114, %116, %cst_46 {dimension_numbers = #tpu.dot_dimension_numbers<[1], [0], [0], [1], [0, 0, 1, 1], [], []>} : vector<32x32xbf16>, vector<32x128xbf16>, vector<32x128xf32> -> vector<32x128xf32>
    %118 = arith.addf %86, %117 : vector<32x128xf32>
    %119 = vector.extract_strided_slice %7 {offsets = [0, 96], sizes = [32, 32], strides = [1, 1]} : vector<32x128xf32> to vector<32x32xf32>
    %120 = vector.shape_cast %119 : vector<32x32xf32> to vector<2x16x32xf32>
    %121 = arith.truncf %120 : vector<2x16x32xf32> to vector<2x16x32xbf16>
    %122 = vector.extract_strided_slice %12 {offsets = [0, 96], sizes = [32, 32], strides = [1, 1]} : vector<32x128xf32> to vector<32x32xf32>
    %123 = vector.shape_cast %122 : vector<32x32xf32> to vector<2x16x32xf32>
    %124 = arith.truncf %123 : vector<2x16x32xf32> to vector<2x16x32xbf16>
    %125 = vector.extract_strided_slice %17 {offsets = [0, 96], sizes = [32, 32], strides = [1, 1]} : vector<32x128xf32> to vector<32x32xf32>
    %126 = vector.shape_cast %125 : vector<32x32xf32> to vector<2x16x32xf32>
    %127 = arith.truncf %126 : vector<2x16x32xf32> to vector<2x16x32xbf16>
    "tpu.trace_start"() <{level = 10 : i32, message = "bqd,bkd->bqk"}> : () -> ()
    %cst_47 = arith.constant dense<0.000000e+00> : vector<2x16x16xf32>
    %128 = tpu.matmul %121, %124, %cst_47 {dimension_numbers = #tpu.dot_dimension_numbers<[2], [2], [1], [1], [0, 0, 0, 1, 1, 1], [0], [0]>} : vector<2x16x32xbf16>, vector<2x16x32xbf16>, vector<2x16x16xf32> -> vector<2x16x16xf32>
    "tpu.trace_stop"() : () -> ()
    %cst_48 = arith.constant 0.176776692 : f32
    %129 = vector.broadcast %cst_48 : f32 to vector<2x16x16xf32>
    %130 = arith.mulf %128, %129 : vector<2x16x16xf32>
    %131 = vector.broadcast %23 : vector<2x1x16xf32> to vector<2x16x16xf32>
    %132 = arith.addf %130, %131 : vector<2x16x16xf32>
    %cst_49 = arith.constant dense<0xFF800000> : vector<2x16xf32>
    %133 = vector.multi_reduction <maximumf>, %132, %cst_49 [2] : vector<2x16x16xf32> to vector<2x16xf32>
    %134 = vector.shape_cast %133 : vector<2x16xf32> to vector<2x16x1xf32>
    %135 = vector.broadcast %134 : vector<2x16x1xf32> to vector<2x16x16xf32>
    %136 = arith.subf %132, %135 : vector<2x16x16xf32>
    %137 = math.exp %136 : vector<2x16x16xf32>
    %cst_50 = arith.constant dense<0.000000e+00> : vector<2x16xf32>
    %138 = vector.multi_reduction <add>, %137, %cst_50 [2] : vector<2x16x16xf32> to vector<2x16xf32>
    %139 = vector.shape_cast %138 : vector<2x16xf32> to vector<2x16x1xf32>
    %140 = arith.truncf %137 : vector<2x16x16xf32> to vector<2x16x16xbf16>
    "tpu.trace_start"() <{level = 10 : i32, message = "bqk,bkd->bqd"}> : () -> ()
    %cst_51 = arith.constant dense<0.000000e+00> : vector<2x16x32xf32>
    %141 = tpu.matmul %140, %127, %cst_51 {dimension_numbers = #tpu.dot_dimension_numbers<[2], [1], [1], [2], [0, 0, 0, 1, 1, 2], [0], [0]>} : vector<2x16x16xbf16>, vector<2x16x32xbf16>, vector<2x16x32xf32> -> vector<2x16x32xf32>
    "tpu.trace_stop"() : () -> ()
    %142 = tpu.reciprocal %139 {approx = true} : vector<2x16x1xf32> -> vector<2x16x1xf32>
    %143 = vector.broadcast %142 : vector<2x16x1xf32> to vector<2x16x32xf32>
    %144 = arith.mulf %141, %143 : vector<2x16x32xf32>
    %145 = vector.shape_cast %144 : vector<2x16x32xf32> to vector<32x32xf32>
    %146 = arith.truncf %145 : vector<32x32xf32> to vector<32x32xbf16>
    %c3 = arith.constant 3 : index
    %c0_52 = arith.constant 0 : index
    %c0_53 = arith.constant 0 : index
    %147 = vector.load %arg9[%c3, %c0_52, %c0_53] : memref<4x32x128xbf16, #tpu.memory_space<vmem>>, vector<1x32x128xbf16>
    %148 = vector.shape_cast %147 : vector<1x32x128xbf16> to vector<32x128xbf16>
    %cst_54 = arith.constant dense<0.000000e+00> : vector<32x128xf32>
    %149 = tpu.matmul %146, %148, %cst_54 {dimension_numbers = #tpu.dot_dimension_numbers<[1], [0], [0], [1], [0, 0, 1, 1], [], []>} : vector<32x32xbf16>, vector<32x128xbf16>, vector<32x128xf32> -> vector<32x128xf32>
    %150 = arith.addf %118, %149 : vector<32x128xf32>
    %c0_55 = arith.constant 0 : index
    %c0_56 = arith.constant 0 : index
    %151 = vector.load %arg10[%c0_55, %c0_56] : memref<1x128xf32, #tpu.memory_space<vmem>>, vector<1x128xf32>
    %152 = vector.broadcast %151 : vector<1x128xf32> to vector<32x128xf32>
    %153 = arith.addf %150, %152 : vector<32x128xf32>
    %154 = arith.addf %1, %153 : vector<32x128xf32>
    %cst_57 = arith.constant dense<0.000000e+00> : vector<32xf32>
    %155 = vector.multi_reduction <add>, %154, %cst_57 [1] : vector<32x128xf32> to vector<32xf32>
    %156 = vector.shape_cast %155 : vector<32xf32> to vector<32x1xf32>
    %cst_58 = arith.constant 1.280000e+02 : f32
    %157 = vector.broadcast %cst_58 : f32 to vector<32x1xf32>
    %158 = arith.divf %156, %157 : vector<32x1xf32>
    %159 = vector.broadcast %158 : vector<32x1xf32> to vector<32x128xf32>
    %160 = arith.subf %154, %159 : vector<32x128xf32>
    %161 = vector.broadcast %158 : vector<32x1xf32> to vector<32x128xf32>
    %162 = arith.subf %154, %161 : vector<32x128xf32>
    %163 = arith.mulf %160, %162 : vector<32x128xf32>
    %cst_59 = arith.constant dense<0.000000e+00> : vector<32xf32>
    %164 = vector.multi_reduction <add>, %163, %cst_59 [1] : vector<32x128xf32> to vector<32xf32>
    %165 = vector.shape_cast %164 : vector<32xf32> to vector<32x1xf32>
    %cst_60 = arith.constant 1.280000e+02 : f32
    %166 = vector.broadcast %cst_60 : f32 to vector<32x1xf32>
    %167 = arith.divf %165, %166 : vector<32x1xf32>
    %168 = vector.broadcast %158 : vector<32x1xf32> to vector<32x128xf32>
    %169 = arith.subf %154, %168 : vector<32x128xf32>
    %cst_61 = arith.constant 9.99999974E-6 : f32
    %170 = vector.broadcast %cst_61 : f32 to vector<32x1xf32>
    %171 = arith.addf %167, %170 : vector<32x1xf32>
    %172 = math.rsqrt %171 : vector<32x1xf32>
    %173 = vector.broadcast %172 : vector<32x1xf32> to vector<32x128xf32>
    %174 = arith.mulf %169, %173 : vector<32x128xf32>
    %c0_62 = arith.constant 0 : index
    %c0_63 = arith.constant 0 : index
    %175 = vector.load %arg15[%c0_62, %c0_63] : memref<1x128xf32, #tpu.memory_space<vmem>>, vector<1x128xf32>
    %176 = vector.broadcast %175 : vector<1x128xf32> to vector<32x128xf32>
    %177 = arith.mulf %174, %176 : vector<32x128xf32>
    %c0_64 = arith.constant 0 : index
    %c0_65 = arith.constant 0 : index
    %178 = vector.load %arg16[%c0_64, %c0_65] : memref<1x128xf32, #tpu.memory_space<vmem>>, vector<1x128xf32>
    %179 = vector.broadcast %178 : vector<1x128xf32> to vector<32x128xf32>
    %180 = arith.addf %177, %179 : vector<32x128xf32>
    %181 = arith.truncf %180 : vector<32x128xf32> to vector<32x128xbf16>
    %c0_66 = arith.constant 0 : index
    %c0_67 = arith.constant 0 : index
    %182 = vector.load %arg11[%c0_66, %c0_67] : memref<128x256xbf16, #tpu.memory_space<vmem>>, vector<128x256xbf16>
    %cst_68 = arith.constant dense<0.000000e+00> : vector<32x256xf32>
    %183 = tpu.matmul %181, %182, %cst_68 {dimension_numbers = #tpu.dot_dimension_numbers<[1], [0], [0], [1], [0, 0, 1, 1], [], []>} : vector<32x128xbf16>, vector<128x256xbf16>, vector<32x256xf32> -> vector<32x256xf32>
    %c0_69 = arith.constant 0 : index
    %c0_70 = arith.constant 0 : index
    %184 = vector.load %arg12[%c0_69, %c0_70] : memref<1x256xf32, #tpu.memory_space<vmem>>, vector<1x256xf32>
    %185 = vector.broadcast %184 : vector<1x256xf32> to vector<32x256xf32>
    %186 = arith.addf %183, %185 : vector<32x256xf32>
    %cst_71 = arith.constant 0.000000e+00 : f32
    %187 = vector.broadcast %cst_71 : f32 to vector<32x256xf32>
    %188 = arith.maximumf %186, %187 : vector<32x256xf32>
    %189 = arith.truncf %188 : vector<32x256xf32> to vector<32x256xbf16>
    %c0_72 = arith.constant 0 : index
    %c0_73 = arith.constant 0 : index
    %190 = vector.load %arg13[%c0_72, %c0_73] : memref<256x128xbf16, #tpu.memory_space<vmem>>, vector<256x128xbf16>
    %cst_74 = arith.constant dense<0.000000e+00> : vector<32x128xf32>
    %191 = tpu.matmul %189, %190, %cst_74 {dimension_numbers = #tpu.dot_dimension_numbers<[1], [0], [0], [1], [0, 0, 1, 1], [], []>} : vector<32x256xbf16>, vector<256x128xbf16>, vector<32x128xf32> -> vector<32x128xf32>
    %c0_75 = arith.constant 0 : index
    %c0_76 = arith.constant 0 : index
    %192 = vector.load %arg14[%c0_75, %c0_76] : memref<1x128xf32, #tpu.memory_space<vmem>>, vector<1x128xf32>
    %193 = vector.broadcast %192 : vector<1x128xf32> to vector<32x128xf32>
    %194 = arith.addf %191, %193 : vector<32x128xf32>
    %195 = arith.addf %180, %194 : vector<32x128xf32>
    %cst_77 = arith.constant dense<0.000000e+00> : vector<32xf32>
    %196 = vector.multi_reduction <add>, %195, %cst_77 [1] : vector<32x128xf32> to vector<32xf32>
    %197 = vector.shape_cast %196 : vector<32xf32> to vector<32x1xf32>
    %cst_78 = arith.constant 1.280000e+02 : f32
    %198 = vector.broadcast %cst_78 : f32 to vector<32x1xf32>
    %199 = arith.divf %197, %198 : vector<32x1xf32>
    %200 = vector.broadcast %199 : vector<32x1xf32> to vector<32x128xf32>
    %201 = arith.subf %195, %200 : vector<32x128xf32>
    %202 = vector.broadcast %199 : vector<32x1xf32> to vector<32x128xf32>
    %203 = arith.subf %195, %202 : vector<32x128xf32>
    %204 = arith.mulf %201, %203 : vector<32x128xf32>
    %cst_79 = arith.constant dense<0.000000e+00> : vector<32xf32>
    %205 = vector.multi_reduction <add>, %204, %cst_79 [1] : vector<32x128xf32> to vector<32xf32>
    %206 = vector.shape_cast %205 : vector<32xf32> to vector<32x1xf32>
    %cst_80 = arith.constant 1.280000e+02 : f32
    %207 = vector.broadcast %cst_80 : f32 to vector<32x1xf32>
    %208 = arith.divf %206, %207 : vector<32x1xf32>
    %209 = vector.broadcast %199 : vector<32x1xf32> to vector<32x128xf32>
    %210 = arith.subf %195, %209 : vector<32x128xf32>
    %cst_81 = arith.constant 9.99999974E-6 : f32
    %211 = vector.broadcast %cst_81 : f32 to vector<32x1xf32>
    %212 = arith.addf %208, %211 : vector<32x1xf32>
    %213 = math.rsqrt %212 : vector<32x1xf32>
    %214 = vector.broadcast %213 : vector<32x1xf32> to vector<32x128xf32>
    %215 = arith.mulf %210, %214 : vector<32x128xf32>
    %c0_82 = arith.constant 0 : index
    %c0_83 = arith.constant 0 : index
    %216 = vector.load %arg17[%c0_82, %c0_83] : memref<1x128xf32, #tpu.memory_space<vmem>>, vector<1x128xf32>
    %217 = vector.broadcast %216 : vector<1x128xf32> to vector<32x128xf32>
    %218 = arith.mulf %215, %217 : vector<32x128xf32>
    %c0_84 = arith.constant 0 : index
    %c0_85 = arith.constant 0 : index
    %219 = vector.load %arg18[%c0_84, %c0_85] : memref<1x128xf32, #tpu.memory_space<vmem>>, vector<1x128xf32>
    %220 = vector.broadcast %219 : vector<1x128xf32> to vector<32x128xf32>
    %221 = arith.addf %218, %220 : vector<32x128xf32>
    %222 = vector.shape_cast %221 : vector<32x128xf32> to vector<2x16x128xf32>
    %c0_86 = arith.constant 0 : index
    %c0_87 = arith.constant 0 : index
    %c0_88 = arith.constant 0 : index
    %223 = vector.load %arg19[%c0_86, %c0_87, %c0_88] : memref<2x16x128xf32, #tpu.memory_space<vmem>>, vector<2x16x128xf32>
    tpu.vector_store %arg19[%c0_86, %c0_87, %c0_88], %222 {strides = array<i32>} : memref<2x16x128xf32, #tpu.memory_space<vmem>>, vector<2x16x128xf32>,
    return
  }
  func.func @transform_0(%arg0: i32) -> (i32, i32, i32) {
    %c0_i32 = arith.constant 0 : i32
    %c0_i32_0 = arith.constant 0 : i32
    %c0_i32_1 = arith.constant 0 : i32
    return %arg0, %c0_i32, %c0_i32_0 : i32, i32, i32
  }
  func.func @transform_1(%arg0: i32) -> (i32, i32, i32) {
    %c0_i32 = arith.constant 0 : i32
    %c0_i32_0 = arith.constant 0 : i32
    %c0_i32_1 = arith.constant 0 : i32
    return %arg0, %c0_i32, %c0_i32_0 : i32, i32, i32
  }
  func.func @transform_2(%arg0: i32) -> (i32, i32) {
    %c0_i32 = arith.constant 0 : i32
    %c0_i32_0 = arith.constant 0 : i32
    %c0_i32_1 = arith.constant 0 : i32
    return %c0_i32, %c0_i32_0 : i32, i32
  }
  func.func @transform_3(%arg0: i32) -> (i32, i32) {
    %c0_i32 = arith.constant 0 : i32
    %c0_i32_0 = arith.constant 0 : i32
    %c0_i32_1 = arith.constant 0 : i32
    return %c0_i32, %c0_i32_0 : i32, i32
  }
  func.func @transform_4(%arg0: i32) -> (i32, i32) {
    %c0_i32 = arith.constant 0 : i32
    %c0_i32_0 = arith.constant 0 : i32
    %c0_i32_1 = arith.constant 0 : i32
    return %c0_i32, %c0_i32_0 : i32, i32
  }
  func.func @transform_5(%arg0: i32) -> (i32, i32) {
    %c0_i32 = arith.constant 0 : i32
    %c0_i32_0 = arith.constant 0 : i32
    %c0_i32_1 = arith.constant 0 : i32
    return %c0_i32, %c0_i32_0 : i32, i32
  }
  func.func @transform_6(%arg0: i32) -> (i32, i32) {
    %c0_i32 = arith.constant 0 : i32
    %c0_i32_0 = arith.constant 0 : i32
    %c0_i32_1 = arith.constant 0 : i32
    return %c0_i32, %c0_i32_0 : i32, i32
  }
  func.func @transform_7(%arg0: i32) -> (i32, i32) {
    %c0_i32 = arith.constant 0 : i32
    %c0_i32_0 = arith.constant 0 : i32
    %c0_i32_1 = arith.constant 0 : i32
    return %c0_i32, %c0_i32_0 : i32, i32
  }
  func.func @transform_8(%arg0: i32) -> (i32, i32, i32) {
    %c0_i32 = arith.constant 0 : i32
    %c0_i32_0 = arith.constant 0 : i32
    %c0_i32_1 = arith.constant 0 : i32
    %c0_i32_2 = arith.constant 0 : i32
    return %c0_i32, %c0_i32_0, %c0_i32_1 : i32, i32, i32
  }
  func.func @transform_9(%arg0: i32) -> (i32, i32) {
    %c0_i32 = arith.constant 0 : i32
    %c0_i32_0 = arith.constant 0 : i32
    %c0_i32_1 = arith.constant 0 : i32
    return %c0_i32, %c0_i32_0 : i32, i32
  }
  func.func @transform_10(%arg0: i32) -> (i32, i32) {
    %c0_i32 = arith.constant 0 : i32
    %c0_i32_0 = arith.constant 0 : i32
    %c0_i32_1 = arith.constant 0 : i32
    return %c0_i32, %c0_i32_0 : i32, i32
  }
  func.func @transform_11(%arg0: i32) -> (i32, i32) {
    %c0_i32 = arith.constant 0 : i32
    %c0_i32_0 = arith.constant 0 : i32
    %c0_i32_1 = arith.constant 0 : i32
    return %c0_i32, %c0_i32_0 : i32, i32
  }
  func.func @transform_12(%arg0: i32) -> (i32, i32) {
    %c0_i32 = arith.constant 0 : i32
    %c0_i32_0 = arith.constant 0 : i32
    %c0_i32_1 = arith.constant 0 : i32
    return %c0_i32, %c0_i32_0 : i32, i32
  }
  func.func @transform_13(%arg0: i32) -> (i32, i32) {
    %c0_i32 = arith.constant 0 : i32
    %c0_i32_0 = arith.constant 0 : i32
    %c0_i32_1 = arith.constant 0 : i32
    return %c0_i32, %c0_i32_0 : i32, i32
  }
  func.func @transform_14(%arg0: i32) -> (i32, i32) {
    %c0_i32 = arith.constant 0 : i32
    %c0_i32_0 = arith.constant 0 : i32
    %c0_i32_1 = arith.constant 0 : i32
    return %c0_i32, %c0_i32_0 : i32, i32
  }
  func.func @transform_15(%arg0: i32) -> (i32, i32) {
    %c0_i32 = arith.constant 0 : i32
    %c0_i32_0 = arith.constant 0 : i32
    %c0_i32_1 = arith.constant 0 : i32
    return %c0_i32, %c0_i32_0 : i32, i32
  }
  func.func @transform_16(%arg0: i32) -> (i32, i32) {
    %c0_i32 = arith.constant 0 : i32
    %c0_i32_0 = arith.constant 0 : i32
    %c0_i32_1 = arith.constant 0 : i32
    return %c0_i32, %c0_i32_0 : i32, i32
  }
  func.func @transform_17(%arg0: i32) -> (i32, i32) {
    %c0_i32 = arith.constant 0 : i32
    %c0_i32_0 = arith.constant 0 : i32
    %c0_i32_1 = arith.constant 0 : i32
    return %c0_i32, %c0_i32_0 : i32, i32
  }
  func.func @transform_18(%arg0: i32) -> (i32, i32, i32) {
    %c0_i32 = arith.constant 0 : i32
    %c0_i32_0 = arith.constant 0 : i32
    %c0_i32_1 = arith.constant 0 : i32
    return %arg0, %c0_i32, %c0_i32_0 : i32, i32, i32
  }
}

</mosaic_0001>

<bundles_post_ra>
// kernel: tpu_custom_call.1
= control target key start
LH: loop header
LB: loop body
LE: loop exit
PB: predicated region body
PF: predicated region fallthrough
CT: control target
= control target key end

     0   :  { %s4181_s0 = inlined_call_operand.hbm [shape: f32[4,16,128], index: 0, kind: input, shape index: {}]   ;;  %s4182_s1 = inlined_call_operand.hbm [shape: f32[4,1,16], index: 1, kind: input, shape index: {}]   ;;  %s4183_s2 = inlined_call_operand.hbm [shape: bf16[128,128], index: 2, kind: input, shape index: {}]   ;;  %s4184_s3 = inlined_call_operand.vmem [shape: f32[1,128], index: 3, kind: input, shape index: {}]   ;;  %s4185_s4 = inlined_call_operand.hbm [shape: bf16[128,128], index: 4, kind: input, shape index: {}]   ;;  %s4186_s5 = inlined_call_operand.vmem [shape: f32[1,128], index: 5, kind: input, shape index: {}]   ;;  %s4187_s6 = inlined_call_operand.hbm [shape: bf16[128,128], index: 6, kind: input, shape index: {}]   ;;  %s4188_s7 = inlined_call_operand.vmem [shape: f32[1,128], index: 7, kind: input, shape index: {}]   ;;  %s4189_s8 = inlined_call_operand.hbm [shape: bf16[4,32,128], index: 8, kind: input, shape index: {}]   ;;  %s4190_s9 = inlined_call_operand.vmem [shape: f32[1,128], index: 9, kind: input, shape index: {}]   ;;  %s4191_s10 = inlined_call_operand.hbm [shape: bf16[128,256], index: 10, kind: input, shape index: {}]   ;;  %s4192_s11 = inlined_call_operand.vmem [shape: f32[1,256], index: 11, kind: input, shape index: {}]   ;;  %s4193_s12 = inlined_call_operand.hbm [shape: bf16[256,128], index: 12, kind: input, shape index: {}]   ;;  %s4194_s13 = inlined_call_operand.vmem [shape: f32[1,128], index: 13, kind: input, shape index: {}]   ;;  %s4195_s14 = inlined_call_operand.vmem [shape: f32[1,128], index: 14, kind: input, shape index: {}]   ;;  %s4196_s15 = inlined_call_operand.vmem [shape: f32[1,128], index: 15, kind: input, shape index: {}]   ;;  %s4197_s16 = inlined_call_operand.vmem [shape: f32[1,128], index: 16, kind: input, shape index: {}]   ;;  %s4198_s17 = inlined_call_operand.vmem [shape: f32[1,128], index: 17, kind: input, shape index: {}]   ;;  %s4199_s18 = inlined_call_operand.hbm [shape: f32[4,16,128], index: 18, kind: output, shape index: {}]  }
   0x1   :  { %4212 = sst [smem:[#allocation30_spill]] %s4181_s0 }
   0x2   :  { %4213 = sst [smem:[#allocation31_spill]] %s4182_s1 }
   0x3   :  { %4214 = sst [smem:[#allocation32_spill]] %s4183_s2 }
   0x4   :  { %4215 = sst [smem:[#allocation33_spill]] %s4185_s4 }
   0x5   :  { %4216 = sst [smem:[#allocation34_spill]] %s4187_s6 }
   0x6   :  { %4217 = sst [smem:[#allocation35_spill]] %s4189_s8 }
   0x7   :  { %4218 = sst [smem:[#allocation36_spill]] %s4191_s10 }
   0x8   :  { %4219 = sst [smem:[#allocation37_spill]] %s4192_s11 }
   0x9   :  { %4220 = sst [smem:[#allocation38_spill]] %s4193_s12 }
   0xa   :  { %4221 = sst [smem:[#allocation39_spill]] %s4194_s13 }
   0xb   :  { %4222 = sst [smem:[#allocation40_spill]] %s4197_s16 }
   0xc   :  { %4223 = sst [smem:[#allocation41_spill]] %s4198_s17 }
   0xd   :  { %4224 = sst [smem:[#allocation42_spill]] %s4199_s18 }
   0xe   :  { %23 = vsyncpa [#allocation3], 0 }
   0xf   :  { %25 = vsyncpa [#allocation3 + $0x1], 0 }
  0x10   :  { %26 = vsyncpa [#allocation6], 0 }
  0x11   :  { %28 = vsyncpa [#allocation6 + $0x1], 0 }
  0x12   :  { %29 = vsyncpa [#allocation9], 0 }
  0x13   :  { %30 = vsyncpa [#allocation12], 0 }
  0x14   :  { %31 = vsyncpa [#allocation15], 0 }
  0x15   :  { %32 = vsyncpa [#allocation4], 0 }
  0x16   :  { %34 = vsyncpa [#allocation4 + $0x1], 0  ;;  %s3605_s27 = smov 0   ;;  %s3607_s28 = smov 0  }
  0x17   :  { %s3609_s29 = smov 0   ;;  %s3611_s30 = smov 0  }
  0x18 LB: > { %4225 = sst [smem:[#allocation24_spill]] %s3477_s27  ;;  %s3629_s21 = sadd.s32 4294967295, %s3489_s30   ;;  %s3489_s30 = sphi %s3611_s30, %s4257_s30   ;;  %s3485_s29 = sphi %s3609_s29, %s4259_s29   ;;  %s3481_s28 = sphi %s3607_s28, %s4261_s28   ;;  %s3477_s27 = sphi %s3605_s27, %s4260_s27  }
  0x19   : > { %4226 = sst [smem:[#allocation25_spill]] %s3485_s29  ;;  %p2565_p0 = scmp.ge.s32.totalorder %s3489_s30, 1 }
  0x1a   : > { %s4227_s1 = sld [smem:[#allocation32_spill]]  ;;  %p61_p1 = scmp.eq.s32.totalorder %s3629_s21, 0 }
  0x1b   : > { %p459_p2 = scmp.lt.s32.totalorder %s3489_s30, 3  ;;  %s3491_s2 = smov [#allocation7]  }
  0x1c   : > { %s472_s23 = sshll.u32 %s3491_s2, 4  ;;  %s4229_s4 = sld [smem:[#allocation33_spill]]  ;;  %s473_s23 = int_to_ptr.vmem [resolvable:$true] %s472_s23 }
  0x1d   : > { %p3634_p3 = pnand %p2565_p0, %p459_p2  ;;  %s4231_s8 = sld [smem:[#allocation35_spill]] }
  0x1e   : > { %s3492_s18 = smov [#allocation8]   ;;  %s3493_s16 = smov 64  }
  0x1f   : > { %p2973_p4 = pneg %p3634_p3  ;;  %s489_s17 = sshll.u32 %s3492_s18, 4  ;;  %s490_s17 = int_to_ptr.vmem [resolvable:$true] %s489_s17 }
  0x20   : > { %s470_s20 = sshll.u32 %s4227_s1, 4  ;;  %s3494_s13 = smov 4   ;;  %s471_s20 = int_to_ptr.hbm [resolvable:$true] %s470_s20 }
  0x21   : > { %p3646_p6 = pnand %p2973_p4, %p61_p1  ;;  %s4232_s6 = sld [smem:[#allocation34_spill]] }
  0x22   : > { %s487_s26 = sshll.u32 %s4229_s4, 4  ;;  %s3495_s18 = smov [#allocation11]   ;;  %s488_s26 = int_to_ptr.hbm [resolvable:$true] %s487_s26 }
  0x23   : > { %s521_s2 = sshll.u32 %s4231_s8, 4  ;;  %s523_s1 = sshll.u32 %s3495_s18, 4  ;;  %s522_s2 = int_to_ptr.hbm [resolvable:$true] %s521_s2  ;;  %s524_s1 = int_to_ptr.vmem [resolvable:$true] %s523_s1 }
  0x24   : > { %2976 = dma.hbm_to_vmem [thread:$0]  (!%p3646_p6), %s471_s20, 1024, %s473_s23, [#allocation6], %s3493_s16, %s3493_s16, %s3494_s13  }
  0x25   : > { %2979 = dma.hbm_to_vmem [thread:$0]  (!%p3646_p6), %s488_s26, 1024, %s490_s17, [#allocation9], %s3493_s16, %s3493_s16, %s3494_s13  }
  0x26   : > { %2985 = dma.hbm_to_vmem [thread:$0]  (!%p3646_p6), %s522_s2, 1024, %s524_s1, [#allocation12], %s3493_s16, %s3493_s16, %s3494_s13  }
  0x27   : > { %s504_s19 = sshll.u32 %s4232_s6, 4  ;;  %s3496_s20 = smov [#allocation10]   ;;  %s505_s19 = int_to_ptr.hbm [resolvable:$true] %s504_s19 }
  0x28   : > { %s506_s23 = sshll.u32 %s3496_s20, 4  ;;  %s4233_s10 = sld [smem:[#allocation36_spill]]  ;;  %s507_s23 = int_to_ptr.vmem [resolvable:$true] %s506_s23 }
  0x29   : > { %2982 = dma.hbm_to_vmem [thread:$0]  (!%p3646_p6), %s505_s19, 1024, %s507_s23, [#allocation9], %s3493_s16, %s3493_s16, %s3494_s13  }
  0x2a   : > { %s3497_s26 = smov [#allocation13]   ;;  %s4234_s12 = sld [smem:[#allocation38_spill]] }
  0x2b   : > { %s540_s2 = sshll.u32 %s3497_s26, 4  ;;  %s4203_s25 = smov 128   ;;  %s541_s2 = int_to_ptr.vmem [resolvable:$true] %s540_s2 }
  0x2c   : > { %s4204_s18 = smov 8   ;;  %s3500_s19 = smov [#allocation14]  }
  0x2d   : > { %s557_s1 = sshll.u32 %s3500_s19, 4  ;;  %s2564_s20 = sadd.s32 4294967294, %s3489_s30   ;;  %s558_s1 = int_to_ptr.vmem [resolvable:$true] %s557_s1 }
  0x2e   : > { %s538_s17 = sshll.u32 %s4233_s10, 4  ;;  %s3694_s23 = sadd.s32 1, %s3489_s30   ;;  %s539_s17 = int_to_ptr.hbm [resolvable:$true] %s538_s17 }
  0x2f   : > { %2988 = dma.hbm_to_vmem [thread:$0]  (!%p3646_p6), %s539_s17, 2048, %s541_s2, [#allocation12], %s4203_s25, %s4203_s25, %s4204_s18  }
  0x30   : > { %s555_s8 = sshll.u32 %s4234_s12, 4  ;;  %4235 = sst [smem:[#allocation26_spill]] %s3694_s23  ;;  %s556_s8 = int_to_ptr.hbm [resolvable:$true] %s555_s8 }
  0x31   : > { %2991 = dma.hbm_to_vmem [thread:$0]  (!%p3646_p6), %s556_s8, 2048, %s558_s1, [#allocation15], %s3493_s16, %s3493_s16, %s3494_s13  }
  0x32   : > { %s44_s26 = ssub.s32 %s3489_s30, %s3694_s23  ;;  %s47_s17 = sadd.s32 1, %s3485_s29 }
  0x33   : > { %p45_p7 = scmp.eq.s32.totalorder %s44_s26, 0  ;;  %p54_p8 = scmp.ne.s32.totalorder %s3485_s29, %s3481_s28 }
  0x34   : > { %p55_p9 = scmp.eq.s32.totalorder %s3489_s30, 0  ;;  %p60_p10 = scmp.ne.s32.totalorder %s3481_s28, %s3477_s27 }
  0x35   : > { %s3705_s2 = scalar_select %p45_p7, %s3485_s29, %s47_s17  }
  0x36   : > { %p3707_p11 = por %p55_p9, %p54_p8  ;;  %p3713_p12 = por %p61_p1, %p60_p10 }
  0x37   : > { %4236 = sst [smem:[#allocation27_spill]] %s3705_s2  ;;  %p446_p13 = scmp.eq.s32.totalorder %s3629_s21, 1 }
  0x38   : > { %p452_p0 = scmp.eq.s32.totalorder %s2564_s20, 1  ;;  %p3009_p2 = scmp.lt.s32.totalorder %s3489_s30, 2 }
  0x39   : > { %s3720_s16 = sand.u32 1, %s3485_s29   ;;  %p3722_p4 = por %p446_p13, %p54_p8 }
  0x3a   : > { %p3726_p6 = por %p452_p0, %p60_p10  ;;  %s2573_s8 = sshll.u32 %s3720_s16, 5 }
  0x3b   : > { %s4239_s24 = scalar_select %p3722_p4, 1, 0 }
  0x3c   : > { %s4241_s4 = scalar_select %p3726_p6, 1, 0 }
  0x3d   : > { %4240 = sst [smem:[#allocation28_spill]] %s4239_s24  ;;  %s2876_s19 = sshll.u32 %s3489_s30, 5 }
  0x3e   : > { %4242 = sst [smem:[#allocation29_spill]] %s4241_s4  ;;  %s590_s25 = scalar_lea.vmem [#allocation2], %s2573_s8 }
  0x3f   : > { %s4243_s17 = sld [smem:[#allocation30_spill]]  ;;  %s599_s18 = sshll.u32 %s590_s25, 4  ;;  %s600_s18 = int_to_ptr.vmem [resolvable:$true] %s599_s18 }
  0x40   : > { %p3737_p7 = pnand %p3009_p2, %p3707_p11  ;;  %s609_s12 = sand.u32 1, %s3489_s30  }
  0x41   : > { %s2577_s2 = sshll.u32 %s3720_s16, 1  ;;  %s587_s29 = scalar_lea.sflag [#allocation3], %s3720_s16 }
  0x42   : > { %p3347_p9 = pneg %p3737_p7 }
  0x45   : > { %s596_s20 = scalar_lea.hbm %s4243_s17, %s2876_s19  ;;  %s3350_s8 = scalar_lea.hbm %s4243_s17, 64 }
  0x46   : > { %s597_s6 = sshll.u32 %s596_s20, 4  ;;  %s598_s6 = int_to_ptr.hbm [resolvable:$true] %s597_s6 }
  0x47   : > { %s3343_s23 = sshra.s32 %s598_s6, 4  ;;  %s3344_s23 = int_to_ptr.hbm [resolvable:$true] %s3343_s23 }
  0x48   : > { %s3345_s4 = scalar_lea.hbm %s3344_s23, 32  ;;  %p3351_p11 = scmp.lt.s32.totalorder %s3344_s23, %s4243_s17 }
  0x49   : > { %p3346_p8 = scmp.ne.s32.totalorder %s3344_s23, %s3345_s4  ;;  %p3352_p0 = scmp.lt.s32.totalorder %s3350_s8, %s3345_s4 }
  0x4b   : > { %p3348_p10 = pnand %p3347_p9, %p3346_p8  ;;  %p3353_p2 = por %p3352_p0, %p3351_p11 }
  0x4d   : > { %p3349_p13 = pneg %p3348_p10 }
  0x4f   : > { %p3354_p5 = pnand %p3353_p2, %p3349_p13 }
  0x51   : > { %3357 = shalt.err (!%p3354_p5)
}
  0x52   : > { %s4245_s16 = smov 8   ;;  %s4246_s26 = smov 128  }
  0x53   : > { %2995 = dma.hbm_to_vmem [thread:$0]  (!%p3737_p7), %s598_s6, 512, %s600_s18, %s587_s29, %s4246_s26, %s4246_s26, %s4245_s16  }
  0x54   : > { %s2578_s20 = sshll.u32 %s3489_s30, 1  ;;  %s4247_s0 = sld [smem:[#allocation31_spill]] }
  0x55   : > { %s613_s11 = scalar_lea.vmem [#allocation5], %s2577_s2  ;;  %s610_s4 = scalar_lea.sflag [#allocation6], %s609_s12 }
  0x56   : > { %s620_s19 = sshll.u32 %s613_s11, 4  ;;  %s621_s19 = int_to_ptr.vmem [resolvable:$true] %s620_s19 }
  0x5a   : > { %s617_s24 = scalar_lea.hbm %s4247_s0, %s2578_s20  ;;  %s3380_s18 = scalar_lea.hbm %s4247_s0, 4 }
  0x5b   : > { %s618_s23 = sshll.u32 %s617_s24, 4  ;;  %s619_s23 = int_to_ptr.hbm [resolvable:$true] %s618_s23 }
  0x5c   : > { %s3373_s8 = sshra.s32 %s619_s23, 4  ;;  %s3374_s8 = int_to_ptr.hbm [resolvable:$true] %s3373_s8 }
  0x5d   : > { %s3375_s1 = scalar_lea.hbm %s3374_s8, 2  ;;  %p3381_p13 = scmp.lt.s32.totalorder %s3374_s8, %s4247_s0 }
  0x5e   : > { %p3376_p5 = scmp.ne.s32.totalorder %s3374_s8, %s3375_s1  ;;  %p3382_p11 = scmp.lt.s32.totalorder %s3380_s18, %s3375_s1 }
  0x60   : > { %p3378_p8 = pnand %p3376_p5, %p3347_p9  ;;  %p3383_p0 = por %p3382_p11, %p3381_p13 }
  0x62   : > { %p3379_p10 = pneg %p3378_p8 }
  0x64   : > { %p3384_p2 = pnand %p3383_p0, %p3379_p10 }
  0x66   : > { %3387 = shalt.err (!%p3384_p2)
}
  0x67   : > { %s3501_s11 = smov 16   ;;  %s3502_s12 = smov 1  }
  0x68   : > { %2998 = dma.hbm_to_vmem [thread:$0]  (!%p3737_p7), %s619_s23, 32, %s621_s19, %s610_s4, %s3501_s11, %s3501_s11, %s3502_s12  }
  0x69   : > { %632 = sbr.rel (%p3634_p3) target bundleno = 2427 (0x97b), region = 92  ;;  %s3778_s2 = sand.u32 (!%p3634_p3), 1, %s3481_s28  }
  0x6a   : > { %s2580_s24 = sshll.u32 (!%p3634_p3), %s3778_s2, 5  ;;  %s635_s26 = scalar_lea.sflag (!%p3634_p3), [#allocation3], %s3778_s2 }
  0x6b   : > { %s3784_s20 = scalar_lea.vmem (!%p3634_p3), [#allocation2], %s2580_s24 }
  0x6e   : > { %3448 = dma.done.wait (%p3713_p12), %s635_s26, 512  }
  0x6f   : > { %3450 = vsyncadd (%p3713_p12), %s635_s26, 4294966784  ;;  %s644_s10 = sand.u32 1, %s3629_s21   ;;  %s2581_s22 = sshll.u32 %s3778_s2, 1 }
  0x70   : > { %s645_s25 = scalar_lea.sflag [#allocation6], %s644_s10  ;;  %s3792_s19 = scalar_lea.vmem [#allocation5], %s2581_s22 }
  0x71   : > { %3452 = dma.done.wait (%p3713_p12), %s645_s25, 32  }
  0x72   : > { %3454 = vsyncadd (%p3713_p12), %s645_s25, 4294967264 }
  0x73   : > { %3456 = dma.done.wait (%p61_p1), [#allocation6], 1024  }
  0x74   : > { %3458 = vsyncadd (%p61_p1), [#allocation6], 4294966272 }
  0x75   : > { %3460 = dma.done.wait (%p61_p1), [#allocation9], 2048  }
  0x76   : > { %3462 = vsyncadd (%p61_p1), [#allocation9], 4294965248 }
  0x77   : > { %3464 = dma.done.wait (%p61_p1), [#allocation12], 3072  }
  0x78   : > { %3466 = vsyncadd (%p61_p1), [#allocation12], 4294964224 }
  0x79   : > { %3468 = dma.done.wait (%p61_p1), [#allocation15], 2048  }
  0x7a   : > { %3470 = vsyncadd (%p61_p1), [#allocation15], 4294965248  ;;  %v2892_v0 = vld [vmem:[#allocation8 + $0x38] sm:$0xff]  ;;  %v2891_v3 = vld [vmem:[#allocation8 + $0x30] sm:$0xff]  ;;  %vm1036_vm0 = vcmask 261120   ;;  %s3503_s29 = smov 96  }
  0x7b   : > { %v2884_v1 = vld [vmem:[#allocation7 + $0x38] sm:$0xff]  ;;  %902 = vmatpush.bf16.msra.mxu1 %v2892_v0  ;;  %v2883_v4 = vld [vmem:[#allocation7 + $0x30] sm:$0xff]  ;;  %v2890_v6 = vld [vmem:[#allocation8 + $0x28] sm:$0xff]  ;;  %s3504_s18 = smov 64   ;;  %vm1101_vm2 = vcmask 130048   ;;  %s3506_s27 = smov 32  }
  0x7c   : > { %v2900_v2 = vld [vmem:[#allocation10 + $0x38] sm:$0xff]  ;;  %815 = vmatpush.bf16.msra.mxu0 %v2884_v1  ;;  %v2899_v5 = vld [vmem:[#allocation10 + $0x30] sm:$0xff]  ;;  %v2882_v7 = vld [vmem:[#allocation7 + $0x28] sm:$0xff]  ;;  %s4249_s4 = sld [smem:[#allocation39_spill]]  ;;  %s4137_s16 = scalar_lea.vmem [#allocation16], %s2580_s24 }
  0x7d   : > { %989 = vmatpush.bf16.msra.mxu2 %v2900_v2  ;;  %v2898_v8 = vld [vmem:[#allocation10 + $0x28] sm:$0xff]  ;;  %v2889_v9 = vld [vmem:[#allocation8 + $0x20] sm:$0xff]  ;;  %v2888_v12 = vld [vmem:[#allocation8 + $0x18] sm:$0xff]  ;;  %s4250_s6 = sld [smem:[#allocation40_spill]]  ;;  %s2942_s24 = sshll.u32 %s3629_s21, 5 }
  0x7e   : > { %v2881_v10 = vld [vmem:[#allocation7 + $0x20] sm:$0xff]  ;;  %v2880_v13 = vld [vmem:[#allocation7 + $0x18] sm:$0xff]  ;;  %v2887_v15 = vld [vmem:[#allocation8 + $0x10] sm:$0xff]  ;;  %s4252_s26 = sld [smem:[#allocation42_spill]]  ;;  %s2408_s22 = sshll.u32 %s4137_s16, 4  ;;  %s2409_s22 = int_to_ptr.vmem [resolvable:$true] %s2408_s22 }
  0x7f   : > { %903 = vmatpush.bf16.msra.mxu1 %v2891_v3  ;;  %v2897_v11 = vld [vmem:[#allocation10 + $0x20] sm:$0xff]  ;;  %v2896_v14 = vld [vmem:[#allocation10 + $0x18] sm:$0xff]  ;;  %v2879_v16 = vld [vmem:[#allocation7 + $0x10] sm:$0xff]  ;;  %s2395_s21 = scalar_lea.sflag [#allocation4], %s3778_s2 }
  0x80   : > { %816 = vmatpush.bf16.msra.mxu0 %v2883_v4  ;;  %v2895_v17 = vld [vmem:[#allocation10 + $0x10] sm:$0xff]  ;;  %v2886_v18 = vld [vmem:[#allocation8 + $0x8] sm:$0xff]  ;;  %v2885_v21 = vld [vmem:[#allocation8] sm:$0xff] }
  0x81   : > { %990 = vmatpush.bf16.msra.mxu2 %v2899_v5  ;;  %v2878_v19 = vld [vmem:[#allocation7 + $0x8] sm:$0xff]  ;;  %v741_v22 = vld [vmem:[%s3784_s20] sm:$0xff]  ;;  %v744_v28 = vld [vmem:[%s3784_s20 + $0x18] sm:$0xff] }
  0x82   : > { %v2894_v20 = vld [vmem:[#allocation10 + $0x8] sm:$0xff]  ;;  %v2877_v24 = vld [vmem:[#allocation7] sm:$0xff]  ;;  %v3068_v32 = vld [vmem:[%s4186_s5] ss:$0 sm:$0xff] }
  0x83   : > { %904 = vmatpush.bf16.msra.mxu1 %v2890_v6  ;;  %v742_v23 = vld [vmem:[%s3784_s20 + $0x8] sm:$0xff]  ;;  %v743_v27 = vld [vmem:[%s3784_s20 + $0x10] sm:$0xff]  ;;  %v3069_v34 = vld [vmem:[%s4184_s3] ss:$0 sm:$0xff] }
  0x84   : > { %817 = vmatpush.bf16.msra.mxu0 %v2882_v7  ;;  %v2893_v25 = vld [vmem:[#allocation10] sm:$0xff]  ;;  %v745_v26 = vpack.c.bf16 %v742_v23, %v741_v22  ;;  %v746_v29 = vpack.c.bf16 %v744_v28, %v743_v27  ;;  %v3070_v45 = vld [vmem:[%s4188_s7] ss:$0 sm:$0xff]  ;;  %s3423_s8 = scalar_lea.hbm %s4252_s26, 64 }
  0x85   : > { %991 = vmatpush.bf16.msra.mxu2 %v2898_v8 }
  0x87   : > { %905 = vmatpush.bf16.msra.mxu1 %v2889_v9 }
  0x88   : > { %818 = vmatpush.bf16.msra.mxu0 %v2881_v10 }
  0x89   : > { %992 = vmatpush.bf16.msra.mxu2 %v2897_v11 }
  0x8b   : > { %906 = vmatpush.bf16.msra.mxu1 %v2888_v12 }
  0x8c   : > { %819 = vmatpush.bf16.msra.mxu0 %v2880_v13 }
  0x8d   : > { %993 = vmatpush.bf16.msra.mxu2 %v2896_v14 }
  0x8f   : > { %907 = vmatpush.bf16.msra.mxu1 %v2887_v15 }
  0x90   : > { %820 = vmatpush.bf16.msra.mxu0 %v2879_v16 }
  0x91   : > { %994 = vmatpush.bf16.msra.mxu2 %v2895_v17 }
  0x93   : > { %908 = vmatpush.bf16.msra.mxu1 %v2886_v18 }
  0x94   : > { %821 = vmatpush.bf16.msra.mxu0 %v2878_v19 }
  0x95   : > { %995 = vmatpush.bf16.msra.mxu2 %v2894_v20 }
  0x97   : > { %909 = vmatpush.bf16.msra.mxu1 %v2885_v21 }
  0x98   : > { %822 = vmatpush.bf16.msra.mxu0 %v2877_v24 }
  0x99   : > { %996 = vmatpush.bf16.msra.mxu2 %v2893_v25 }
  0x9a   : > { %910 = vmatmul.bf16.vlgmr.msra.gmra.mxu1 %v745_v26 }
  0x9b   : > { %823 = vmatmul.bf16.vlgmr.msra.gmra.mxu0 %v745_v26 }
  0x9c   : > { %997 = vmatmul.bf16.vlgmr.msra.gmra.mxu2 %v745_v26 }
  0xaa   : > { %915 = vmatmul.bf16.gmra.mxu1 %v746_v29 }
  0xab   : > { %828 = vmatmul.bf16.gmra.mxu0 %v746_v29 }
  0xac   : > { %1002 = vmatmul.bf16.gmra.mxu2 %v746_v29 }
 0x117   : > { %v911_v30 = vpop.f32.mrf.mxu1 }
 0x118   : > { %v824_v31 = vpop.f32.mrf.mxu0  ;;  %v912_v33 = vadd.f32 %v3068_v32, %v911_v30 }
 0x119   : > { %v825_v40 = vadd.f32 %v3069_v34, %v824_v31 }
 0x11a   : > { %v1018_v38 = vpack.c.bf16 %v912_v33, %v912_v33  ;;  %v3505_v33 = vmov 0.0  }
 0x11b   : > { %v1014_v46 = vpack.c.bf16 %v825_v40, %v825_v40  ;;  %v1009_v40 = vld [vmem:[%s3792_s19 + $0x1] sm:$0x1] }
 0x11c   : > { %v1033_v43 = vunpack.c.l.b16 %v1018_v38  ;;  %vm1011_vm3 = vcmp.eq.f32.partialorder %v1009_v40, 0.0 }
 0x11d   : > { %v1028_v53 = vunpack.c.l.b16 %v1014_v46 }
 0x11f   : > { %v998_v35 = vpop.f32.mrf.mxu2  ;;  %v913_v36 = vpop.f32.mrf.mxu1 }
 0x120   : > { %v826_v37 = vpop.f32.mrf.mxu0  ;;  %v914_v39 = vadd.f32 %v3068_v32, %v913_v36  ;;  %v999_v50 = vadd.f32 %v3070_v45, %v998_v35 }
 0x121   : > { %v827_v42 = vadd.f32 %v3069_v34, %v826_v37 }
 0x122   : > { %v1019_v41 = vpack.c.bf16 %v914_v39, %v914_v39  ;;  %v1022_v55 = vpack.c.bf16 %v999_v50, %v999_v50 }
 0x123   : > { %v1015_v48 = vpack.c.bf16 %v827_v42, %v827_v42 }
 0x124   : > { %v1034_v44 = vunpack.c.l.b16 %v1019_v41  ;;  %v1149_v58 = vunpack.c.l.b16 %v1022_v55 }
 0x125   : > { %v1029_v54 = vunpack.c.l.b16 %v1015_v48 }
 0x126   : > { %v3827_v47 = vpack.c.b16 %v1034_v44, %v1033_v43  ;;  %v1013_v43 = vsel %vm1011_vm3, -1e+10, %v3505_v33 }
 0x127   : > { %v1000_v49 = vpop.f32.mrf.mxu2  ;;  %v3833_v57 = vpack.c.b16 %v1029_v54, %v1028_v53  ;;  %v916_v61 = vpop.f32.mrf.mxu1  ;;  %v3886_v48 = vperm.slane %v1013_v43, 0 }
 0x128   : > { %1214 = vrot.lane.b32.xlu0 %v3827_v47, %s3503_s29  ;;  %v1041_v51 = vsel %vm1036_vm0, %v3827_v47, 0  ;;  %v1001_v52 = vadd.f32 %v3070_v45, %v1000_v49  ;;  %v917_v62 = vadd.f32 %v3068_v32, %v916_v61  ;;  %v829_v0 = vpop.f32.mrf.mxu0 }
 0x129   : > { %1050 = vmatpush.bf16.xpose.msra.mxu3 %v1041_v51  ;;  %v830_v7 = vadd.f32 %v3069_v34, %v829_v0 }
 0x12a   : > { %v1023_v56 = vpack.c.bf16 %v1001_v52, %v1001_v52  ;;  %v1020_v63 = vpack.c.bf16 %v917_v62, %v917_v62 }
 0x12b   : > { %v1016_v11 = vpack.c.bf16 %v830_v7, %v830_v7 }
 0x12c   : > { %v1150_v59 = vunpack.c.l.b16 %v1023_v56  ;;  %v1064_v3 = vunpack.c.l.b16 %v1020_v63 }
 0x12d   : > { %v1059_v13 = vunpack.c.l.b16 %v1016_v11 }
 0x12e   : > { %v3839_v60 = vpack.c.b16 %v1150_v59, %v1149_v58 }
 0x12f   : > { %v918_v1 = vpop.f32.mrf.mxu1  ;;  %v1003_v18 = vpop.f32.mrf.mxu2 }
 0x130   : > { %1212 = vrot.lane.b32.xlu0 %v3833_v57, %s3503_s29  ;;  %2685 = vmatmul.msk.bf16.vlgmr.msra.gmra.mxu3 %vm1036_vm0, %v3833_v57  ;;  %v919_v2 = vadd.f32 %v3068_v32, %v918_v1  ;;  %v831_v8 = vpop.f32.mrf.mxu0  ;;  %v1004_v20 = vadd.f32 %v3070_v45, %v1003_v18  ;;  %v1008_v32 = vld [vmem:[%s3792_s19] sm:$0x1]  ;;  %s4248_s19 = sld [smem:[#allocation37_spill]] }
 0x131   : > { %v832_v9 = vadd.f32 %v3069_v34, %v831_v8  ;;  %vm1010_vm1 = vcmp.eq.f32.partialorder %v1008_v32, 0.0 }
 0x132   : > { %v1021_v4 = vpack.c.bf16 %v919_v2, %v919_v2  ;;  %v1024_v21 = vpack.c.bf16 %v1004_v20, %v1004_v20  ;;  %v1012_v34 = vsel %vm1010_vm1, -1e+10, %v3505_v33  ;;  %v2902_v2 = vld [vmem:[#allocation11 + $0x8] sm:$0xff] }
 0x133   : > { %v1017_v12 = vpack.c.bf16 %v832_v9, %v832_v9  ;;  %v3865_v37 = vperm.slane %v1012_v34, 0 }
 0x134   : > { %v1065_v5 = vunpack.c.l.b16 %v1021_v4  ;;  %v1177_v25 = vunpack.c.l.b16 %v1024_v21 }
 0x135   : > { %v1060_v14 = vunpack.c.l.b16 %v1017_v12 }
 0x136   : > { %v3847_v6 = vpack.c.b16 %v1065_v5, %v1064_v3  ;;  %v2901_v3 = vld [vmem:[#allocation11] sm:$0xff] }
 0x137   : > { %v3854_v15 = vpack.c.b16 %v1060_v14, %v1059_v13  ;;  %v1005_v22 = vpop.f32.mrf.mxu2 }
 0x138   : > { %1313 = vrot.lane.b32.xlu0 %v3839_v60, %s3503_s29  ;;  %v1071_v10 = vsel %vm1036_vm0, %v3847_v6, 0  ;;  %1238 = vrot.lane.b32.xlu1 %v3847_v6, %s3503_s29  ;;  %v1006_v24 = vadd.f32 %v3070_v45, %v1005_v22 }
 0x139   : > { %1080 = vmatpush.bf16.xpose.msrb.mxu3 %v1071_v10 }
 0x13a   : > { %v1025_v26 = vpack.c.bf16 %v1006_v24, %v1006_v24 }
 0x13c   : > { %v1178_v27 = vunpack.c.l.b16 %v1025_v26 }
 0x13e   : > { %v3860_v28 = vpack.c.b16 %v1178_v27, %v1177_v25 }
 0x140   : > { %1449 = vrot.lane.b32.xlu0 %v3827_v47, %s3504_s18  ;;  %2686 = vmatmul.msk.bf16.vlgmr.msrb.gmra.mxu3 %vm1036_vm0, %v3854_v15 }
 0x141   : > { %1163 = vmatpush.bf16.msra.mxu3 %v3839_v60 }
 0x145   : > { %1191 = vmatpush.bf16.msrb.mxu3 %v3860_v28 }
 0x148   : > { %1447 = vrot.lane.b32.xlu0 %v3833_v57, %s3504_s18 }
 0x19a   : > { %v1215_v16 = vpop.permute.xlu0 %1214 }
 0x19b   : > { %v1220_v17 = vsel %vm1036_vm0, %v1215_v16, 0 }
 0x19c   : > { %1229 = vmatpush.bf16.xpose.msrb.mxu0 %v1220_v17 }
 0x1a2   : > { %v1213_v19 = vpop.permute.xlu0 %1212 }
 0x1a3   : > { %2689 = vmatmul.msk.bf16.vlgmr.msrb.gmra.mxu0 %vm1036_vm0, %v1213_v19 }
 0x1aa   : > { %v1314_v23 = vpop.permute.xlu0 %1313  ;;  %v1239_v63 = vpop.permute.xlu1 %1238 }
 0x1ab   : > { %1326 = vmatpush.bf16.msrb.mxu2 %v1314_v23  ;;  %v1244_v0 = vsel %vm1036_vm0, %v1239_v63, 0 }
 0x1ac   : > { %1253 = vmatpush.bf16.xpose.msrb.mxu1 %v1244_v0 }
 0x1b2   : > { %v1450_v29 = vpop.permute.xlu0 %1449 }
 0x1b3   : > { %v1455_v30 = vsel %vm1036_vm0, %v1450_v29, 0  ;;  %v1052_v31 = vpop.f32.mrf.mxu3 }
 0x1b4   : > { %1464 = vmatpush.bf16.xpose.msra.mxu2 %v1455_v30  ;;  %v1087_v59 = vmul.f32 0.17677669, %v1052_v31  ;;  %1434 = vmatpush.bf16.msra.mxu1 %v2902_v2 }
 0x1b6   : > { %v1097_v61 = vadd.f32 %v3865_v37, %v1087_v59 }
 0x1b8   : > { %v1102_v62 = vsel %vm1101_vm2, %v1097_v61, -inf  ;;  %1435 = vmatpush.bf16.msra.mxu1 %v2901_v3 }
 0x1ba   : > { %v1448_v1 = vpop.permute.xlu0 %1447 }
 0x1bb   : > { %v1054_v35 = vpop.f32.mrf.mxu3 }
 0x1bc   : > { %v1088_v36 = vmul.f32 0.17677669, %v1054_v35 }
 0x1be   : > { %v3868_v38 = vadd.f32 %v3865_v37, %v1088_v36 }
 0x1c0   : > { %v1105_v39 = vsel %vm1101_vm2, %v3868_v38, -inf }
 0x1c1   : > { %1106 = vmax.xlane.f32.xlu0 %v1105_v39 }
 0x1c3   : > { %v1082_v41 = vpop.f32.mrf.mxu3 }
 0x1c4   : > { %v1089_v46 = vmul.f32 0.17677669, %v1082_v41 }
 0x1c6   : > { %v3890_v49 = vadd.f32 %v3886_v48, %v1089_v46 }
 0x1c8   : > { %v1108_v54 = vsel %vm1101_vm2, %v3890_v49, -inf }
 0x1cb   : > { %v1084_v51 = vpop.f32.mrf.mxu3 }
 0x1cc   : > { %v1090_v55 = vmul.f32 0.17677669, %v1084_v51 }
 0x1d5   : > { %1338 = vrot.lane.b32.xlu0 %v3860_v28, %s3503_s29 }
 0x1dd   : > { %1471 = vrot.lane.b32.xlu0 %v3854_v15, %s3504_s18 }
 0x1e5   : > { %1651 = vrot.lane.b32.xlu0 %v3827_v47, %s3506_s27 }
 0x1ed   : > { %1649 = vrot.lane.b32.xlu0 %v3833_v57, %s3506_s27  ;;  %v1100_v57 = vadd.f32 %v3886_v48, %v1090_v55 }
 0x1ef   : > { %v1111_v58 = vsel %vm1101_vm2, %v1100_v57, -inf }
 0x1f5   : > { %1675 = vrot.lane.b32.xlu0 %v3847_v6, %s3506_s27 }
 0x1fd   : > { %1673 = vrot.lane.b32.xlu0 %v3854_v15, %s3506_s27 }
 0x220   : > { %v1231_v42 = vpop.f32.mrf.mxu0 }
 0x221   : > { %v1260_v44 = vmul.f32 0.17677669, %v1231_v42 }
 0x223   : > { %v1264_v45 = vadd.f32 %v1260_v44, %v3865_v37 }
 0x225   : > { %v1268_v47 = vsel %vm1101_vm2, %v1264_v45, -inf }
 0x226   : > { %1269 = vmax.xlane.f32.xlu1 %v1268_v47 }
 0x228   : > { %v1233_v50 = vpop.f32.mrf.mxu0 }
 0x229   : > { %v1261_v52 = vmul.f32 0.17677669, %v1233_v50 }
 0x22b   : > { %v1265_v53 = vadd.f32 %v1261_v52, %v3865_v37 }
 0x22d   : > { %v1271_v56 = vsel %vm1101_vm2, %v1265_v53, -inf }
 0x22e   : > { %1272 = vmax.xlane.f32.xlu2 %v1271_v56  ;;  %1109 = vmax.xlane.f32.xlu1 %v1108_v54 }
 0x234   : > { %v1107_v4 = vpop.xlane.xlu0 %1106 }
 0x235   : > { %v1115_v24 = vsub.f32 %v3868_v38, %v1107_v4 }
 0x236   : > { %1112 = vmax.xlane.f32.xlu1 %v1111_v58 }
 0x237   : > { %v1120_v26 = vmul.f32 1.442695, %v1115_v24 }
 0x246   : > { %1236 = vrot.lane.b32.xlu2 %v3854_v15, %s3503_s29 }
 0x247   : > { %v1339_v5 = vpop.permute.xlu0 %1338 }
 0x24f   : > { %v3903_v9 = vpop.permute.xlu0 %1471 }
 0x257   : > { %v1652_v14 = vpop.permute.xlu0 %1651 }
 0x258   : > { %v1657_v17 = vsel %vm1036_vm0, %v1652_v14, 0 }
 0x26f   : > { %1103 = vmax.xlane.f32.xlu2 %v1102_v62 }
 0x299   : > { %v1270_v7 = vpop.xlane.xlu1 %1269 }
 0x29a   : > { %v1280_v8 = vsub.f32 %v1264_v45, %v1270_v7 }
 0x29c   : > { %v1284_v10 = vmul.f32 1.442695, %v1280_v8 }
 0x29e   : > { %3077 = vpow2.f32 %v1284_v10 }
 0x2a1   : > { %v1273_v11 = vpop.xlane.xlu2 %1272  ;;  %v1110_v25 = vpop.xlane.xlu1 %1109 }
 0x2a2   : > { %v1281_v12 = vsub.f32 %v1265_v53, %v1273_v11  ;;  %v1116_v34 = vsub.f32 %v3890_v49, %v1110_v25 }
 0x2a4   : > { %v1286_v13 = vmul.f32 1.442695, %v1281_v12  ;;  %v3905_v15 = vpop.eup %3077  ;;  %v1122_v41 = vmul.f32 1.442695, %v1116_v34 }
 0x2a5   : > { %v1304_v18 = vpack.c.bf16 %v3905_v15, %v3905_v15 }
 0x2a6   : > { %3079 = vpow2.f32 %v1286_v13 }
 0x2a7   : > { %v1310_v21 = vunpack.c.l.b16 %v1304_v18  ;;  %3081 = vpow2.f32 %v1120_v26 }
 0x2a9   : > { %v1237_v16 = vpop.permute.xlu2 %1236  ;;  %v1113_v31 = vpop.xlane.xlu1 %1112 }
 0x2aa   : > { %2690 = vmatmul.msk.bf16.vlgmr.msrb.gmra.mxu1 %vm1036_vm0, %v1237_v16  ;;  %v1117_v33 = vsub.f32 %v1100_v57, %v1113_v31 }
 0x2ab   : > { %1666 = vmatpush.bf16.xpose.msrb.mxu1 %v1657_v17 }
 0x2ac   : > { %v3911_v19 = vpop.eup %3079  ;;  %v1124_v39 = vmul.f32 1.442695, %v1117_v33 }
 0x2ad   : > { %v1305_v20 = vpack.c.bf16 %v3911_v19, %v3911_v19  ;;  %v3082_v32 = vpop.eup %3081 }
 0x2ae   : > { %v1139_v35 = vpack.c.bf16 %v3082_v32, %v3082_v32  ;;  %v1129_v63 = vsel %vm1101_vm2, %v3082_v32, 0.0 }
 0x2af   : > { %v1311_v22 = vunpack.c.l.b16 %v1305_v20 }
 0x2b0   : > { %v1145_v42 = vunpack.c.l.b16 %v1139_v35 }
 0x2b1   : > { %v1312_v23 = vpack.c.b16 %v1311_v22, %v1310_v21 }
 0x2b3   : > { %2691 = vmatmul.msk.bf16.vlgmr.msrb.gmra.mxu2 %vm1101_vm2, %v1312_v23 }
 0x2c3   : > { %2713 = vmatmul.msk.bf16.vlgmr.msra.gmra.mxu2 %vm1036_vm0, %v1448_v1 }
 0x2e2   : > { %v1104_v27 = vpop.xlane.xlu2 %1103 }
 0x2e3   : > { %v1114_v29 = vsub.f32 %v1097_v61, %v1104_v27 }
 0x2e5   : > { %v1118_v30 = vmul.f32 1.442695, %v1114_v29 }
 0x2e7   : > { %3083 = vpow2.f32 %v1118_v30 }
 0x2e8   : > { %3085 = vpow2.f32 %v1124_v39 }
 0x2e9   : > { %3087 = vpow2.f32 %v1122_v41 }
 0x2ed   : > { %v3084_v36 = vpop.eup %3083 }
 0x2ee   : > { %v1138_v40 = vpack.c.bf16 %v3084_v36, %v3084_v36  ;;  %v3086_v44 = vpop.eup %3085  ;;  %v1126_v61 = vsel %vm1101_vm2, %v3084_v36, 0.0 }
 0x2ef   : > { %v3088_v45 = vpop.eup %3087  ;;  %v1141_v46 = vpack.c.bf16 %v3086_v44, %v3086_v44  ;;  %v1135_v4 = vsel %vm1101_vm2, %v3086_v44, 0.0 }
 0x2f0   : > { %v1144_v43 = vunpack.c.l.b16 %v1138_v40  ;;  %v1140_v47 = vpack.c.bf16 %v3088_v45, %v3088_v45  ;;  %v1132_v1 = vsel %vm1101_vm2, %v3088_v45, 0.0 }
 0x2f1   : > { %v1173_v50 = vunpack.c.l.b16 %v1141_v46  ;;  %v1650_v46 = vpop.permute.xlu0 %1649 }
 0x2f2   : > { %v1146_v38 = vpack.c.b16 %v1145_v42, %v1144_v43  ;;  %v1172_v51 = vunpack.c.l.b16 %v1140_v47 }
 0x2f4   : > { %2687 = vmatmul.msk.bf16.vlgmr.msra.gmra.mxu3 %vm1101_vm2, %v1146_v38  ;;  %v1174_v49 = vpack.c.b16 %v1173_v50, %v1172_v51 }
 0x2f5   : > { %1351 = vmatpush.bf16.msra.mxu3 %v1339_v5 }
 0x304   : > { %2688 = vmatmul.msk.bf16.vlgmr.msrb.gmra.mxu3 %vm1101_vm2, %v1174_v49 }
 0x327   : > { %v1255_v52 = vpop.f32.mrf.mxu1 }
 0x328   : > { %v1262_v53 = vmul.f32 0.17677669, %v1255_v52  ;;  %v1676_v52 = vpop.permute.xlu0 %1675 }
 0x32a   : > { %v1266_v54 = vadd.f32 %v1262_v53, %v3886_v48 }
 0x32c   : > { %v1274_v55 = vsel %vm1101_vm2, %v1266_v54, -inf }
 0x32d   : > { %1275 = vmax.xlane.f32.xlu1 %v1274_v55 }
 0x32f   : > { %v1257_v56 = vpop.f32.mrf.mxu1 }
 0x330   : > { %v1263_v57 = vmul.f32 0.17677669, %v1257_v56 }
 0x332   : > { %v1267_v58 = vadd.f32 %v1263_v57, %v3886_v48 }
 0x334   : > { %v1277_v59 = vsel %vm1101_vm2, %v1267_v58, -inf }
 0x335   : > { %1278 = vmax.xlane.f32.xlu2 %v1277_v59  ;;  %1127 = vadd.xlane.f32.xlu1 %v1126_v61 }
 0x336   : > { %v3926_v62 = vpop.f32.mrf.mxu2 }
 0x33d   : > { %1130 = vadd.xlane.f32.xlu2 %v1129_v63 }
 0x33e   : > { %v3929_v0 = vpop.f32.mrf.mxu2 }
 0x345   : > { %1133 = vadd.xlane.f32.xlu2 %v1132_v1 }
 0x346   : > { %v1466_v2 = vpop.f32.mrf.mxu2 }
 0x347   : > { %v1495_v3 = vmul.f32 0.17677669, %v1466_v2 }
 0x349   : > { %v3936_v5 = vadd.f32 %v1495_v3, %v3865_v37 }
 0x34b   : > { %v1503_v7 = vsel %vm1101_vm2, %v3936_v5, -inf }
 0x34d   : > { %1136 = vadd.xlane.f32.xlu2 %v1135_v4 }
 0x34e   : > { %1473 = vrot.lane.b32.xlu1 %v3847_v6, %s3504_s18  ;;  %v1468_v8 = vpop.f32.mrf.mxu2 }
 0x34f   : > { %v1496_v10 = vmul.f32 0.17677669, %v1468_v8 }
 0x351   : > { %v1500_v11 = vadd.f32 %v1496_v10, %v3865_v37 }
 0x353   : > { %v1506_v12 = vsel %vm1101_vm2, %v1500_v11, -inf }
 0x355   : > { %1504 = vmax.xlane.f32.xlu2 %v1503_v7 }
 0x36d   : > { %1548 = vrot.lane.b32.xlu2 %v3839_v60, %s3504_s18 }
 0x377   : > { %v1165_v17 = vpop.f32.mrf.mxu3 }
 0x378   : > { %1507 = vmax.xlane.f32.xlu1 %v1506_v12 }
 0x37f   : > { %v1167_v26 = vpop.f32.mrf.mxu3 }
 0x387   : > { %v1193_v40 = vpop.f32.mrf.mxu3 }
 0x38f   : > { %v1195_v45 = vpop.f32.mrf.mxu3 }
 0x391   : > { %1573 = vrot.lane.b32.xlu1 %v3860_v28, %s3504_s18 }
 0x3a0   : > { %v1276_v6 = vpop.xlane.xlu1 %1275 }
 0x3a1   : > { %v1282_v13 = vsub.f32 %v1266_v54, %v1276_v6  ;;  %v1681_v54 = vsel %vm1036_vm0, %v1676_v52, 0 }
 0x3a3   : > { %v1288_v14 = vmul.f32 1.442695, %v1282_v13 }
 0x3a5   : > { %3089 = vpow2.f32 %v1288_v14 }
 0x3a8   : > { %v1279_v16 = vpop.xlane.xlu2 %1278  ;;  %v1128_v21 = vpop.xlane.xlu1 %1127 }
 0x3a9   : > { %v1283_v18 = vsub.f32 %v1267_v58, %v1279_v16 }
 0x3ab   : > { %v1290_v20 = vmul.f32 1.442695, %v1283_v18  ;;  %v3946_v22 = vpop.eup %3089 }
 0x3ac   : > { %v1306_v24 = vpack.c.bf16 %v3946_v22, %v3946_v22 }
 0x3ad   : > { %3091 = vpow2.f32 %v1290_v20 }
 0x3ae   : > { %3093 = vrcp.f32 %v1128_v21  ;;  %v1335_v30 = vunpack.c.l.b16 %v1306_v24 }
 0x3b0   : > { %v1131_v23 = vpop.xlane.xlu2 %1130 }
 0x3b1   : > { %3095 = vrcp.f32 %v1131_v23 }
 0x3b3   : > { %v3950_v25 = vpop.eup %3091 }
 0x3b4   : > { %v1307_v27 = vpack.c.bf16 %v3950_v25, %v3950_v25  ;;  %v3094_v29 = vpop.eup %3093 }
 0x3b5   : > { %v1202_v34 = vmul.f32 %v3094_v29, %v1165_v17 }
 0x3b6   : > { %v1336_v31 = vunpack.c.l.b16 %v1307_v27 }
 0x3b7   : > { %v3096_v32 = vpop.eup %3095 }
 0x3b8   : > { %v1337_v33 = vpack.c.b16 %v1336_v31, %v1335_v30  ;;  %v1203_v35 = vmul.f32 %v3096_v32, %v1167_v26  ;;  %v1134_v36 = vpop.xlane.xlu2 %1133 }
 0x3b9   : > { %3097 = vrcp.f32 %v1134_v36  ;;  %v1298_v36 = vsel %vm1101_vm2, %v3946_v22, 0.0  ;;  %v1292_v22 = vsel %vm1101_vm2, %v3905_v15, 0.0 }
 0x3ba   : > { %v1206_v39 = vpack.c.bf16 %v1203_v35, %v1202_v34  ;;  %2692 = vmatmul.msk.bf16.vlgmr.msra.gmra.mxu3 %vm1101_vm2, %v1337_v33  ;;  %v1295_v34 = vsel %vm1101_vm2, %v3911_v19, 0.0 }
 0x3bc   : > { %2711 = vmatmul.msk.bf16.vlgmr.msra.gmra.mxu1 %vm1036_vm0, %v1206_v39 }
 0x3bf   : > { %v3098_v38 = vpop.eup %3097 }
 0x3c0   : > { %v1137_v41 = vpop.xlane.xlu2 %1136  ;;  %v1474_v42 = vpop.permute.xlu1 %1473  ;;  %v1204_v50 = vmul.f32 %v3098_v38, %v1193_v40 }
 0x3c1   : > { %3099 = vrcp.f32 %v1137_v41  ;;  %v1479_v43 = vsel %vm1036_vm0, %v1474_v42, 0 }
 0x3c2   : > { %1488 = vmatpush.bf16.xpose.msrb.mxu3 %v1479_v43 }
 0x3c7   : > { %v3100_v44 = vpop.eup %3099 }
 0x3c8   : > { %v1505_v47 = vpop.xlane.xlu2 %1504  ;;  %v1205_v51 = vmul.f32 %v3100_v44, %v1195_v45 }
 0x3c9   : > { %v1515_v55 = vsub.f32 %v3936_v5, %v1505_v47  ;;  %v1674_v5 = vpop.permute.xlu0 %1673 }
 0x3ca   : > { %2714 = vmatmul.msk.bf16.vlgmr.msrb.gmra.mxu3 %vm1036_vm0, %v3903_v9  ;;  %v1207_v49 = vpack.c.bf16 %v1205_v51, %v1204_v50 }
 0x3cb   : > { %v1519_v56 = vmul.f32 1.442695, %v1515_v55 }
 0x3cc   : > { %2712 = vmatmul.msk.bf16.gmra.mxu1 %vm1036_vm0, %v1207_v49 }
 0x3cd   : > { %3101 = vpow2.f32 %v1519_v56 }
 0x3d0   : > { %v1549_v53 = vpop.permute.xlu2 %1548 }
 0x3d1   : > { %1561 = vmatpush.bf16.msrb.mxu2 %v1549_v53 }
 0x3d3   : > { %v3102_v9 = vpop.eup %3101 }
 0x3d4   : > { %v1539_v61 = vpack.c.bf16 %v3102_v9, %v3102_v9  ;;  %v1527_v45 = vsel %vm1101_vm2, %v3102_v9, 0.0 }
 0x3d5   : > { %1690 = vmatpush.bf16.xpose.msra.mxu2 %v1681_v54 }
 0x3d6   : > { %v1545_v2 = vunpack.c.l.b16 %v1539_v61 }
 0x3dc   : > { %2727 = vmatmul.msk.bf16.vlgmr.msrb.gmra.mxu1 %vm1036_vm0, %v1650_v46 }
 0x3eb   : > { %v1508_v57 = vpop.xlane.xlu1 %1507 }
 0x3ec   : > { %v1516_v58 = vsub.f32 %v1500_v11, %v1508_v57 }
 0x3ee   : > { %v1521_v59 = vmul.f32 1.442695, %v1516_v58 }
 0x3f0   : > { %3103 = vpow2.f32 %v1521_v59 }
 0x3f6   : > { %v3963_v63 = vpop.eup %3103 }
 0x3f7   : > { %v1540_v1 = vpack.c.bf16 %v3963_v63, %v3963_v63 }
 0x3f9   : > { %v1546_v3 = vunpack.c.l.b16 %v1540_v1 }
 0x3fb   : > { %v1547_v4 = vpack.c.b16 %v1546_v3, %v1545_v2  ;;  %v1301_v3 = vsel %vm1101_vm2, %v3950_v25, 0.0  ;;  %v1530_v25 = vsel %vm1101_vm2, %v3963_v63, 0.0 }
 0x3fd   : > { %2715 = vmatmul.msk.bf16.vlgmr.msrb.gmra.mxu2 %vm1101_vm2, %v1547_v4 }
 0x403   : > { %v1574_v7 = vpop.permute.xlu1 %1573 }
 0x404   : > { %1586 = vmatpush.bf16.msra.mxu3 %v1574_v7 }
 0x40d   : > { %2728 = vmatmul.msk.bf16.vlgmr.msra.gmra.mxu2 %vm1036_vm0, %v1674_v5 }
 0x439   : > { %v3969_v8 = vpop.f32.mrf.mxu1 }
 0x43d   : > { %v3971_v10 = vpop.f32.mrf.mxu3 }
 0x441   : > { %v3973_v11 = vpop.f32.mrf.mxu1 }
 0x445   : > { %v3975_v12 = vpop.f32.mrf.mxu3 }
 0x449   : > { %v3977_v6 = vpop.f32.mrf.mxu1 }
 0x44d   : > { %v1490_v13 = vpop.f32.mrf.mxu3 }
 0x44e   : > { %v1497_v14 = vmul.f32 0.17677669, %v1490_v13 }
 0x450   : > { %v1501_v16 = vadd.f32 %v1497_v14, %v3886_v48 }
 0x451   : > { %v3980_v17 = vpop.f32.mrf.mxu1 }
 0x452   : > { %v1509_v18 = vsel %vm1101_vm2, %v1501_v16, -inf }
 0x453   : > { %1510 = vmax.xlane.f32.xlu2 %v1509_v18 }
 0x455   : > { %v1492_v20 = vpop.f32.mrf.mxu3 }
 0x456   : > { %v1498_v21 = vmul.f32 0.17677669, %v1492_v20 }
 0x458   : > { %v1502_v23 = vadd.f32 %v1498_v21, %v3886_v48 }
 0x459   : > { %v1668_v24 = vpop.f32.mrf.mxu1 }
 0x45a   : > { %v1697_v26 = vmul.f32 0.17677669, %v1668_v24  ;;  %v1512_v27 = vsel %vm1101_vm2, %v1502_v23, -inf  ;;  %v2903_v24 = vld [vmem:[#allocation11 + $0x10] sm:$0xff] }
 0x45b   : > { %1513 = vmax.xlane.f32.xlu0 %v1512_v27 }
 0x45c   : > { %v1701_v29 = vadd.f32 %v1697_v26, %v3865_v37 }
 0x45e   : > { %v1705_v30 = vsel %vm1101_vm2, %v1701_v29, -inf }
 0x45f   : > { %1706 = vmax.xlane.f32.xlu1 %v1705_v30 }
 0x461   : > { %v1670_v31 = vpop.f32.mrf.mxu1 }
 0x462   : > { %v1698_v32 = vmul.f32 0.17677669, %v1670_v31 }
 0x464   : > { %v1702_v33 = vadd.f32 %v1698_v32, %v3865_v37 }
 0x466   : > { %v1708_v35 = vsel %vm1101_vm2, %v1702_v33, -inf }
 0x467   : > { %1296 = vadd.xlane.f32.xlu1 %v1295_v34  ;;  %1709 = vmax.xlane.f32.xlu2 %v1708_v35 }
 0x46f   : > { %1299 = vadd.xlane.f32.xlu1 %v1298_v36  ;;  %1750 = vrot.lane.b32.xlu0 %v3839_v60, %s3506_s27 }
 0x480   : > { %v3995_v39 = vpop.f32.mrf.mxu2 }
 0x488   : > { %v3997_v40 = vpop.f32.mrf.mxu2 }
 0x490   : > { %v1692_v41 = vpop.f32.mrf.mxu2 }
 0x491   : > { %v1699_v37 = vmul.f32 0.17677669, %v1692_v41 }
 0x493   : > { %v4000_v42 = vadd.f32 %v1699_v37, %v3886_v48 }
 0x495   : > { %v1711_v19 = vsel %vm1101_vm2, %v4000_v42, -inf }
 0x496   : > { %1712 = vmax.xlane.f32.xlu2 %v1711_v19 }
 0x498   : > { %v1694_v43 = vpop.f32.mrf.mxu2 }
 0x499   : > { %v1700_v38 = vmul.f32 0.17677669, %v1694_v43  ;;  %1293 = vadd.xlane.f32.xlu0 %v1292_v22 }
 0x49b   : > { %v4007_v60 = vadd.f32 %v1700_v38, %v3886_v48 }
 0x49d   : > { %v1714_v44 = vsel %vm1101_vm2, %v4007_v60, -inf }
 0x49e   : > { %1715 = vmax.xlane.f32.xlu2 %v1714_v44 }
 0x4a1   : > { %1528 = vadd.xlane.f32.xlu0 %v1527_v45 }
 0x4b6   : > { %1775 = vrot.lane.b32.xlu2 %v3860_v28, %s3506_s27  ;;  %s4251_s27 = sld [smem:[#allocation41_spill]] }
 0x4c6   : > { %v1511_v46 = vpop.xlane.xlu2 %1510 }
 0x4c7   : > { %v1517_v47 = vsub.f32 %v1501_v16, %v1511_v46 }
 0x4c9   : > { %v1523_v50 = vmul.f32 1.442695, %v1517_v47 }
 0x4cb   : > { %3105 = vpow2.f32 %v1523_v50  ;;  %v2906_v50 = vld [vmem:[#allocation11 + $0x28] sm:$0xff] }
 0x4ce   : > { %v1514_v51 = vpop.xlane.xlu0 %1513 }
 0x4cf   : > { %v1518_v15 = vsub.f32 %v1502_v23, %v1514_v51  ;;  %v2904_v23 = vld [vmem:[#allocation11 + $0x18] sm:$0xff] }
 0x4d0   : > { %1397 = vmatpush.bf16.msra.mxu0 %v2904_v23 }
 0x4d1   : > { %v1525_v49 = vmul.f32 1.442695, %v1518_v15  ;;  %v3106_v53 = vpop.eup %3105  ;;  %v2905_v15 = vld [vmem:[#allocation11 + $0x20] sm:$0xff] }
 0x4d2   : > { %v1707_v52 = vpop.xlane.xlu1 %1706  ;;  %v1541_v55 = vpack.c.bf16 %v3106_v53, %v3106_v53 }
 0x4d3   : > { %3107 = vpow2.f32 %v1525_v49  ;;  %v1717_v48 = vsub.f32 %v1701_v29, %v1707_v52 }
 0x4d4   : > { %v1570_v59 = vunpack.c.l.b16 %v1541_v55  ;;  %1398 = vmatpush.bf16.msra.mxu0 %v2903_v24 }
 0x4d5   : > { %v1721_v54 = vmul.f32 1.442695, %v1717_v48  ;;  %v2908_v48 = vld [vmem:[#allocation11 + $0x38] sm:$0xff] }
 0x4d6   : > { %1834 = vmatpush.bf16.msrb.mxu2 %v2908_v48 }
 0x4d7   : > { %3109 = vpow2.f32 %v1721_v54 }
 0x4d8   : > { %1632 = vmatpush.bf16.msrb.mxu0 %v2906_v50 }
 0x4d9   : > { %v4014_v56 = vpop.eup %3107 }
 0x4da   : > { %v1542_v57 = vpack.c.bf16 %v4014_v56, %v4014_v56  ;;  %v1710_v28 = vpop.xlane.xlu2 %1709  ;;  %v1297_v26 = vpop.xlane.xlu1 %1296  ;;  %v1536_v47 = vsel %vm1101_vm2, %v4014_v56, 0.0 }
 0x4db   : > { %v1718_v58 = vsub.f32 %v1702_v33, %v1710_v28 }
 0x4dc   : > { %v1571_v9 = vunpack.c.l.b16 %v1542_v57  ;;  %1633 = vmatpush.bf16.msrb.mxu0 %v2905_v15 }
 0x4dd   : > { %v3110_v61 = vpop.eup %3109  ;;  %v1723_v1 = vmul.f32 1.442695, %v1718_v58  ;;  %v2907_v58 = vld [vmem:[#allocation11 + $0x30] sm:$0xff] }
 0x4de   : > { %v1572_v2 = vpack.c.b16 %v1571_v9, %v1570_v59  ;;  %v1729_v4 = vsel %vm1101_vm2, %v3110_v61, 0.0  ;;  %v1741_v16 = vpack.c.bf16 %v3110_v61, %v3110_v61  ;;  %1835 = vmatpush.bf16.msrb.mxu2 %v2907_v58  ;;  %v3161_v58 = vld [vmem:[%s3784_s20 + $0x10] sm:$0xff] }
 0x4df   : > { %3111 = vpow2.f32 %v1723_v1  ;;  %1302 = vadd.xlane.f32.xlu2 %v1301_v3  ;;  %1730 = vadd.xlane.f32.xlu1 %v1729_v4 }
 0x4e0   : > { %2716 = vmatmul.msk.bf16.vlgmr.msra.gmra.mxu3 %vm1101_vm2, %v1572_v2  ;;  %v1747_v20 = vunpack.c.l.b16 %v1741_v16  ;;  %3113 = vrcp.f32 %v1297_v26 }
 0x4e1   : > { %v1751_v7 = vpop.permute.xlu0 %1750 }
 0x4e2   : > { %1763 = vmatpush.bf16.msrb.mxu3 %v1751_v7  ;;  %v1300_v51 = vpop.xlane.xlu1 %1299 }
 0x4e5   : > { %v3112_v5 = vpop.eup %3111 }
 0x4e6   : > { %v1742_v13 = vpack.c.bf16 %v3112_v5, %v3112_v5  ;;  %v1732_v14 = vsel %vm1101_vm2, %v3112_v5, 0.0  ;;  %v3114_v32 = vpop.eup %3113 }
 0x4e7   : > { %1733 = vadd.xlane.f32.xlu1 %v1732_v14  ;;  %v1363_v36 = vmul.f32 %v3114_v32, %v3929_v0 }
 0x4e8   : > { %v1748_v18 = vunpack.c.l.b16 %v1742_v13 }
 0x4ea   : > { %v1749_v21 = vpack.c.b16 %v1748_v18, %v1747_v20 }
 0x4ef   : > { %1531 = vadd.xlane.f32.xlu1 %v1530_v25 }
 0x4f0   : > { %2729 = vmatmul.msk.bf16.vlgmr.msrb.gmra.mxu3 %vm1101_vm2, %v1749_v21 }
 0x509   : > { %v1713_v27 = vpop.xlane.xlu2 %1712 }
 0x50a   : > { %v1719_v29 = vsub.f32 %v4000_v42, %v1713_v27 }
 0x50c   : > { %v1725_v30 = vmul.f32 1.442695, %v1719_v29  ;;  %v1294_v31 = vpop.xlane.xlu0 %1293 }
 0x50d   : > { %3115 = vrcp.f32 %v1294_v31 }
 0x50e   : > { %3117 = vpow2.f32 %v1725_v30 }
 0x511   : > { %v1716_v33 = vpop.xlane.xlu2 %1715 }
 0x512   : > { %v1720_v63 = vsub.f32 %v4007_v60, %v1716_v33  ;;  %v1533_v60 = vsel %vm1101_vm2, %v3106_v53, 0.0 }
 0x513   : > { %v3116_v34 = vpop.eup %3115 }
 0x514   : > { %v3118_v35 = vpop.eup %3117  ;;  %v1362_v41 = vmul.f32 %v3116_v34, %v3926_v62  ;;  %v1727_v37 = vmul.f32 1.442695, %v1720_v63  ;;  %v1529_v59 = vpop.xlane.xlu0 %1528 }
 0x515   : > { %v1735_v19 = vsel %vm1101_vm2, %v3118_v35, 0.0  ;;  %v1743_v22 = vpack.c.bf16 %v3118_v35, %v3118_v35 }
 0x516   : > { %v1366_v43 = vpack.c.bf16 %v1363_v36, %v1362_v41  ;;  %3119 = vpow2.f32 %v1727_v37  ;;  %1736 = vadd.xlane.f32.xlu0 %v1735_v19 }
 0x517   : > { %v1772_v62 = vunpack.c.l.b16 %v1743_v22  ;;  %3121 = vrcp.f32 %v1300_v51 }
 0x518   : > { %2701 = vmatmul.msk.bf16.vlgmr.msra.gmra.mxu0 %vm1036_vm0, %v1366_v43 }
 0x519   : > { %v1776_v42 = vpop.permute.xlu2 %1775 }
 0x51a   : > { %1788 = vmatpush.bf16.msra.mxu1 %v1776_v42 }
 0x51c   : > { %v3120_v38 = vpop.eup %3119 }
 0x51d   : > { %v1744_v44 = vpack.c.bf16 %v3120_v38, %v3120_v38  ;;  %v1738_v45 = vsel %vm1101_vm2, %v3120_v38, 0.0  ;;  %v3122_v53 = vpop.eup %3121  ;;  %v3071_v38 = vld [vmem:[%s4190_s9] ss:$0 sm:$0xff] }
 0x51e   : > { %1534 = vadd.xlane.f32.xlu0 %v1533_v60  ;;  %1739 = vadd.xlane.f32.xlu1 %v1738_v45  ;;  %v1364_v57 = vmul.f32 %v3122_v53, %v3971_v10 }
 0x51f   : > { %v1773_v0 = vunpack.c.l.b16 %v1744_v44 }
 0x521   : > { %v1774_v46 = vpack.c.b16 %v1773_v0, %v1772_v62 }
 0x523   : > { %2730 = vmatmul.msk.bf16.vlgmr.msra.gmra.mxu1 %vm1101_vm2, %v1774_v46  ;;  %v3159_v46 = vld [vmem:[%s3784_s20] sm:$0xff] }
 0x526   : > { %1537 = vadd.xlane.f32.xlu1 %v1536_v47 }
 0x552   : > { %v1303_v49 = vpop.xlane.xlu2 %1302  ;;  %v1731_v52 = vpop.xlane.xlu1 %1730 }
 0x553   : > { %3123 = vrcp.f32 %v1303_v49 }
 0x554   : > { %3125 = vrcp.f32 %v1529_v59 }
 0x559   : > { %v3124_v54 = vpop.eup %3123 }
 0x55a   : > { %v1734_v55 = vpop.xlane.xlu1 %1733  ;;  %v1365_v28 = vmul.f32 %v3124_v54, %v3975_v12  ;;  %v3126_v1 = vpop.eup %3125 }
 0x55b   : > { %v1597_v3 = vmul.f32 %v3126_v1, %v3995_v39 }
 0x55c   : > { %v1367_v56 = vpack.c.bf16 %v1365_v28, %v1364_v57 }
 0x55e   : > { %2702 = vmatmul.msk.bf16.gmra.mxu0 %vm1036_vm0, %v1367_v56 }
 0x562   : > { %v1532_v9 = vpop.xlane.xlu1 %1531 }
 0x563   : > { %3127 = vrcp.f32 %v1532_v9  ;;  %v1588_v61 = vpop.f32.mrf.mxu3 }
 0x564   : > { %3129 = vrcp.f32 %v1731_v52 }
 0x565   : > { %3131 = vrcp.f32 %v1734_v55 }
 0x569   : > { %v3128_v2 = vpop.eup %3127 }
 0x56a   : > { %v1598_v4 = vmul.f32 %v3128_v2, %v3997_v40  ;;  %v3130_v5 = vpop.eup %3129 }
 0x56b   : > { %v1590_v7 = vpop.f32.mrf.mxu3  ;;  %v3132_v13 = vpop.eup %3131 }
 0x56c   : > { %v1601_v10 = vpack.c.bf16 %v1598_v4, %v1597_v3  ;;  %v3162_v3 = vld [vmem:[%s3784_s20 + $0x18] sm:$0xff] }
 0x56e   : > { %2725 = vmatmul.msk.bf16.vlgmr.msrb.gmra.mxu0 %vm1036_vm0, %v1601_v10 }
 0x573   : > { %v1765_v12 = vpop.f32.mrf.mxu3 }
 0x574   : > { %v1799_v16 = vmul.f32 %v3130_v5, %v1765_v12 }
 0x57b   : > { %v1767_v14 = vpop.f32.mrf.mxu3 }
 0x57c   : > { %v1800_v18 = vmul.f32 %v3132_v13, %v1767_v14 }
 0x57e   : > { %v1803_v20 = vpack.c.bf16 %v1800_v18, %v1799_v16 }
 0x580   : > { %2739 = vmatmul.msk.bf16.vlgmr.msrb.gmra.mxu2 %vm1036_vm0, %v1803_v20 }
 0x589   : > { %v1737_v21 = vpop.xlane.xlu0 %1736 }
 0x591   : > { %v1740_v25 = vpop.xlane.xlu1 %1739  ;;  %v1535_v39 = vpop.xlane.xlu0 %1534 }
 0x592   : > { %3133 = vrcp.f32 %v1535_v39 }
 0x595   : > { %v1400_v36 = vpop.f32.mrf.mxu0 }
 0x596   : > { %v1438_v42 = vadd.f32 %v3969_v8, %v1400_v36  ;;  %v3160_v8 = vld [vmem:[%s3784_s20 + $0x8] sm:$0xff]  ;;  %v2801_v36 = vld [vmem:[#allocation13 + $0x78] sm:$0xf0]  ;;  %s2407_s20 = scalar_lea.hbm %s4252_s26, %s2942_s24 }
 0x597   : > { %s2410_s25 = sshll.u32 %s2407_s20, 4  ;;  %s2411_s25 = int_to_ptr.hbm [resolvable:$true] %s2410_s25 }
 0x598   : > { %v3134_v23 = vpop.eup %3133 }
 0x599   : > { %v1538_v40 = vpop.xlane.xlu1 %1537  ;;  %v1599_v27 = vmul.f32 %v3134_v23, %v1588_v61 }
 0x59a   : > { %3135 = vrcp.f32 %v1538_v40 }
 0x59b   : > { %3137 = vrcp.f32 %v1737_v21 }
 0x59c   : > { %3139 = vrcp.f32 %v1740_v25 }
 0x59d   : > { %v1402_v41 = vpop.f32.mrf.mxu0 }
 0x59e   : > { %v1440_v0 = vadd.f32 %v3973_v11, %v1402_v41 }
 0x5a0   : > { %v3136_v24 = vpop.eup %3135  ;;  %v1790_v26 = vpop.f32.mrf.mxu1 }
 0x5a1   : > { %v1600_v29 = vmul.f32 %v3136_v24, %v1590_v7  ;;  %v3138_v31 = vpop.eup %3137  ;;  %v3507_v7 = vmov 128.0  }
 0x5a2   : > { %v3140_v32 = vpop.eup %3139  ;;  %v1801_v63 = vmul.f32 %v3138_v31, %v1790_v26  ;;  %3141 = vrcp.f32 %v3507_v7  ;;  %v2743_v7 = vld [vmem:[#allocation13] sm:$0xf] }
 0x5a3   : > { %v1602_v30 = vpack.c.bf16 %v1600_v29, %v1599_v27 }
 0x5a5   : > { %2726 = vmatmul.msk.bf16.gmra.mxu0 %vm1036_vm0, %v1602_v30 }
 0x5a8   : > { %v1792_v33 = vpop.f32.mrf.mxu1 }
 0x5a9   : > { %v1802_v34 = vmul.f32 %v3140_v32, %v1792_v33  ;;  %v2799_v33 = vld [vmem:[#allocation13 + $0x70] sm:$0xf] }
 0x5ab   : > { %v1804_v35 = vpack.c.bf16 %v1802_v34, %v1801_v63  ;;  %v2924_v63 = vld [vmem:[#allocation13 + $0x74] sm:$0xf0]  ;;  %v2923_v34 = vld [vmem:[#allocation13 + $0x74] sm:$0xf] }
 0x5ac   : > { %v2804_v41 = vor.u32 %v2923_v34, %v2801_v36 }
 0x5ad   : > { %2740 = vmatmul.msk.bf16.gmra.mxu2 %vm1036_vm0, %v1804_v35  ;;  %v2800_v35 = vor.u32 %v2924_v63, %v2799_v33 }
 0x5ae   : > { %2089 = vmatpush.bf16.msra.mxu3 %v2804_v41 }
 0x5af   : > { %2070 = vmatpush.bf16.msra.mxu0 %v2800_v35 }
 0x5db   : > { %v1405_v37 = vpop.f32.mrf.mxu0 }
 0x5dc   : > { %v1443_v53 = vadd.f32 %v3977_v6, %v1405_v37  ;;  %v3142_v6 = vpop.eup %3141  ;;  %v2791_v37 = vld [vmem:[#allocation13 + $0x60] sm:$0xf] }
 0x5dd   : > { %v1872_v10 = vmul.f32 128.0, %v3142_v6  ;;  %vm1876_vm4 = vweird.f32 %v3142_v6 }
 0x5df   : > { %v1873_v12 = vsub.f32 1.0, %v1872_v10 }
 0x5e1   : > { %v1874_v5 = vmul.f32 %v3142_v6, %v1873_v12 }
 0x5e3   : > { %v1407_v19 = vpop.f32.mrf.mxu0  ;;  %v1875_v13 = vadd.f32 %v3142_v6, %v1874_v5  ;;  %v2909_v5 = vld [vmem:[#allocation13 + $0x4] sm:$0xf] }
 0x5e4   : > { %v1445_v56 = vadd.f32 %v3980_v17, %v1407_v19  ;;  %v2922_v19 = vld [vmem:[#allocation13 + $0x64] sm:$0xf0] }
 0x5e5   : > { %v4057_v14 = vsel %vm1876_vm4, %v3142_v6, %v1875_v13  ;;  %v2910_v6 = vld [vmem:[#allocation13 + $0x4] sm:$0xf0]  ;;  %v2745_v13 = vld [vmem:[#allocation13 + $0x8] sm:$0xf0] }
 0x5eb   : > { %v1635_v43 = vpop.f32.mrf.mxu0 }
 0x5ec   : > { %v1645_v22 = vadd.f32 %v1635_v43, %v1438_v42  ;;  %v2921_v43 = vld [vmem:[#allocation13 + $0x64] sm:$0xf]  ;;  %v2792_v42 = vor.u32 %v2922_v19, %v2791_v37 }
 0x5ee   : > { %2071 = vmatpush.bf16.msra.mxu0 %v2792_v42 }
 0x5f3   : > { %v1637_v62 = vpop.f32.mrf.mxu0 }
 0x5f4   : > { %v1646_v50 = vadd.f32 %v1637_v62, %v1440_v0  ;;  %v2785_v0 = vld [vmem:[#allocation13 + $0x58] sm:$0xf0] }
 0x603   : > { %v1837_v44 = vpop.f32.mrf.mxu2 }
 0x604   : > { %v1847_v60 = vadd.f32 %v1837_v44, %v1645_v22  ;;  %v2793_v22 = vld [vmem:[#allocation13 + $0x68] sm:$0xf0]  ;;  %v2783_v44 = vld [vmem:[#allocation13 + $0x50] sm:$0xf] }
 0x606   : > { %v1855_v45 = vadd.f32 %v3071_v38, %v1847_v60  ;;  %v2920_v60 = vld [vmem:[#allocation13 + $0x54] sm:$0xf0] }
 0x607   : > { %v2784_v62 = vor.u32 %v2920_v60, %v2783_v44  ;;  %v3073_v60 = vld [vmem:[%s4196_s15] ss:$0 sm:$0xff] }
 0x608   : > { %v1859_v47 = vadd.f32 %v3159_v46, %v1855_v45  ;;  %v2919_v45 = vld [vmem:[#allocation13 + $0x54] sm:$0xf] }
 0x609   : > { %v2788_v46 = vor.u32 %v2919_v45, %v2785_v0  ;;  %2072 = vmatpush.bf16.msra.mxu0 %v2784_v62 }
 0x60a   : > { %1863 = vadd.xlane.f32.xlu2 %v1859_v47 }
 0x60b   : > { %v1839_v51 = vpop.f32.mrf.mxu2 }
 0x60c   : > { %v1848_v15 = vadd.f32 %v1839_v51, %v1646_v50  ;;  %v2918_v50 = vld [vmem:[#allocation13 + $0x44] sm:$0xf0]  ;;  %v2917_v51 = vld [vmem:[#allocation13 + $0x44] sm:$0xf] }
 0x60e   : > { %v1856_v49 = vadd.f32 %v3071_v38, %v1848_v15 }
 0x610   : > { %v1860_v52 = vadd.f32 %v3160_v8, %v1856_v49  ;;  %v2777_v49 = vld [vmem:[#allocation13 + $0x48] sm:$0xf0] }
 0x611   : > { %v2780_v8 = vor.u32 %v2917_v51, %v2777_v49  ;;  %v2940_v51 = vld [vmem:[#allocation14 + $0x78] sm:$0xff] }
 0x612   : > { %1865 = vadd.xlane.f32.xlu0 %v1860_v52  ;;  %2271 = vmatpush.bf16.msra.mxu2 %v2940_v51 }
 0x622   : > { %v1640_v48 = vpop.f32.mrf.mxu0 }
 0x623   : > { %v1647_v54 = vadd.f32 %v1640_v48, %v1443_v53  ;;  %v2916_v48 = vld [vmem:[#allocation13 + $0x34] sm:$0xf0]  ;;  %v2915_v53 = vld [vmem:[#allocation13 + $0x34] sm:$0xf] }
 0x62a   : > { %v1642_v11 = vpop.f32.mrf.mxu0 }
 0x62b   : > { %v1648_v9 = vadd.f32 %v1642_v11, %v1445_v56  ;;  %v2914_v11 = vld [vmem:[#allocation13 + $0x24] sm:$0xf0]  ;;  %v2913_v56 = vld [vmem:[#allocation13 + $0x24] sm:$0xf] }
 0x630   : > { %v1842_v55 = vpop.f32.mrf.mxu2 }
 0x631   : > { %v1849_v57 = vadd.f32 %v1842_v55, %v1647_v54  ;;  %v2769_v55 = vld [vmem:[#allocation13 + $0x38] sm:$0xf0] }
 0x633   : > { %v1857_v28 = vadd.f32 %v3071_v38, %v1849_v57  ;;  %v2772_v57 = vor.u32 %v2915_v53, %v2769_v55  ;;  %v2930_v55 = vld [vmem:[#allocation14 + $0x28] sm:$0xff] }
 0x635   : > { %v1861_v59 = vadd.f32 %v3161_v58, %v1857_v28  ;;  %v2759_v28 = vld [vmem:[#allocation13 + $0x20] sm:$0xf] }
 0x636   : > { %v2760_v58 = vor.u32 %v2914_v11, %v2759_v28 }
 0x637   : > { %1867 = vadd.xlane.f32.xlu1 %v1861_v59 }
 0x638   : > { %v1844_v61 = vpop.f32.mrf.mxu2 }
 0x639   : > { %v1850_v1 = vadd.f32 %v1844_v61, %v1648_v9  ;;  %v2751_v61 = vld [vmem:[#allocation13 + $0x10] sm:$0xf] }
 0x63b   : > { %v1858_v2 = vadd.f32 %v3071_v38, %v1850_v1  ;;  %v2796_v38 = vor.u32 %v2921_v43, %v2793_v22  ;;  %v2912_v1 = vld [vmem:[#allocation13 + $0x14] sm:$0xf0]  ;;  %v3072_v43 = vld [vmem:[%s4195_s14] ss:$0 sm:$0xff] }
 0x63d   : > { %v1862_v4 = vadd.f32 %v3162_v3, %v1858_v2  ;;  %2090 = vmatpush.bf16.msra.mxu3 %v2796_v38  ;;  %v2911_v2 = vld [vmem:[#allocation13 + $0x14] sm:$0xf]  ;;  %v2752_v3 = vor.u32 %v2912_v1, %v2751_v61 }
 0x63f   : > { %1869 = vadd.xlane.f32.xlu2 %v1862_v4 }
 0x641   : > { %2091 = vmatpush.bf16.msra.mxu3 %v2788_v46 }
 0x645   : > { %2092 = vmatpush.bf16.msra.mxu3 %v2780_v8  ;;  %v2931_v8 = vld [vmem:[#allocation14 + $0x30] sm:$0xff] }
 0x649   : > { %2093 = vmatpush.bf16.msra.mxu3 %v2772_v57  ;;  %v2938_v57 = vld [vmem:[#allocation14 + $0x68] sm:$0xff] }
 0x67d   : > { %v1864_v17 = vpop.xlane.xlu2 %1863 }
 0x67e   : > { %v1878_v16 = vmul.f32 %v4057_v14, %v1864_v17 }
 0x680   : > { %v4060_v18 = vsub.f32 %v1859_v47, %v1878_v16  ;;  %v2775_v47 = vld [vmem:[#allocation13 + $0x40] sm:$0xf]  ;;  %v2744_v16 = vor.u32 %v2910_v6, %v2743_v7 }
 0x681   : > { %v2776_v15 = vor.u32 %v2918_v50, %v2775_v47 }
 0x682   : > { %v1886_v20 = vmul.f32 %v4060_v18, %v4060_v18 }
 0x683   : > { %2073 = vmatpush.bf16.msra.mxu0 %v2776_v15 }
 0x684   : > { %1890 = vadd.xlane.f32.xlu0 %v1886_v20  ;;  %v2748_v20 = vor.u32 %v2909_v5, %v2745_v13 }
 0x685   : > { %v1866_v21 = vpop.xlane.xlu0 %1865 }
 0x686   : > { %v1879_v25 = vmul.f32 %v4057_v14, %v1866_v21 }
 0x688   : > { %v4065_v39 = vsub.f32 %v1860_v52, %v1879_v25  ;;  %v2767_v52 = vld [vmem:[#allocation13 + $0x30] sm:$0xf] }
 0x689   : > { %v2768_v54 = vor.u32 %v2916_v48, %v2767_v52  ;;  %v2939_v52 = vld [vmem:[#allocation14 + $0x70] sm:$0xff] }
 0x68a   : > { %v1887_v40 = vmul.f32 %v4065_v39, %v4065_v39  ;;  %2272 = vmatpush.bf16.msra.mxu2 %v2939_v52 }
 0x68b   : > { %2074 = vmatpush.bf16.msra.mxu0 %v2768_v54 }
 0x68c   : > { %1892 = vadd.xlane.f32.xlu1 %v1887_v40 }
 0x68e   : > { %2273 = vmatpush.bf16.msra.mxu2 %v2938_v57 }
 0x68f   : > { %2075 = vmatpush.bf16.msra.mxu0 %v2760_v58 }
 0x693   : > { %2076 = vmatpush.bf16.msra.mxu0 %v2752_v3 }
 0x697   : > { %2077 = vmatpush.bf16.msra.mxu0 %v2744_v16 }
 0x6aa   : > { %v1868_v23 = vpop.xlane.xlu1 %1867 }
 0x6ab   : > { %v1880_v24 = vmul.f32 %v4057_v14, %v1868_v23 }
 0x6ad   : > { %v4070_v26 = vsub.f32 %v1861_v59, %v1880_v24  ;;  %v2761_v59 = vld [vmem:[#allocation13 + $0x28] sm:$0xf0] }
 0x6ae   : > { %v2764_v9 = vor.u32 %v2913_v56, %v2761_v59  ;;  %v2929_v56 = vld [vmem:[#allocation14 + $0x20] sm:$0xff] }
 0x6af   : > { %v1888_v27 = vmul.f32 %v4070_v26, %v4070_v26 }
 0x6b0   : > { %2094 = vmatpush.bf16.msra.mxu3 %v2764_v9 }
 0x6b1   : > { %1894 = vadd.xlane.f32.xlu2 %v1888_v27 }
 0x6b2   : > { %v1870_v29 = vpop.xlane.xlu2 %1869 }
 0x6b3   : > { %v1881_v30 = vmul.f32 %v4057_v14, %v1870_v29 }
 0x6b5   : > { %v4075_v31 = vsub.f32 %v1862_v4, %v1881_v30  ;;  %v2753_v4 = vld [vmem:[#allocation13 + $0x18] sm:$0xf0] }
 0x6b6   : > { %v2756_v12 = vor.u32 %v2911_v2, %v2753_v4 }
 0x6b7   : > { %v1889_v32 = vmul.f32 %v4075_v31, %v4075_v31 }
 0x6b8   : > { %2095 = vmatpush.bf16.msra.mxu3 %v2756_v12 }
 0x6b9   : > { %1896 = vadd.xlane.f32.xlu0 %v1889_v32 }
 0x6bc   : > { %2096 = vmatpush.bf16.msra.mxu3 %v2748_v20 }
 0x6f7   : > { %v1891_v10 = vpop.xlane.xlu0 %1890 }
 0x6f8   : > { %v1898_v17 = vmul.f32 %v1891_v10, %v4057_v14 }
 0x6fa   : > { %v1902_v21 = vadd.f32 1e-05, %v1898_v17 }
 0x6fc   : > { %3143 = vrsqrt.f32 %v1902_v21  ;;  %vm1912_vm6 = vweird.f32 %v1902_v21 }
 0x6ff   : > { %v1893_v25 = vpop.xlane.xlu1 %1892 }
 0x700   : > { %v1899_v40 = vmul.f32 %v1893_v25, %v4057_v14  ;;  %v2927_v25 = vld [vmem:[#allocation14 + $0x10] sm:$0xff] }
 0x702   : > { %v3144_v23 = vpop.eup %3143  ;;  %v1903_v24 = vadd.f32 1e-05, %v1899_v40  ;;  %v2936_v40 = vld [vmem:[#allocation14 + $0x58] sm:$0xff] }
 0x703   : > { %v1907_v27 = vmul.f32 %v3144_v23, %v1902_v21  ;;  %vm1913_vm5 = vweird.f32 %v3144_v23  ;;  %v2928_v21 = vld [vmem:[#allocation14 + $0x18] sm:$0xff] }
 0x704   : > { %3145 = vrsqrt.f32 %v1903_v24  ;;  %vm1914_vm7 = vmor %vm1912_vm6, %vm1913_vm5  ;;  %vm1922_vm9 = vweird.f32 %v1903_v24 }
 0x705   : > { %v1908_v29 = vmul.f32 %v3144_v23, %v1907_v27  ;;  %v2934_v27 = vld [vmem:[#allocation14 + $0x48] sm:$0xff] }
 0x707   : > { %v1909_v30 = vmul.f32 0.5, %v1908_v29  ;;  %v2933_v29 = vld [vmem:[#allocation14 + $0x40] sm:$0xff] }
 0x709   : > { %v1910_v32 = vsub.f32 1.5, %v1909_v30  ;;  %v1984_v30 = vld [vmem:[%s4248_s19] sm:$0x3]  ;;  %s3417_s19 = sshra.s32 %s2411_s25, 4  ;;  %s3418_s19 = int_to_ptr.hbm [resolvable:$true] %s3417_s19 }
 0x70a   : > { %v3146_v33 = vpop.eup %3145  ;;  %s3419_s13 = scalar_lea.hbm %s3418_s19, 32  ;;  %p3424_p7 = scmp.lt.s32.totalorder %s3418_s19, %s4252_s26 }
 0x70b   : > { %v1911_v63 = vmul.f32 %v3144_v23, %v1910_v32  ;;  %v1917_v34 = vmul.f32 %v3146_v33, %v1903_v24  ;;  %vm1923_vm8 = vweird.f32 %v3146_v33  ;;  %v2925_v24 = vld [vmem:[#allocation14] sm:$0xff]  ;;  %p3420_p1 = scmp.ne.s32.totalorder %s3418_s19, %s3419_s13  ;;  %p3425_p9 = scmp.lt.s32.totalorder %s3423_s8, %s3419_s13 }
 0x70c   : > { %vm1924_vm10 = vmor %vm1922_vm9, %vm1923_vm8 }
 0x70d   : > { %v1918_v35 = vmul.f32 %v3146_v33, %v1917_v34  ;;  %v1915_v36 = vsel %vm1914_vm7, %v3144_v23, %v1911_v63  ;;  %v2935_v23 = vld [vmem:[#allocation14 + $0x50] sm:$0xff]  ;;  %p3421_p3 = pnand %p3420_p1, %p3722_p4  ;;  %p3426_p5 = por %p3425_p9, %p3424_p7 }
 0x70e   : > { %v1946_v19 = vmul.f32 %v1915_v36, %v4060_v18  ;;  %v1987_v36 = vperm.slane %v1984_v30, 1 }
 0x70f   : > { %v1919_v41 = vmul.f32 0.5, %v1918_v35  ;;  %p3422_p12 = pneg %p3421_p3 }
 0x710   : > { %v1954_v44 = vmul.f32 %v3072_v43, %v1946_v19 }
 0x711   : > { %v1920_v37 = vsub.f32 1.5, %v1919_v41  ;;  %p3427_p8 = pnand %p3426_p5, %p3422_p12 }
 0x712   : > { %v4089_v62 = vadd.f32 %v3073_v60, %v1954_v44 }
 0x713   : > { %v1921_v42 = vmul.f32 %v3146_v33, %v1920_v37 }
 0x715   : > { %v1925_v22 = vsel %vm1924_vm10, %v3146_v33, %v1921_v42  ;;  %v1986_v33 = vperm.slane %v1984_v30, 0 }
 0x716   : > { %v1947_v38 = vmul.f32 %v1925_v22, %v4065_v39  ;;  %v2932_v39 = vld [vmem:[#allocation14 + $0x38] sm:$0xff] }
 0x717   : > { %2252 = vmatpush.bf16.msrb.mxu1 %v2932_v39 }
 0x718   : > { %v1955_v45 = vmul.f32 %v3072_v43, %v1947_v38 }
 0x71a   : > { %v4091_v0 = vadd.f32 %v3073_v60, %v1955_v45 }
 0x71b   : > { %2253 = vmatpush.bf16.msrb.mxu1 %v2931_v8 }
 0x71c   : > { %v1966_v18 = vpack.c.bf16 %v4091_v0, %v4089_v62 }
 0x71e   : > { %2078 = vmatmul.bf16.vlgmr.msra.gmra.mxu0 %v1966_v18  ;;  %2097 = vmatmul.bf16.vlgmr.msra.gmra.mxu3 %v1966_v18 }
 0x71f   : > { %2254 = vmatpush.bf16.msrb.mxu1 %v2930_v55 }
 0x723   : > { %2255 = vmatpush.bf16.msrb.mxu1 %v2929_v56 }
 0x724   : > { %v1895_v46 = vpop.xlane.xlu2 %1894 }
 0x725   : > { %v1900_v47 = vmul.f32 %v1895_v46, %v4057_v14 }
 0x727   : > { %v1904_v50 = vadd.f32 1e-05, %v1900_v47  ;;  %2256 = vmatpush.bf16.msrb.mxu1 %v2928_v21 }
 0x729   : > { %3147 = vrsqrt.f32 %v1904_v50  ;;  %vm1932_vm12 = vweird.f32 %v1904_v50 }
 0x72b   : > { %2257 = vmatpush.bf16.msrb.mxu1 %v2927_v25 }
 0x72c   : > { %v1897_v15 = vpop.xlane.xlu0 %1896 }
 0x72d   : > { %v1901_v49 = vmul.f32 %v1897_v15, %v4057_v14 }
 0x72f   : > { %v3148_v48 = vpop.eup %3147  ;;  %v1905_v53 = vadd.f32 1e-05, %v1901_v49 }
 0x730   : > { %v1927_v54 = vmul.f32 %v3148_v48, %v1904_v50  ;;  %vm1933_vm11 = vweird.f32 %v3148_v48 }
 0x731   : > { %3149 = vrsqrt.f32 %v1905_v53  ;;  %vm1934_vm13 = vmor %vm1932_vm12, %vm1933_vm11  ;;  %vm1942_vm15 = vweird.f32 %v1905_v53 }
 0x732   : > { %v1928_v28 = vmul.f32 %v3148_v48, %v1927_v54 }
 0x734   : > { %v1929_v11 = vmul.f32 0.5, %v1928_v28  ;;  %v3074_v28 = vld [vmem:[%s4249_s4] ss:$0 sm:$0xff] }
 0x736   : > { %v1930_v58 = vsub.f32 1.5, %v1929_v11 }
 0x737   : > { %v3150_v59 = vpop.eup %3149 }
 0x738   : > { %v1931_v9 = vmul.f32 %v3148_v48, %v1930_v58  ;;  %v1937_v61 = vmul.f32 %v3150_v59, %v1905_v53  ;;  %vm1943_vm14 = vweird.f32 %v3150_v59 }
 0x739   : > { %vm1944_vm0 = vmor %vm1942_vm15, %vm1943_vm14 }
 0x73a   : > { %v1938_v1 = vmul.f32 %v3150_v59, %v1937_v61  ;;  %v1935_v3 = vsel %vm1934_vm13, %v3148_v48, %v1931_v9 }
 0x73b   : > { %v1948_v7 = vmul.f32 %v1935_v3, %v4070_v26  ;;  %v2937_v26 = vld [vmem:[#allocation14 + $0x60] sm:$0xff] }
 0x73c   : > { %v1939_v2 = vmul.f32 0.5, %v1938_v1  ;;  %2274 = vmatpush.bf16.msra.mxu2 %v2937_v26 }
 0x73d   : > { %v1956_v5 = vmul.f32 %v3072_v43, %v1948_v7 }
 0x73e   : > { %v1940_v4 = vsub.f32 1.5, %v1939_v2 }
 0x73f   : > { %v4099_v17 = vadd.f32 %v3073_v60, %v1956_v5 }
 0x740   : > { %v1941_v6 = vmul.f32 %v3150_v59, %v1940_v4  ;;  %2275 = vmatpush.bf16.msra.mxu2 %v2936_v40 }
 0x742   : > { %v1945_v10 = vsel %vm1944_vm0, %v3150_v59, %v1941_v6 }
 0x743   : > { %v1949_v12 = vmul.f32 %v1945_v10, %v4075_v31  ;;  %v2926_v31 = vld [vmem:[#allocation14 + $0x8] sm:$0xff] }
 0x744   : > { %2258 = vmatpush.bf16.msrb.mxu1 %v2926_v31  ;;  %2276 = vmatpush.bf16.msra.mxu2 %v2935_v23 }
 0x745   : > { %v1957_v13 = vmul.f32 %v3072_v43, %v1949_v12 }
 0x747   : > { %v4101_v16 = vadd.f32 %v3073_v60, %v1957_v13 }
 0x748   : > { %2259 = vmatpush.bf16.msrb.mxu1 %v2925_v24  ;;  %2277 = vmatpush.bf16.msra.mxu2 %v2934_v27 }
 0x749   : > { %v1967_v20 = vpack.c.bf16 %v4101_v16, %v4099_v17 }
 0x74b   : > { %2083 = vmatmul.bf16.gmra.mxu0 %v1967_v20  ;;  %2102 = vmatmul.bf16.gmra.mxu3 %v1967_v20 }
 0x74c   : > { %2278 = vmatpush.bf16.msra.mxu2 %v2933_v29 }
 0x79b   : > { %v2079_v32 = vpop.f32.mrf.mxu0 }
 0x79c   : > { %v2080_v34 = vadd.f32 %v2079_v32, %v1986_v33 }
 0x79e   : > { %v2108_v37 = vmax.f32 %v2080_v34, 0.0 }
 0x7a1   : > { %v2098_v63 = vpop.f32.mrf.mxu3 }
 0x7a2   : > { %v2099_v43 = vadd.f32 %v2098_v63, %v1987_v36 }
 0x7a3   : > { %v2081_v35 = vpop.f32.mrf.mxu0 }
 0x7a4   : > { %v2082_v41 = vadd.f32 %v2081_v35, %v1986_v33  ;;  %v2109_v44 = vmax.f32 %v2099_v43, 0.0 }
 0x7a6   : > { %v2110_v19 = vmax.f32 %v2082_v41, 0.0 }
 0x7a8   : > { %v2116_v42 = vpack.c.bf16 %v2110_v19, %v2108_v37 }
 0x7a9   : > { %v2100_v22 = vpop.f32.mrf.mxu3 }
 0x7aa   : > { %v2101_v38 = vadd.f32 %v2100_v22, %v1987_v36  ;;  %2260 = vmatmul.bf16.vlgmr.msrb.gmra.mxu1 %v2116_v42 }
 0x7ac   : > { %v2111_v60 = vmax.f32 %v2101_v38, 0.0 }
 0x7ae   : > { %v2117_v45 = vpack.c.bf16 %v2111_v60, %v2109_v44 }
 0x7b0   : > { %2279 = vmatmul.bf16.vlgmr.msra.gmra.mxu2 %v2117_v45 }
 0x7c8   : > { %v2084_v18 = vpop.f32.mrf.mxu0 }
 0x7c9   : > { %v2085_v47 = vadd.f32 %v2084_v18, %v1986_v33 }
 0x7cb   : > { %v2112_v51 = vmax.f32 %v2085_v47, 0.0  ;;  %v3075_v47 = vld [vmem:[%s4250_s6] ss:$0 sm:$0xff] }
 0x7ce   : > { %v2103_v46 = vpop.f32.mrf.mxu3 }
 0x7cf   : > { %v2104_v49 = vadd.f32 %v2103_v46, %v1987_v36 }
 0x7d0   : > { %v2086_v50 = vpop.f32.mrf.mxu0 }
 0x7d1   : > { %v2087_v39 = vadd.f32 %v2086_v50, %v1986_v33  ;;  %v2113_v53 = vmax.f32 %v2104_v49, 0.0 }
 0x7d3   : > { %v2114_v15 = vmax.f32 %v2087_v39, 0.0 }
 0x7d5   : > { %v2118_v8 = vpack.c.bf16 %v2114_v15, %v2112_v51  ;;  %v3076_v51 = vld [vmem:[%s4251_s27] ss:$0 sm:$0xff] }
 0x7d6   : > { %v2105_v52 = vpop.f32.mrf.mxu3 }
 0x7d7   : > { %v2106_v48 = vadd.f32 %v2105_v52, %v1987_v36  ;;  %2265 = vmatmul.bf16.gmra.mxu1 %v2118_v8 }
 0x7d9   : > { %v2115_v54 = vmax.f32 %v2106_v48, 0.0 }
 0x7db   : > { %v2119_v55 = vpack.c.bf16 %v2115_v54, %v2113_v53 }
 0x7dd   : > { %2284 = vmatmul.bf16.gmra.mxu2 %v2119_v55 }
 0x827   : > { %v2261_v57 = vpop.f32.mrf.mxu1 }
 0x828   : > { %v2262_v11 = vadd.f32 %v3074_v28, %v2261_v57 }
 0x82f   : > { %v2263_v9 = vpop.f32.mrf.mxu1 }
 0x830   : > { %v2264_v61 = vadd.f32 %v3074_v28, %v2263_v9 }
 0x833   : > { %v2280_v56 = vpop.f32.mrf.mxu2 }
 0x834   : > { %v2281_v58 = vadd.f32 %v2280_v56, %v2262_v11 }
 0x836   : > { %v2290_v59 = vadd.f32 %v2281_v58, %v4089_v62 }
 0x838   : > { %2294 = vadd.xlane.f32.xlu1 %v2290_v59 }
 0x83b   : > { %v2282_v1 = vpop.f32.mrf.mxu2 }
 0x83c   : > { %v2283_v2 = vadd.f32 %v2282_v1, %v2264_v61 }
 0x83e   : > { %v2291_v3 = vadd.f32 %v2283_v2, %v4091_v0 }
 0x840   : > { %2296 = vadd.xlane.f32.xlu2 %v2291_v3 }
 0x854   : > { %v2266_v4 = vpop.f32.mrf.mxu1 }
 0x855   : > { %v2267_v7 = vadd.f32 %v3074_v28, %v2266_v4 }
 0x85c   : > { %v2268_v5 = vpop.f32.mrf.mxu1 }
 0x85d   : > { %v2269_v13 = vadd.f32 %v3074_v28, %v2268_v5 }
 0x860   : > { %v2285_v6 = vpop.f32.mrf.mxu2 }
 0x861   : > { %v2286_v10 = vadd.f32 %v2285_v6, %v2267_v7 }
 0x863   : > { %v2292_v12 = vadd.f32 %v2286_v10, %v4099_v17 }
 0x865   : > { %2298 = vadd.xlane.f32.xlu0 %v2292_v12 }
 0x868   : > { %v2287_v20 = vpop.f32.mrf.mxu2 }
 0x869   : > { %v2288_v21 = vadd.f32 %v2287_v20, %v2269_v13 }
 0x86b   : > { %v2293_v62 = vadd.f32 %v2288_v21, %v4101_v16 }
 0x86d   : > { %2300 = vadd.xlane.f32.xlu1 %v2293_v62 }
 0x8ab   : > { %v2295_v26 = vpop.xlane.xlu1 %2294 }
 0x8ac   : > { %v2302_v25 = vmul.f32 %v2295_v26, %v4057_v14 }
 0x8ae   : > { %v2306_v40 = vsub.f32 %v2290_v59, %v2302_v25 }
 0x8b0   : > { %v2310_v0 = vmul.f32 %v2306_v40, %v2306_v40 }
 0x8b2   : > { %2314 = vadd.xlane.f32.xlu2 %v2310_v0 }
 0x8b3   : > { %v2297_v31 = vpop.xlane.xlu2 %2296 }
 0x8b4   : > { %v2303_v23 = vmul.f32 %v2297_v31, %v4057_v14 }
 0x8b6   : > { %v2307_v24 = vsub.f32 %v2291_v3, %v2303_v23 }
 0x8b8   : > { %v2311_v27 = vmul.f32 %v2307_v24, %v2307_v24 }
 0x8ba   : > { %2316 = vadd.xlane.f32.xlu0 %v2311_v27 }
 0x8d8   : > { %v2299_v17 = vpop.xlane.xlu0 %2298 }
 0x8d9   : > { %v2304_v29 = vmul.f32 %v2299_v17, %v4057_v14 }
 0x8db   : > { %v4118_v30 = vsub.f32 %v2292_v12, %v2304_v29 }
 0x8dd   : > { %v2312_v16 = vmul.f32 %v4118_v30, %v4118_v30 }
 0x8df   : > { %2318 = vadd.xlane.f32.xlu1 %v2312_v16 }
 0x8e0   : > { %v2301_v32 = vpop.xlane.xlu1 %2300 }
 0x8e1   : > { %v2305_v33 = vmul.f32 %v2301_v32, %v4057_v14 }
 0x8e3   : > { %v4123_v63 = vsub.f32 %v2293_v62, %v2305_v33 }
 0x8e5   : > { %v2313_v34 = vmul.f32 %v4123_v63, %v4123_v63 }
 0x8e7   : > { %2320 = vadd.xlane.f32.xlu2 %v2313_v34 }
 0x925   : > { %v2315_v35 = vpop.xlane.xlu2 %2314 }
 0x926   : > { %v2322_v36 = vmul.f32 %v2315_v35, %v4057_v14 }
 0x928   : > { %v2326_v41 = vadd.f32 1e-05, %v2322_v36 }
 0x92a   : > { %3151 = vrsqrt.f32 %v2326_v41  ;;  %vm2336_vm2 = vweird.f32 %v2326_v41 }
 0x92d   : > { %v2317_v37 = vpop.xlane.xlu0 %2316 }
 0x92e   : > { %v2323_v19 = vmul.f32 %v2317_v37, %v4057_v14 }
 0x930   : > { %v3152_v43 = vpop.eup %3151  ;;  %v2327_v42 = vadd.f32 1e-05, %v2323_v19 }
 0x931   : > { %v2331_v22 = vmul.f32 %v3152_v43, %v2326_v41  ;;  %vm2337_vm1 = vweird.f32 %v3152_v43 }
 0x932   : > { %3153 = vrsqrt.f32 %v2327_v42  ;;  %vm2338_vm3 = vmor %vm2336_vm2, %vm2337_vm1  ;;  %vm2346_vm5 = vweird.f32 %v2327_v42 }
 0x933   : > { %v2332_v38 = vmul.f32 %v3152_v43, %v2331_v22 }
 0x935   : > { %v2333_v44 = vmul.f32 0.5, %v2332_v38 }
 0x937   : > { %v2334_v60 = vsub.f32 1.5, %v2333_v44 }
 0x938   : > { %v3154_v45 = vpop.eup %3153 }
 0x939   : > { %v2335_v18 = vmul.f32 %v3152_v43, %v2334_v60  ;;  %v2341_v46 = vmul.f32 %v3154_v45, %v2327_v42  ;;  %vm2347_vm4 = vweird.f32 %v3154_v45 }
 0x93a   : > { %vm2348_vm6 = vmor %vm2346_vm5, %vm2347_vm4 }
 0x93b   : > { %v2339_v50 = vsel %vm2338_vm3, %v3152_v43, %v2335_v18  ;;  %v2342_v39 = vmul.f32 %v3154_v45, %v2341_v46 }
 0x93c   : > { %v2370_v15 = vmul.f32 %v2339_v50, %v2306_v40 }
 0x93d   : > { %v2343_v49 = vmul.f32 0.5, %v2342_v39 }
 0x93e   : > { %v2378_v8 = vmul.f32 %v3075_v47, %v2370_v15 }
 0x93f   : > { %v2344_v52 = vsub.f32 1.5, %v2343_v49 }
 0x940   : > { %v2386_v48 = vadd.f32 %v3076_v51, %v2378_v8 }
 0x941   : > { %v2345_v53 = vmul.f32 %v3154_v45, %v2344_v52 }
 0x942   : > { %2390 = vst [vmem:[%s4137_s16] sm:$0xff] %v2386_v48 }
 0x943   : > { %v2349_v54 = vsel %vm2348_vm6, %v3154_v45, %v2345_v53 }
 0x944   : > { %v2371_v55 = vmul.f32 %v2349_v54, %v2307_v24 }
 0x946   : > { %v2379_v57 = vmul.f32 %v3075_v47, %v2371_v55 }
 0x948   : > { %v2387_v28 = vadd.f32 %v3076_v51, %v2379_v57 }
 0x94a   : > { %2391 = vst [vmem:[%s4137_s16 + $0x8] sm:$0xff] %v2387_v28 }
 0x952   : > { %v2319_v11 = vpop.xlane.xlu1 %2318 }
 0x953   : > { %v2324_v56 = vmul.f32 %v2319_v11, %v4057_v14 }
 0x955   : > { %v2328_v58 = vadd.f32 1e-05, %v2324_v56 }
 0x957   : > { %3155 = vrsqrt.f32 %v2328_v58  ;;  %vm2356_vm8 = vweird.f32 %v2328_v58 }
 0x95a   : > { %v2321_v59 = vpop.xlane.xlu2 %2320 }
 0x95b   : > { %v2325_v9 = vmul.f32 %v2321_v59, %v4057_v14 }
 0x95d   : > { %v3156_v61 = vpop.eup %3155  ;;  %v2329_v1 = vadd.f32 1e-05, %v2325_v9 }
 0x95e   : > { %v2351_v2 = vmul.f32 %v3156_v61, %v2328_v58  ;;  %vm2357_vm7 = vweird.f32 %v3156_v61 }
 0x95f   : > { %3157 = vrsqrt.f32 %v2329_v1  ;;  %vm2358_vm9 = vmor %vm2356_vm8, %vm2357_vm7  ;;  %vm2366_vm11 = vweird.f32 %v2329_v1 }
 0x960   : > { %v2352_v3 = vmul.f32 %v3156_v61, %v2351_v2 }
 0x962   : > { %v2353_v4 = vmul.f32 0.5, %v2352_v3 }
 0x964   : > { %v2354_v7 = vsub.f32 1.5, %v2353_v4 }
 0x965   : > { %v3158_v6 = vpop.eup %3157 }
 0x966   : > { %v2355_v10 = vmul.f32 %v3156_v61, %v2354_v7  ;;  %v2361_v12 = vmul.f32 %v3158_v6, %v2329_v1  ;;  %vm2367_vm10 = vweird.f32 %v3158_v6 }
 0x967   : > { %vm2368_vm12 = vmor %vm2366_vm11, %vm2367_vm10 }
 0x968   : > { %v2359_v5 = vsel %vm2358_vm9, %v3156_v61, %v2355_v10  ;;  %v2362_v13 = vmul.f32 %v3158_v6, %v2361_v12 }
 0x969   : > { %v2372_v14 = vmul.f32 %v2359_v5, %v4118_v30 }
 0x96a   : > { %v2363_v20 = vmul.f32 0.5, %v2362_v13 }
 0x96b   : > { %v2380_v21 = vmul.f32 %v3075_v47, %v2372_v14 }
 0x96c   : > { %v2364_v62 = vsub.f32 1.5, %v2363_v20 }
 0x96d   : > { %v2388_v26 = vadd.f32 %v3076_v51, %v2380_v21 }
 0x96e   : > { %v2365_v25 = vmul.f32 %v3158_v6, %v2364_v62 }
 0x96f   : > { %2392 = vst [vmem:[%s4137_s16 + $0x10] sm:$0xff] %v2388_v26 }
 0x970   : > { %v2369_v40 = vsel %vm2368_vm12, %v3158_v6, %v2365_v25 }
 0x971   : > { %v2373_v0 = vmul.f32 %v2369_v40, %v4123_v63 }
 0x973   : > { %v2381_v31 = vmul.f32 %v3075_v47, %v2373_v0 }
 0x975   : > { %v2389_v23 = vadd.f32 %v3076_v51, %v2381_v31 }
 0x977   : > { %2393 = vst [vmem:[%s4137_s16 + $0x18] sm:$0xff] %v2389_v23 }
 0x978   : > { %3430 = shalt.err (!%p3427_p8)
}
 0x979   : > { %s3508_s2 = smov 128   ;;  %s3509_s29 = smov 8  }
 0x97a   : > { %2971 = dma.vmem_to_hbm [thread:$0]  (%p3722_p4), %s2409_s22, 512, %s2411_s25, %s2395_s21, %s3508_s2, %s3508_s2, %s3509_s29  }
 0x97b PF: > { %s4254_s18 = sld [smem:[#allocation24_spill]]  ;;  %p4256_p10 = scmp.ge.s32.totalorder %s3489_s30, 2 }
 0x97d   : > { %p3000_p13 = pnand %p4256_p10, %p3726_p6 }
 0x97f   : > { %p3001_p11 = pneg %p3000_p13 }
 0x981   : > { %s2425_s16 = sand.u32 1, %s4254_s18  }
 0x982   : > { %s2426_s24 = scalar_lea.sflag [#allocation4], %s2425_s16 }
 0x983   : > { %3472 = dma.done.wait (%p3001_p11), %s2426_s24, 512  }
 0x984   : > { %3474 = vsyncadd (%p3001_p11), %s2426_s24, 4294966784  ;;  %s4257_s30 = sld [smem:[#allocation26_spill]]  ;;  %s4260_s27 = smov %s3481_s28 }
 0x985   : > { %s4258_s11 = sld [smem:[#allocation25_spill]] }
 0x986   : > { %s4259_s29 = sld [smem:[#allocation27_spill]] }
 0x98a   : > { %p37_p0 = scmp.ge.s32.totalorder %s4257_s30, 4  }
 0x98b   : > { %s4261_s28 = smov %s4258_s11 }
 0x98c   :  { %39 = sbr.rel (!%p37_p0) target bundleno = 24 (0x18), region = 177 }
 0x991   :  { %2432 = vsyncpa [#allocation3], 1 }
 0x992   :  { %2434 = vsyncpa [#allocation3 + $0x1], 1 }
 0x993   :  { %2435 = vsyncpa [#allocation6], 1 }
 0x994   :  { %2437 = vsyncpa [#allocation6 + $0x1], 1 }
 0x995   :  { %2438 = vsyncpa [#allocation9], 1 }
 0x996   :  { %2439 = vsyncpa [#allocation12], 1 }
 0x997   :  { %2440 = vsyncpa [#allocation15], 1 }
 0x998   :  { %2441 = vsyncpa [#allocation4], 1 }
 0x999   :  { %2443 = vsyncpa [#allocation4 + $0x1], 1 }

// kernel: tpu_custom_call.1
= control target key start
LH: loop header
LB: loop body
LE: loop exit
PB: predicated region body
PF: predicated region fallthrough
CT: control target
= control target key end

     0   :  { %s4181_s0 = inlined_call_operand.hbm [shape: f32[4,16,128], index: 0, kind: input, shape index: {}]   ;;  %s4182_s1 = inlined_call_operand.hbm [shape: f32[4,1,16], index: 1, kind: input, shape index: {}]   ;;  %s4183_s2 = inlined_call_operand.hbm [shape: bf16[128,128], index: 2, kind: input, shape index: {}]   ;;  %s4184_s3 = inlined_call_operand.vmem [shape: f32[1,128], index: 3, kind: input, shape index: {}]   ;;  %s4185_s4 = inlined_call_operand.hbm [shape: bf16[128,128], index: 4, kind: input, shape index: {}]   ;;  %s4186_s5 = inlined_call_operand.vmem [shape: f32[1,128], index: 5, kind: input, shape index: {}]   ;;  %s4187_s6 = inlined_call_operand.hbm [shape: bf16[128,128], index: 6, kind: input, shape index: {}]   ;;  %s4188_s7 = inlined_call_operand.vmem [shape: f32[1,128], index: 7, kind: input, shape index: {}]   ;;  %s4189_s8 = inlined_call_operand.hbm [shape: bf16[4,32,128], index: 8, kind: input, shape index: {}]   ;;  %s4190_s9 = inlined_call_operand.vmem [shape: f32[1,128], index: 9, kind: input, shape index: {}]   ;;  %s4191_s10 = inlined_call_operand.hbm [shape: bf16[128,256], index: 10, kind: input, shape index: {}]   ;;  %s4192_s11 = inlined_call_operand.vmem [shape: f32[1,256], index: 11, kind: input, shape index: {}]   ;;  %s4193_s12 = inlined_call_operand.hbm [shape: bf16[256,128], index: 12, kind: input, shape index: {}]   ;;  %s4194_s13 = inlined_call_operand.vmem [shape: f32[1,128], index: 13, kind: input, shape index: {}]   ;;  %s4195_s14 = inlined_call_operand.vmem [shape: f32[1,128], index: 14, kind: input, shape index: {}]   ;;  %s4196_s15 = inlined_call_operand.vmem [shape: f32[1,128], index: 15, kind: input, shape index: {}]   ;;  %s4197_s16 = inlined_call_operand.vmem [shape: f32[1,128], index: 16, kind: input, shape index: {}]   ;;  %s4198_s17 = inlined_call_operand.vmem [shape: f32[1,128], index: 17, kind: input, shape index: {}]   ;;  %s4199_s18 = inlined_call_operand.hbm [shape: f32[4,16,128], index: 18, kind: output, shape index: {}]  }
   0x1   :  { %4212 = sst [smem:[#allocation30_spill]] %s4181_s0 }
   0x2   :  { %4213 = sst [smem:[#allocation31_spill]] %s4182_s1 }
   0x3   :  { %4214 = sst [smem:[#allocation32_spill]] %s4183_s2 }
   0x4   :  { %4215 = sst [smem:[#allocation33_spill]] %s4185_s4 }
   0x5   :  { %4216 = sst [smem:[#allocation34_spill]] %s4187_s6 }
   0x6   :  { %4217 = sst [smem:[#allocation35_spill]] %s4189_s8 }
   0x7   :  { %4218 = sst [smem:[#allocation36_spill]] %s4191_s10 }
   0x8   :  { %4219 = sst [smem:[#allocation37_spill]] %s4192_s11 }
   0x9   :  { %4220 = sst [smem:[#allocation38_spill]] %s4193_s12 }
   0xa   :  { %4221 = sst [smem:[#allocation39_spill]] %s4194_s13 }
   0xb   :  { %4222 = sst [smem:[#allocation40_spill]] %s4197_s16 }
   0xc   :  { %4223 = sst [smem:[#allocation41_spill]] %s4198_s17 }
   0xd   :  { %4224 = sst [smem:[#allocation42_spill]] %s4199_s18 }
   0xe   :  { %23 = vsyncpa [#allocation3], 0 }
   0xf   :  { %25 = vsyncpa [#allocation3 + $0x1], 0 }
  0x10   :  { %26 = vsyncpa [#allocation6], 0 }
  0x11   :  { %28 = vsyncpa [#allocation6 + $0x1], 0 }
  0x12   :  { %29 = vsyncpa [#allocation9], 0 }
  0x13   :  { %30 = vsyncpa [#allocation12], 0 }
  0x14   :  { %31 = vsyncpa [#allocation15], 0 }
  0x15   :  { %32 = vsyncpa [#allocation4], 0 }
  0x16   :  { %34 = vsyncpa [#allocation4 + $0x1], 0  ;;  %s3605_s27 = smov 0   ;;  %s3607_s28 = smov 0  }
  0x17   :  { %s3609_s29 = smov 0   ;;  %s3611_s30 = smov 0  }
  0x18 LB: > { %4225 = sst [smem:[#allocation24_spill]] %s3477_s27  ;;  %s3629_s21 = sadd.s32 4294967295, %s3489_s30   ;;  %s3489_s30 = sphi %s3611_s30, %s4257_s30   ;;  %s3485_s29 = sphi %s3609_s29, %s4259_s29   ;;  %s3481_s28 = sphi %s3607_s28, %s4261_s28   ;;  %s3477_s27 = sphi %s3605_s27, %s4260_s27  }
  0x19   : > { %4226 = sst [smem:[#allocation25_spill]] %s3485_s29  ;;  %p2565_p0 = scmp.ge.s32.totalorder %s3489_s30, 1 }
  0x1a   : > { %s4227_s1 = sld [smem:[#allocation32_spill]]  ;;  %p61_p1 = scmp.eq.s32.totalorder %s3629_s21, 0 }
  0x1b   : > { %p459_p2 = scmp.lt.s32.totalorder %s3489_s30, 3  ;;  %s3491_s2 = smov [#allocation7]  }
  0x1c   : > { %s472_s23 = sshll.u32 %s3491_s2, 4  ;;  %s4229_s4 = sld [smem:[#allocation33_spill]]  ;;  %s473_s23 = int_to_ptr.vmem [resolvable:$true] %s472_s23 }
  0x1d   : > { %p3634_p3 = pnand %p2565_p0, %p459_p2  ;;  %s4231_s8 = sld [smem:[#allocation35_spill]] }
  0x1e   : > { %s3492_s18 = smov [#allocation8]   ;;  %s3493_s16 = smov 64  }
  0x1f   : > { %p2973_p4 = pneg %p3634_p3  ;;  %s489_s17 = sshll.u32 %s3492_s18, 4  ;;  %s490_s17 = int_to_ptr.vmem [resolvable:$true] %s489_s17 }
  0x20   : > { %s470_s20 = sshll.u32 %s4227_s1, 4  ;;  %s3494_s13 = smov 4   ;;  %s471_s20 = int_to_ptr.hbm [resolvable:$true] %s470_s20 }
  0x21   : > { %p3646_p6 = pnand %p2973_p4, %p61_p1  ;;  %s4232_s6 = sld [smem:[#allocation34_spill]] }
  0x22   : > { %s487_s26 = sshll.u32 %s4229_s4, 4  ;;  %s3495_s18 = smov [#allocation11]   ;;  %s488_s26 = int_to_ptr.hbm [resolvable:$true] %s487_s26 }
  0x23   : > { %s521_s2 = sshll.u32 %s4231_s8, 4  ;;  %s523_s1 = sshll.u32 %s3495_s18, 4  ;;  %s522_s2 = int_to_ptr.hbm [resolvable:$true] %s521_s2  ;;  %s524_s1 = int_to_ptr.vmem [resolvable:$true] %s523_s1 }
  0x24   : > { %2976 = dma.hbm_to_vmem [thread:$0]  (!%p3646_p6), %s471_s20, 1024, %s473_s23, [#allocation6], %s3493_s16, %s3493_s16, %s3494_s13  }
  0x25   : > { %2979 = dma.hbm_to_vmem [thread:$0]  (!%p3646_p6), %s488_s26, 1024, %s490_s17, [#allocation9], %s3493_s16, %s3493_s16, %s3494_s13  }
  0x26   : > { %2985 = dma.hbm_to_vmem [thread:$0]  (!%p3646_p6), %s522_s2, 1024, %s524_s1, [#allocation12], %s3493_s16, %s3493_s16, %s3494_s13  }
  0x27   : > { %s504_s19 = sshll.u32 %s4232_s6, 4  ;;  %s3496_s20 = smov [#allocation10]   ;;  %s505_s19 = int_to_ptr.hbm [resolvable:$true] %s504_s19 }
  0x28   : > { %s506_s23 = sshll.u32 %s3496_s20, 4  ;;  %s4233_s10 = sld [smem:[#allocation36_spill]]  ;;  %s507_s23 = int_to_ptr.vmem [resolvable:$true] %s506_s23 }
  0x29   : > { %2982 = dma.hbm_to_vmem [thread:$0]  (!%p3646_p6), %s505_s19, 1024, %s507_s23, [#allocation9], %s3493_s16, %s3493_s16, %s3494_s13  }
  0x2a   : > { %s3497_s26 = smov [#allocation13]   ;;  %s4234_s12 = sld [smem:[#allocation38_spill]] }
  0x2b   : > { %s540_s2 = sshll.u32 %s3497_s26, 4  ;;  %s4203_s25 = smov 128   ;;  %s541_s2 = int_to_ptr.vmem [resolvable:$true] %s540_s2 }
  0x2c   : > { %s4204_s18 = smov 8   ;;  %s3500_s19 = smov [#allocation14]  }
  0x2d   : > { %s557_s1 = sshll.u32 %s3500_s19, 4  ;;  %s2564_s20 = sadd.s32 4294967294, %s3489_s30   ;;  %s558_s1 = int_to_ptr.vmem [resolvable:$true] %s557_s1 }
  0x2e   : > { %s538_s17 = sshll.u32 %s4233_s10, 4  ;;  %s3694_s23 = sadd.s32 1, %s3489_s30   ;;  %s539_s17 = int_to_ptr.hbm [resolvable:$true] %s538_s17 }
  0x2f   : > { %2988 = dma.hbm_to_vmem [thread:$0]  (!%p3646_p6), %s539_s17, 2048, %s541_s2, [#allocation12], %s4203_s25, %s4203_s25, %s4204_s18  }
  0x30   : > { %s555_s8 = sshll.u32 %s4234_s12, 4  ;;  %4235 = sst [smem:[#allocation26_spill]] %s3694_s23  ;;  %s556_s8 = int_to_ptr.hbm [resolvable:$true] %s555_s8 }
  0x31   : > { %2991 = dma.hbm_to_vmem [thread:$0]  (!%p3646_p6), %s556_s8, 2048, %s558_s1, [#allocation15], %s3493_s16, %s3493_s16, %s3494_s13  }
  0x32   : > { %s44_s26 = ssub.s32 %s3489_s30, %s3694_s23  ;;  %s47_s17 = sadd.s32 1, %s3485_s29 }
  0x33   : > { %p45_p7 = scmp.eq.s32.totalorder %s44_s26, 0  ;;  %p54_p8 = scmp.ne.s32.totalorder %s3485_s29, %s3481_s28 }
  0x34   : > { %p55_p9 = scmp.eq.s32.totalorder %s3489_s30, 0  ;;  %p60_p10 = scmp.ne.s32.totalorder %s3481_s28, %s3477_s27 }
  0x35   : > { %s3705_s2 = scalar_select %p45_p7, %s3485_s29, %s47_s17  }
  0x36   : > { %p3707_p11 = por %p55_p9, %p54_p8  ;;  %p3713_p12 = por %p61_p1, %p60_p10 }
  0x37   : > { %4236 = sst [smem:[#allocation27_spill]] %s3705_s2  ;;  %p446_p13 = scmp.eq.s32.totalorder %s3629_s21, 1 }
  0x38   : > { %p452_p0 = scmp.eq.s32.totalorder %s2564_s20, 1  ;;  %p3009_p2 = scmp.lt.s32.totalorder %s3489_s30, 2 }
  0x39   : > { %s3720_s16 = sand.u32 1, %s3485_s29   ;;  %p3722_p4 = por %p446_p13, %p54_p8 }
  0x3a   : > { %p3726_p6 = por %p452_p0, %p60_p10  ;;  %s2573_s8 = sshll.u32 %s3720_s16, 5 }
  0x3b   : > { %s4239_s24 = scalar_select %p3722_p4, 1, 0 }
  0x3c   : > { %s4241_s4 = scalar_select %p3726_p6, 1, 0 }
  0x3d   : > { %4240 = sst [smem:[#allocation28_spill]] %s4239_s24  ;;  %s2876_s19 = sshll.u32 %s3489_s30, 5 }
  0x3e   : > { %4242 = sst [smem:[#allocation29_spill]] %s4241_s4  ;;  %s590_s25 = scalar_lea.vmem [#allocation2], %s2573_s8 }
  0x3f   : > { %s4243_s17 = sld [smem:[#allocation30_spill]]  ;;  %s599_s18 = sshll.u32 %s590_s25, 4  ;;  %s600_s18 = int_to_ptr.vmem [resolvable:$true] %s599_s18 }
  0x40   : > { %p3737_p7 = pnand %p3009_p2, %p3707_p11  ;;  %s609_s12 = sand.u32 1, %s3489_s30  }
  0x41   : > { %s2577_s2 = sshll.u32 %s3720_s16, 1  ;;  %s587_s29 = scalar_lea.sflag [#allocation3], %s3720_s16 }
  0x42   : > { %p3347_p9 = pneg %p3737_p7 }
  0x45   : > { %s596_s20 = scalar_lea.hbm %s4243_s17, %s2876_s19  ;;  %s3350_s8 = scalar_lea.hbm %s4243_s17, 64 }
  0x46   : > { %s597_s6 = sshll.u32 %s596_s20, 4  ;;  %s598_s6 = int_to_ptr.hbm [resolvable:$true] %s597_s6 }
  0x47   : > { %s3343_s23 = sshra.s32 %s598_s6, 4  ;;  %s3344_s23 = int_to_ptr.hbm [resolvable:$true] %s3343_s23 }
  0x48   : > { %s3345_s4 = scalar_lea.hbm %s3344_s23, 32  ;;  %p3351_p11 = scmp.lt.s32.totalorder %s3344_s23, %s4243_s17 }
  0x49   : > { %p3346_p8 = scmp.ne.s32.totalorder %s3344_s23, %s3345_s4  ;;  %p3352_p0 = scmp.lt.s32.totalorder %s3350_s8, %s3345_s4 }
  0x4b   : > { %p3348_p10 = pnand %p3347_p9, %p3346_p8  ;;  %p3353_p2 = por %p3352_p0, %p3351_p11 }
  0x4d   : > { %p3349_p13 = pneg %p3348_p10 }
  0x4f   : > { %p3354_p5 = pnand %p3353_p2, %p3349_p13 }
  0x51   : > { %3357 = shalt.err (!%p3354_p5)
}
  0x52   : > { %s4245_s16 = smov 8   ;;  %s4246_s26 = smov 128  }
  0x53   : > { %2995 = dma.hbm_to_vmem [thread:$0]  (!%p3737_p7), %s598_s6, 512, %s600_s18, %s587_s29, %s4246_s26, %s4246_s26, %s4245_s16  }
  0x54   : > { %s2578_s20 = sshll.u32 %s3489_s30, 1  ;;  %s4247_s0 = sld [smem:[#allocation31_spill]] }
  0x55   : > { %s613_s11 = scalar_lea.vmem [#allocation5], %s2577_s2  ;;  %s610_s4 = scalar_lea.sflag [#allocation6], %s609_s12 }
  0x56   : > { %s620_s19 = sshll.u32 %s613_s11, 4  ;;  %s621_s19 = int_to_ptr.vmem [resolvable:$true] %s620_s19 }
  0x5a   : > { %s617_s24 = scalar_lea.hbm %s4247_s0, %s2578_s20  ;;  %s3380_s18 = scalar_lea.hbm %s4247_s0, 4 }
  0x5b   : > { %s618_s23 = sshll.u32 %s617_s24, 4  ;;  %s619_s23 = int_to_ptr.hbm [resolvable:$true] %s618_s23 }
  0x5c   : > { %s3373_s8 = sshra.s32 %s619_s23, 4  ;;  %s3374_s8 = int_to_ptr.hbm [resolvable:$true] %s3373_s8 }
  0x5d   : > { %s3375_s1 = scalar_lea.hbm %s3374_s8, 2  ;;  %p3381_p13 = scmp.lt.s32.totalorder %s3374_s8, %s4247_s0 }
  0x5e   : > { %p3376_p5 = scmp.ne.s32.totalorder %s3374_s8, %s3375_s1  ;;  %p3382_p11 = scmp.lt.s32.totalorder %s3380_s18, %s3375_s1 }
  0x60   : > { %p3378_p8 = pnand %p3376_p5, %p3347_p9  ;;  %p3383_p0 = por %p3382_p11, %p3381_p13 }
  0x62   : > { %p3379_p10 = pneg %p3378_p8 }
  0x64   : > { %p3384_p2 = pnand %p3383_p0, %p3379_p10 }
  0x66   : > { %3387 = shalt.err (!%p3384_p2)
}
  0x67   : > { %s3501_s11 = smov 16   ;;  %s3502_s12 = smov 1  }
  0x68   : > { %2998 = dma.hbm_to_vmem [thread:$0]  (!%p3737_p7), %s619_s23, 32, %s621_s19, %s610_s4, %s3501_s11, %s3501_s11, %s3502_s12  }
  0x69   : > { %632 = sbr.rel (%p3634_p3) target bundleno = 2427 (0x97b), region = 92  ;;  %s3778_s2 = sand.u32 (!%p3634_p3), 1, %s3481_s28  }
  0x6a   : > { %s2580_s24 = sshll.u32 (!%p3634_p3), %s3778_s2, 5  ;;  %s635_s26 = scalar_lea.sflag (!%p3634_p3), [#allocation3], %s3778_s2 }
  0x6b   : > { %s3784_s20 = scalar_lea.vmem (!%p3634_p3), [#allocation2], %s2580_s24 }
  0x6e   : > { %3448 = dma.done.wait (%p3713_p12), %s635_s26, 512  }
  0x6f   : > { %3450 = vsyncadd (%p3713_p12), %s635_s26, 4294966784  ;;  %s644_s10 = sand.u32 1, %s3629_s21   ;;  %s2581_s22 = sshll.u32 %s3778_s2, 1 }
  0x70   : > { %s645_s25 = scalar_lea.sflag [#allocation6], %s644_s10  ;;  %s3792_s19 = scalar_lea.vmem [#allocation5], %s2581_s22 }
  0x71   : > { %3452 = dma.done.wait (%p3713_p12), %s645_s25, 32  }
  0x72   : > { %3454 = vsyncadd (%p3713_p12), %s645_s25, 4294967264 }
  0x73   : > { %3456 = dma.done.wait (%p61_p1), [#allocation6], 1024  }
  0x74   : > { %3458 = vsyncadd (%p61_p1), [#allocation6], 4294966272 }
  0x75   : > { %3460 = dma.done.wait (%p61_p1), [#allocation9], 2048  }
  0x76   : > { %3462 = vsyncadd (%p61_p1), [#allocation9], 4294965248 }
  0x77   : > { %3464 = dma.done.wait (%p61_p1), [#allocation12], 3072  }
  0x78   : > { %3466 = vsyncadd (%p61_p1), [#allocation12], 4294964224 }
  0x79   : > { %3468 = dma.done.wait (%p61_p1), [#allocation15], 2048  }
  0x7a   : > { %3470 = vsyncadd (%p61_p1), [#allocation15], 4294965248  ;;  %v2892_v0 = vld [vmem:[#allocation8 + $0x38] sm:$0xff]  ;;  %v2891_v3 = vld [vmem:[#allocation8 + $0x30] sm:$0xff]  ;;  %vm1036_vm0 = vcmask 261120   ;;  %s3503_s29 = smov 96  }
  0x7b   : > { %v2884_v1 = vld [vmem:[#allocation7 + $0x38] sm:$0xff]  ;;  %902 = vmatpush.bf16.msra.mxu1 %v2892_v0  ;;  %v2883_v4 = vld [vmem:[#allocation7 + $0x30] sm:$0xff]  ;;  %v2890_v6 = vld [vmem:[#allocation8 + $0x28] sm:$0xff]  ;;  %s3504_s18 = smov 64   ;;  %vm1101_vm2 = vcmask 130048   ;;  %s3506_s27 = smov 32  }
  0x7c   : > { %v2900_v2 = vld [vmem:[#allocation10 + $0x38] sm:$0xff]  ;;  %815 = vmatpush.bf16.msra.mxu0 %v2884_v1  ;;  %v2899_v5 = vld [vmem:[#allocation10 + $0x30] sm:$0xff]  ;;  %v2882_v7 = vld [vmem:[#allocation7 + $0x28] sm:$0xff]  ;;  %s4249_s4 = sld [smem:[#allocation39_spill]]  ;;  %s4137_s16 = scalar_lea.vmem [#allocation16], %s2580_s24 }
  0x7d   : > { %989 = vmatpush.bf16.msra.mxu2 %v2900_v2  ;;  %v2898_v8 = vld [vmem:[#allocation10 + $0x28] sm:$0xff]  ;;  %v2889_v9 = vld [vmem:[#allocation8 + $0x20] sm:$0xff]  ;;  %v2888_v12 = vld [vmem:[#allocation8 + $0x18] sm:$0xff]  ;;  %s4250_s6 = sld [smem:[#allocation40_spill]]  ;;  %s2942_s24 = sshll.u32 %s3629_s21, 5 }
  0x7e   : > { %v2881_v10 = vld [vmem:[#allocation7 + $0x20] sm:$0xff]  ;;  %v2880_v13 = vld [vmem:[#allocation7 + $0x18] sm:$0xff]  ;;  %v2887_v15 = vld [vmem:[#allocation8 + $0x10] sm:$0xff]  ;;  %s4252_s26 = sld [smem:[#allocation42_spill]]  ;;  %s2408_s22 = sshll.u32 %s4137_s16, 4  ;;  %s2409_s22 = int_to_ptr.vmem [resolvable:$true] %s2408_s22 }
  0x7f   : > { %903 = vmatpush.bf16.msra.mxu1 %v2891_v3  ;;  %v2897_v11 = vld [vmem:[#allocation10 + $0x20] sm:$0xff]  ;;  %v2896_v14 = vld [vmem:[#allocation10 + $0x18] sm:$0xff]  ;;  %v2879_v16 = vld [vmem:[#allocation7 + $0x10] sm:$0xff]  ;;  %s2395_s21 = scalar_lea.sflag [#allocation4], %s3778_s2 }
  0x80   : > { %816 = vmatpush.bf16.msra.mxu0 %v2883_v4  ;;  %v2895_v17 = vld [vmem:[#allocation10 + $0x10] sm:$0xff]  ;;  %v2886_v18 = vld [vmem:[#allocation8 + $0x8] sm:$0xff]  ;;  %v2885_v21 = vld [vmem:[#allocation8] sm:$0xff] }
  0x81   : > { %990 = vmatpush.bf16.msra.mxu2 %v2899_v5  ;;  %v2878_v19 = vld [vmem:[#allocation7 + $0x8] sm:$0xff]  ;;  %v741_v22 = vld [vmem:[%s3784_s20] sm:$0xff]  ;;  %v744_v28 = vld [vmem:[%s3784_s20 + $0x18] sm:$0xff] }
  0x82   : > { %v2894_v20 = vld [vmem:[#allocation10 + $0x8] sm:$0xff]  ;;  %v2877_v24 = vld [vmem:[#allocation7] sm:$0xff]  ;;  %v3068_v32 = vld [vmem:[%s4186_s5] ss:$0 sm:$0xff] }
  0x83   : > { %904 = vmatpush.bf16.msra.mxu1 %v2890_v6  ;;  %v742_v23 = vld [vmem:[%s3784_s20 + $0x8] sm:$0xff]  ;;  %v743_v27 = vld [vmem:[%s3784_s20 + $0x10] sm:$0xff]  ;;  %v3069_v34 = vld [vmem:[%s4184_s3] ss:$0 sm:$0xff] }
  0x84   : > { %817 = vmatpush.bf16.msra.mxu0 %v2882_v7  ;;  %v2893_v25 = vld [vmem:[#allocation10] sm:$0xff]  ;;  %v745_v26 = vpack.c.bf16 %v742_v23, %v741_v22  ;;  %v746_v29 = vpack.c.bf16 %v744_v28, %v743_v27  ;;  %v3070_v45 = vld [vmem:[%s4188_s7] ss:$0 sm:$0xff]  ;;  %s3423_s8 = scalar_lea.hbm %s4252_s26, 64 }
  0x85   : > { %991 = vmatpush.bf16.msra.mxu2 %v2898_v8 }
  0x87   : > { %905 = vmatpush.bf16.msra.mxu1 %v2889_v9 }
  0x88   : > { %818 = vmatpush.bf16.msra.mxu0 %v2881_v10 }
  0x89   : > { %992 = vmatpush.bf16.msra.mxu2 %v2897_v11 }
  0x8b   : > { %906 = vmatpush.bf16.msra.mxu1 %v2888_v12 }
  0x8c   : > { %819 = vmatpush.bf16.msra.mxu0 %v2880_v13 }
  0x8d   : > { %993 = vmatpush.bf16.msra.mxu2 %v2896_v14 }
  0x8f   : > { %907 = vmatpush.bf16.msra.mxu1 %v2887_v15 }
  0x90   : > { %820 = vmatpush.bf16.msra.mxu0 %v2879_v16 }
  0x91   : > { %994 = vmatpush.bf16.msra.mxu2 %v2895_v17 }
  0x93   : > { %908 = vmatpush.bf16.msra.mxu1 %v2886_v18 }
  0x94   : > { %821 = vmatpush.bf16.msra.mxu0 %v2878_v19 }
  0x95   : > { %995 = vmatpush.bf16.msra.mxu2 %v2894_v20 }
  0x97   : > { %909 = vmatpush.bf16.msra.mxu1 %v2885_v21 }
  0x98   : > { %822 = vmatpush.bf16.msra.mxu0 %v2877_v24 }
  0x99   : > { %996 = vmatpush.bf16.msra.mxu2 %v2893_v25 }
  0x9a   : > { %910 = vmatmul.bf16.vlgmr.msra.gmra.mxu1 %v745_v26 }
  0x9b   : > { %823 = vmatmul.bf16.vlgmr.msra.gmra.mxu0 %v745_v26 }
  0x9c   : > { %997 = vmatmul.bf16.vlgmr.msra.gmra.mxu2 %v745_v26 }
  0xaa   : > { %915 = vmatmul.bf16.gmra.mxu1 %v746_v29 }
  0xab   : > { %828 = vmatmul.bf16.gmra.mxu0 %v746_v29 }
  0xac   : > { %1002 = vmatmul.bf16.gmra.mxu2 %v746_v29 }
 0x117   : > { %v911_v30 = vpop.f32.mrf.mxu1 }
 0x118   : > { %v824_v31 = vpop.f32.mrf.mxu0  ;;  %v912_v33 = vadd.f32 %v3068_v32, %v911_v30 }
 0x119   : > { %v825_v40 = vadd.f32 %v3069_v34, %v824_v31 }
 0x11a   : > { %v1018_v38 = vpack.c.bf16 %v912_v33, %v912_v33  ;;  %v3505_v33 = vmov 0.0  }
 0x11b   : > { %v1014_v46 = vpack.c.bf16 %v825_v40, %v825_v40  ;;  %v1009_v40 = vld [vmem:[%s3792_s19 + $0x1] sm:$0x1] }
 0x11c   : > { %v1033_v43 = vunpack.c.l.b16 %v1018_v38  ;;  %vm1011_vm3 = vcmp.eq.f32.partialorder %v1009_v40, 0.0 }
 0x11d   : > { %v1028_v53 = vunpack.c.l.b16 %v1014_v46 }
 0x11f   : > { %v998_v35 = vpop.f32.mrf.mxu2  ;;  %v913_v36 = vpop.f32.mrf.mxu1 }
 0x120   : > { %v826_v37 = vpop.f32.mrf.mxu0  ;;  %v914_v39 = vadd.f32 %v3068_v32, %v913_v36  ;;  %v999_v50 = vadd.f32 %v3070_v45, %v998_v35 }
 0x121   : > { %v827_v42 = vadd.f32 %v3069_v34, %v826_v37 }
 0x122   : > { %v1019_v41 = vpack.c.bf16 %v914_v39, %v914_v39  ;;  %v1022_v55 = vpack.c.bf16 %v999_v50, %v999_v50 }
 0x123   : > { %v1015_v48 = vpack.c.bf16 %v827_v42, %v827_v42 }
 0x124   : > { %v1034_v44 = vunpack.c.l.b16 %v1019_v41  ;;  %v1149_v58 = vunpack.c.l.b16 %v1022_v55 }
 0x125   : > { %v1029_v54 = vunpack.c.l.b16 %v1015_v48 }
 0x126   : > { %v3827_v47 = vpack.c.b16 %v1034_v44, %v1033_v43  ;;  %v1013_v43 = vsel %vm1011_vm3, -1e+10, %v3505_v33 }
 0x127   : > { %v1000_v49 = vpop.f32.mrf.mxu2  ;;  %v3833_v57 = vpack.c.b16 %v1029_v54, %v1028_v53  ;;  %v916_v61 = vpop.f32.mrf.mxu1  ;;  %v3886_v48 = vperm.slane %v1013_v43, 0 }
 0x128   : > { %1214 = vrot.lane.b32.xlu0 %v3827_v47, %s3503_s29  ;;  %v1041_v51 = vsel %vm1036_vm0, %v3827_v47, 0  ;;  %v1001_v52 = vadd.f32 %v3070_v45, %v1000_v49  ;;  %v917_v62 = vadd.f32 %v3068_v32, %v916_v61  ;;  %v829_v0 = vpop.f32.mrf.mxu0 }
 0x129   : > { %1050 = vmatpush.bf16.xpose.msra.mxu3 %v1041_v51  ;;  %v830_v7 = vadd.f32 %v3069_v34, %v829_v0 }
 0x12a   : > { %v1023_v56 = vpack.c.bf16 %v1001_v52, %v1001_v52  ;;  %v1020_v63 = vpack.c.bf16 %v917_v62, %v917_v62 }
 0x12b   : > { %v1016_v11 = vpack.c.bf16 %v830_v7, %v830_v7 }
 0x12c   : > { %v1150_v59 = vunpack.c.l.b16 %v1023_v56  ;;  %v1064_v3 = vunpack.c.l.b16 %v1020_v63 }
 0x12d   : > { %v1059_v13 = vunpack.c.l.b16 %v1016_v11 }
 0x12e   : > { %v3839_v60 = vpack.c.b16 %v1150_v59, %v1149_v58 }
 0x12f   : > { %v918_v1 = vpop.f32.mrf.mxu1  ;;  %v1003_v18 = vpop.f32.mrf.mxu2 }
 0x130   : > { %1212 = vrot.lane.b32.xlu0 %v3833_v57, %s3503_s29  ;;  %2685 = vmatmul.msk.bf16.vlgmr.msra.gmra.mxu3 %vm1036_vm0, %v3833_v57  ;;  %v919_v2 = vadd.f32 %v3068_v32, %v918_v1  ;;  %v831_v8 = vpop.f32.mrf.mxu0  ;;  %v1004_v20 = vadd.f32 %v3070_v45, %v1003_v18  ;;  %v1008_v32 = vld [vmem:[%s3792_s19] sm:$0x1]  ;;  %s4248_s19 = sld [smem:[#allocation37_spill]] }
 0x131   : > { %v832_v9 = vadd.f32 %v3069_v34, %v831_v8  ;;  %vm1010_vm1 = vcmp.eq.f32.partialorder %v1008_v32, 0.0 }
 0x132   : > { %v1021_v4 = vpack.c.bf16 %v919_v2, %v919_v2  ;;  %v1024_v21 = vpack.c.bf16 %v1004_v20, %v1004_v20  ;;  %v1012_v34 = vsel %vm1010_vm1, -1e+10, %v3505_v33  ;;  %v2902_v2 = vld [vmem:[#allocation11 + $0x8] sm:$0xff] }
 0x133   : > { %v1017_v12 = vpack.c.bf16 %v832_v9, %v832_v9  ;;  %v3865_v37 = vperm.slane %v1012_v34, 0 }
 0x134   : > { %v1065_v5 = vunpack.c.l.b16 %v1021_v4  ;;  %v1177_v25 = vunpack.c.l.b16 %v1024_v21 }
 0x135   : > { %v1060_v14 = vunpack.c.l.b16 %v1017_v12 }
 0x136   : > { %v3847_v6 = vpack.c.b16 %v1065_v5, %v1064_v3  ;;  %v2901_v3 = vld [vmem:[#allocation11] sm:$0xff] }
 0x137   : > { %v3854_v15 = vpack.c.b16 %v1060_v14, %v1059_v13  ;;  %v1005_v22 = vpop.f32.mrf.mxu2 }
 0x138   : > { %1313 = vrot.lane.b32.xlu0 %v3839_v60, %s3503_s29  ;;  %v1071_v10 = vsel %vm1036_vm0, %v3847_v6, 0  ;;  %1238 = vrot.lane.b32.xlu1 %v3847_v6, %s3503_s29  ;;  %v1006_v24 = vadd.f32 %v3070_v45, %v1005_v22 }
 0x139   : > { %1080 = vmatpush.bf16.xpose.msrb.mxu3 %v1071_v10 }
 0x13a   : > { %v1025_v26 = vpack.c.bf16 %v1006_v24, %v1006_v24 }
 0x13c   : > { %v1178_v27 = vunpack.c.l.b16 %v1025_v26 }
 0x13e   : > { %v3860_v28 = vpack.c.b16 %v1178_v27, %v1177_v25 }
 0x140   : > { %1449 = vrot.lane.b32.xlu0 %v3827_v47, %s3504_s18  ;;  %2686 = vmatmul.msk.bf16.vlgmr.msrb.gmra.mxu3 %vm1036_vm0, %v3854_v15 }
 0x141   : > { %1163 = vmatpush.bf16.msra.mxu3 %v3839_v60 }
 0x145   : > { %1191 = vmatpush.bf16.msrb.mxu3 %v3860_v28 }
 0x148   : > { %1447 = vrot.lane.b32.xlu0 %v3833_v57, %s3504_s18 }
 0x19a   : > { %v1215_v16 = vpop.permute.xlu0 %1214 }
 0x19b   : > { %v1220_v17 = vsel %vm1036_vm0, %v1215_v16, 0 }
 0x19c   : > { %1229 = vmatpush.bf16.xpose.msrb.mxu0 %v1220_v17 }
 0x1a2   : > { %v1213_v19 = vpop.permute.xlu0 %1212 }
 0x1a3   : > { %2689 = vmatmul.msk.bf16.vlgmr.msrb.gmra.mxu0 %vm1036_vm0, %v1213_v19 }
 0x1aa   : > { %v1314_v23 = vpop.permute.xlu0 %1313  ;;  %v1239_v63 = vpop.permute.xlu1 %1238 }
 0x1ab   : > { %1326 = vmatpush.bf16.msrb.mxu2 %v1314_v23  ;;  %v1244_v0 = vsel %vm1036_vm0, %v1239_v63, 0 }
 0x1ac   : > { %1253 = vmatpush.bf16.xpose.msrb.mxu1 %v1244_v0 }
 0x1b2   : > { %v1450_v29 = vpop.permute.xlu0 %1449 }
 0x1b3   : > { %v1455_v30 = vsel %vm1036_vm0, %v1450_v29, 0  ;;  %v1052_v31 = vpop.f32.mrf.mxu3 }
 0x1b4   : > { %1464 = vmatpush.bf16.xpose.msra.mxu2 %v1455_v30  ;;  %v1087_v59 = vmul.f32 0.17677669, %v1052_v31  ;;  %1434 = vmatpush.bf16.msra.mxu1 %v2902_v2 }
 0x1b6   : > { %v1097_v61 = vadd.f32 %v3865_v37, %v1087_v59 }
 0x1b8   : > { %v1102_v62 = vsel %vm1101_vm2, %v1097_v61, -inf  ;;  %1435 = vmatpush.bf16.msra.mxu1 %v2901_v3 }
 0x1ba   : > { %v1448_v1 = vpop.permute.xlu0 %1447 }
 0x1bb   : > { %v1054_v35 = vpop.f32.mrf.mxu3 }
 0x1bc   : > { %v1088_v36 = vmul.f32 0.17677669, %v1054_v35 }
 0x1be   : > { %v3868_v38 = vadd.f32 %v3865_v37, %v1088_v36 }
 0x1c0   : > { %v1105_v39 = vsel %vm1101_vm2, %v3868_v38, -inf }
 0x1c1   : > { %1106 = vmax.xlane.f32.xlu0 %v1105_v39 }
 0x1c3   : > { %v1082_v41 = vpop.f32.mrf.mxu3 }
 0x1c4   : > { %v1089_v46 = vmul.f32 0.17677669, %v1082_v41 }
 0x1c6   : > { %v3890_v49 = vadd.f32 %v3886_v48, %v1089_v46 }
 0x1c8   : > { %v1108_v54 = vsel %vm1101_vm2, %v3890_v49, -inf }
 0x1cb   : > { %v1084_v51 = vpop.f32.mrf.mxu3 }
 0x1cc   : > { %v1090_v55 = vmul.f32 0.17677669, %v1084_v51 }
 0x1d5   : > { %1338 = vrot.lane.b32.xlu0 %v3860_v28, %s3503_s29 }
 0x1dd   : > { %1471 = vrot.lane.b32.xlu0 %v3854_v15, %s3504_s18 }
 0x1e5   : > { %1651 = vrot.lane.b32.xlu0 %v3827_v47, %s3506_s27 }
 0x1ed   : > { %1649 = vrot.lane.b32.xlu0 %v3833_v57, %s3506_s27  ;;  %v1100_v57 = vadd.f32 %v3886_v48, %v1090_v55 }
 0x1ef   : > { %v1111_v58 = vsel %vm1101_vm2, %v1100_v57, -inf }
 0x1f5   : > { %1675 = vrot.lane.b32.xlu0 %v3847_v6, %s3506_s27 }
 0x1fd   : > { %1673 = vrot.lane.b32.xlu0 %v3854_v15, %s3506_s27 }
 0x220   : > { %v1231_v42 = vpop.f32.mrf.mxu0 }
 0x221   : > { %v1260_v44 = vmul.f32 0.17677669, %v1231_v42 }
 0x223   : > { %v1264_v45 = vadd.f32 %v1260_v44, %v3865_v37 }
 0x225   : > { %v1268_v47 = vsel %vm1101_vm2, %v1264_v45, -inf }
 0x226   : > { %1269 = vmax.xlane.f32.xlu1 %v1268_v47 }
 0x228   : > { %v1233_v50 = vpop.f32.mrf.mxu0 }
 0x229   : > { %v1261_v52 = vmul.f32 0.17677669, %v1233_v50 }
 0x22b   : > { %v1265_v53 = vadd.f32 %v1261_v52, %v3865_v37 }
 0x22d   : > { %v1271_v56 = vsel %vm1101_vm2, %v1265_v53, -inf }
 0x22e   : > { %1272 = vmax.xlane.f32.xlu2 %v1271_v56  ;;  %1109 = vmax.xlane.f32.xlu1 %v1108_v54 }
 0x234   : > { %v1107_v4 = vpop.xlane.xlu0 %1106 }
 0x235   : > { %v1115_v24 = vsub.f32 %v3868_v38, %v1107_v4 }
 0x236   : > { %1112 = vmax.xlane.f32.xlu1 %v1111_v58 }
 0x237   : > { %v1120_v26 = vmul.f32 1.442695, %v1115_v24 }
 0x246   : > { %1236 = vrot.lane.b32.xlu2 %v3854_v15, %s3503_s29 }
 0x247   : > { %v1339_v5 = vpop.permute.xlu0 %1338 }
 0x24f   : > { %v3903_v9 = vpop.permute.xlu0 %1471 }
 0x257   : > { %v1652_v14 = vpop.permute.xlu0 %1651 }
 0x258   : > { %v1657_v17 = vsel %vm1036_vm0, %v1652_v14, 0 }
 0x26f   : > { %1103 = vmax.xlane.f32.xlu2 %v1102_v62 }
 0x299   : > { %v1270_v7 = vpop.xlane.xlu1 %1269 }
 0x29a   : > { %v1280_v8 = vsub.f32 %v1264_v45, %v1270_v7 }
 0x29c   : > { %v1284_v10 = vmul.f32 1.442695, %v1280_v8 }
 0x29e   : > { %3077 = vpow2.f32 %v1284_v10 }
 0x2a1   : > { %v1273_v11 = vpop.xlane.xlu2 %1272  ;;  %v1110_v25 = vpop.xlane.xlu1 %1109 }
 0x2a2   : > { %v1281_v12 = vsub.f32 %v1265_v53, %v1273_v11  ;;  %v1116_v34 = vsub.f32 %v3890_v49, %v1110_v25 }
 0x2a4   : > { %v1286_v13 = vmul.f32 1.442695, %v1281_v12  ;;  %v3905_v15 = vpop.eup %3077  ;;  %v1122_v41 = vmul.f32 1.442695, %v1116_v34 }
 0x2a5   : > { %v1304_v18 = vpack.c.bf16 %v3905_v15, %v3905_v15 }
 0x2a6   : > { %3079 = vpow2.f32 %v1286_v13 }
 0x2a7   : > { %v1310_v21 = vunpack.c.l.b16 %v1304_v18  ;;  %3081 = vpow2.f32 %v1120_v26 }
 0x2a9   : > { %v1237_v16 = vpop.permute.xlu2 %1236  ;;  %v1113_v31 = vpop.xlane.xlu1 %1112 }
 0x2aa   : > { %2690 = vmatmul.msk.bf16.vlgmr.msrb.gmra.mxu1 %vm1036_vm0, %v1237_v16  ;;  %v1117_v33 = vsub.f32 %v1100_v57, %v1113_v31 }
 0x2ab   : > { %1666 = vmatpush.bf16.xpose.msrb.mxu1 %v1657_v17 }
 0x2ac   : > { %v3911_v19 = vpop.eup %3079  ;;  %v1124_v39 = vmul.f32 1.442695, %v1117_v33 }
 0x2ad   : > { %v1305_v20 = vpack.c.bf16 %v3911_v19, %v3911_v19  ;;  %v3082_v32 = vpop.eup %3081 }
 0x2ae   : > { %v1139_v35 = vpack.c.bf16 %v3082_v32, %v3082_v32  ;;  %v1129_v63 = vsel %vm1101_vm2, %v3082_v32, 0.0 }
 0x2af   : > { %v1311_v22 = vunpack.c.l.b16 %v1305_v20 }
 0x2b0   : > { %v1145_v42 = vunpack.c.l.b16 %v1139_v35 }
 0x2b1   : > { %v1312_v23 = vpack.c.b16 %v1311_v22, %v1310_v21 }
 0x2b3   : > { %2691 = vmatmul.msk.bf16.vlgmr.msrb.gmra.mxu2 %vm1101_vm2, %v1312_v23 }
 0x2c3   : > { %2713 = vmatmul.msk.bf16.vlgmr.msra.gmra.mxu2 %vm1036_vm0, %v1448_v1 }
 0x2e2   : > { %v1104_v27 = vpop.xlane.xlu2 %1103 }
 0x2e3   : > { %v1114_v29 = vsub.f32 %v1097_v61, %v1104_v27 }
 0x2e5   : > { %v1118_v30 = vmul.f32 1.442695, %v1114_v29 }
 0x2e7   : > { %3083 = vpow2.f32 %v1118_v30 }
 0x2e8   : > { %3085 = vpow2.f32 %v1124_v39 }
 0x2e9   : > { %3087 = vpow2.f32 %v1122_v41 }
 0x2ed   : > { %v3084_v36 = vpop.eup %3083 }
 0x2ee   : > { %v1138_v40 = vpack.c.bf16 %v3084_v36, %v3084_v36  ;;  %v3086_v44 = vpop.eup %3085  ;;  %v1126_v61 = vsel %vm1101_vm2, %v3084_v36, 0.0 }
 0x2ef   : > { %v3088_v45 = vpop.eup %3087  ;;  %v1141_v46 = vpack.c.bf16 %v3086_v44, %v3086_v44  ;;  %v1135_v4 = vsel %vm1101_vm2, %v3086_v44, 0.0 }
 0x2f0   : > { %v1144_v43 = vunpack.c.l.b16 %v1138_v40  ;;  %v1140_v47 = vpack.c.bf16 %v3088_v45, %v3088_v45  ;;  %v1132_v1 = vsel %vm1101_vm2, %v3088_v45, 0.0 }
 0x2f1   : > { %v1173_v50 = vunpack.c.l.b16 %v1141_v46  ;;  %v1650_v46 = vpop.permute.xlu0 %1649 }
 0x2f2   : > { %v1146_v38 = vpack.c.b16 %v1145_v42, %v1144_v43  ;;  %v1172_v51 = vunpack.c.l.b16 %v1140_v47 }
 0x2f4   : > { %2687 = vmatmul.msk.bf16.vlgmr.msra.gmra.mxu3 %vm1101_vm2, %v1146_v38  ;;  %v1174_v49 = vpack.c.b16 %v1173_v50, %v1172_v51 }
 0x2f5   : > { %1351 = vmatpush.bf16.msra.mxu3 %v1339_v5 }
 0x304   : > { %2688 = vmatmul.msk.bf16.vlgmr.msrb.gmra.mxu3 %vm1101_vm2, %v1174_v49 }
 0x327   : > { %v1255_v52 = vpop.f32.mrf.mxu1 }
 0x328   : > { %v1262_v53 = vmul.f32 0.17677669, %v1255_v52  ;;  %v1676_v52 = vpop.permute.xlu0 %1675 }
 0x32a   : > { %v1266_v54 = vadd.f32 %v1262_v53, %v3886_v48 }
 0x32c   : > { %v1274_v55 = vsel %vm1101_vm2, %v1266_v54, -inf }
 0x32d   : > { %1275 = vmax.xlane.f32.xlu1 %v1274_v55 }
 0x32f   : > { %v1257_v56 = vpop.f32.mrf.mxu1 }
 0x330   : > { %v1263_v57 = vmul.f32 0.17677669, %v1257_v56 }
 0x332   : > { %v1267_v58 = vadd.f32 %v1263_v57, %v3886_v48 }
 0x334   : > { %v1277_v59 = vsel %vm1101_vm2, %v1267_v58, -inf }
 0x335   : > { %1278 = vmax.xlane.f32.xlu2 %v1277_v59  ;;  %1127 = vadd.xlane.f32.xlu1 %v1126_v61 }
 0x336   : > { %v3926_v62 = vpop.f32.mrf.mxu2 }
 0x33d   : > { %1130 = vadd.xlane.f32.xlu2 %v1129_v63 }
 0x33e   : > { %v3929_v0 = vpop.f32.mrf.mxu2 }
 0x345   : > { %1133 = vadd.xlane.f32.xlu2 %v1132_v1 }
 0x346   : > { %v1466_v2 = vpop.f32.mrf.mxu2 }
 0x347   : > { %v1495_v3 = vmul.f32 0.17677669, %v1466_v2 }
 0x349   : > { %v3936_v5 = vadd.f32 %v1495_v3, %v3865_v37 }
 0x34b   : > { %v1503_v7 = vsel %vm1101_vm2, %v3936_v5, -inf }
 0x34d   : > { %1136 = vadd.xlane.f32.xlu2 %v1135_v4 }
 0x34e   : > { %1473 = vrot.lane.b32.xlu1 %v3847_v6, %s3504_s18  ;;  %v1468_v8 = vpop.f32.mrf.mxu2 }
 0x34f   : > { %v1496_v10 = vmul.f32 0.17677669, %v1468_v8 }
 0x351   : > { %v1500_v11 = vadd.f32 %v1496_v10, %v3865_v37 }
 0x353   : > { %v1506_v12 = vsel %vm1101_vm2, %v1500_v11, -inf }
 0x355   : > { %1504 = vmax.xlane.f32.xlu2 %v1503_v7 }
 0x36d   : > { %1548 = vrot.lane.b32.xlu2 %v3839_v60, %s3504_s18 }
 0x377   : > { %v1165_v17 = vpop.f32.mrf.mxu3 }
 0x378   : > { %1507 = vmax.xlane.f32.xlu1 %v1506_v12 }
 0x37f   : > { %v1167_v26 = vpop.f32.mrf.mxu3 }
 0x387   : > { %v1193_v40 = vpop.f32.mrf.mxu3 }
 0x38f   : > { %v1195_v45 = vpop.f32.mrf.mxu3 }
 0x391   : > { %1573 = vrot.lane.b32.xlu1 %v3860_v28, %s3504_s18 }
 0x3a0   : > { %v1276_v6 = vpop.xlane.xlu1 %1275 }
 0x3a1   : > { %v1282_v13 = vsub.f32 %v1266_v54, %v1276_v6  ;;  %v1681_v54 = vsel %vm1036_vm0, %v1676_v52, 0 }
 0x3a3   : > { %v1288_v14 = vmul.f32 1.442695, %v1282_v13 }
 0x3a5   : > { %3089 = vpow2.f32 %v1288_v14 }
 0x3a8   : > { %v1279_v16 = vpop.xlane.xlu2 %1278  ;;  %v1128_v21 = vpop.xlane.xlu1 %1127 }
 0x3a9   : > { %v1283_v18 = vsub.f32 %v1267_v58, %v1279_v16 }
 0x3ab   : > { %v1290_v20 = vmul.f32 1.442695, %v1283_v18  ;;  %v3946_v22 = vpop.eup %3089 }
 0x3ac   : > { %v1306_v24 = vpack.c.bf16 %v3946_v22, %v3946_v22 }
 0x3ad   : > { %3091 = vpow2.f32 %v1290_v20 }
 0x3ae   : > { %3093 = vrcp.f32 %v1128_v21  ;;  %v1335_v30 = vunpack.c.l.b16 %v1306_v24 }
 0x3b0   : > { %v1131_v23 = vpop.xlane.xlu2 %1130 }
 0x3b1   : > { %3095 = vrcp.f32 %v1131_v23 }
 0x3b3   : > { %v3950_v25 = vpop.eup %3091 }
 0x3b4   : > { %v1307_v27 = vpack.c.bf16 %v3950_v25, %v3950_v25  ;;  %v3094_v29 = vpop.eup %3093 }
 0x3b5   : > { %v1202_v34 = vmul.f32 %v3094_v29, %v1165_v17 }
 0x3b6   : > { %v1336_v31 = vunpack.c.l.b16 %v1307_v27 }
 0x3b7   : > { %v3096_v32 = vpop.eup %3095 }
 0x3b8   : > { %v1337_v33 = vpack.c.b16 %v1336_v31, %v1335_v30  ;;  %v1203_v35 = vmul.f32 %v3096_v32, %v1167_v26  ;;  %v1134_v36 = vpop.xlane.xlu2 %1133 }
 0x3b9   : > { %3097 = vrcp.f32 %v1134_v36  ;;  %v1298_v36 = vsel %vm1101_vm2, %v3946_v22, 0.0  ;;  %v1292_v22 = vsel %vm1101_vm2, %v3905_v15, 0.0 }
 0x3ba   : > { %v1206_v39 = vpack.c.bf16 %v1203_v35, %v1202_v34  ;;  %2692 = vmatmul.msk.bf16.vlgmr.msra.gmra.mxu3 %vm1101_vm2, %v1337_v33  ;;  %v1295_v34 = vsel %vm1101_vm2, %v3911_v19, 0.0 }
 0x3bc   : > { %2711 = vmatmul.msk.bf16.vlgmr.msra.gmra.mxu1 %vm1036_vm0, %v1206_v39 }
 0x3bf   : > { %v3098_v38 = vpop.eup %3097 }
 0x3c0   : > { %v1137_v41 = vpop.xlane.xlu2 %1136  ;;  %v1474_v42 = vpop.permute.xlu1 %1473  ;;  %v1204_v50 = vmul.f32 %v3098_v38, %v1193_v40 }
 0x3c1   : > { %3099 = vrcp.f32 %v1137_v41  ;;  %v1479_v43 = vsel %vm1036_vm0, %v1474_v42, 0 }
 0x3c2   : > { %1488 = vmatpush.bf16.xpose.msrb.mxu3 %v1479_v43 }
 0x3c7   : > { %v3100_v44 = vpop.eup %3099 }
 0x3c8   : > { %v1505_v47 = vpop.xlane.xlu2 %1504  ;;  %v1205_v51 = vmul.f32 %v3100_v44, %v1195_v45 }
 0x3c9   : > { %v1515_v55 = vsub.f32 %v3936_v5, %v1505_v47  ;;  %v1674_v5 = vpop.permute.xlu0 %1673 }
 0x3ca   : > { %2714 = vmatmul.msk.bf16.vlgmr.msrb.gmra.mxu3 %vm1036_vm0, %v3903_v9  ;;  %v1207_v49 = vpack.c.bf16 %v1205_v51, %v1204_v50 }
 0x3cb   : > { %v1519_v56 = vmul.f32 1.442695, %v1515_v55 }
 0x3cc   : > { %2712 = vmatmul.msk.bf16.gmra.mxu1 %vm1036_vm0, %v1207_v49 }
 0x3cd   : > { %3101 = vpow2.f32 %v1519_v56 }
 0x3d0   : > { %v1549_v53 = vpop.permute.xlu2 %1548 }
 0x3d1   : > { %1561 = vmatpush.bf16.msrb.mxu2 %v1549_v53 }
 0x3d3   : > { %v3102_v9 = vpop.eup %3101 }
 0x3d4   : > { %v1539_v61 = vpack.c.bf16 %v3102_v9, %v3102_v9  ;;  %v1527_v45 = vsel %vm1101_vm2, %v3102_v9, 0.0 }
 0x3d5   : > { %1690 = vmatpush.bf16.xpose.msra.mxu2 %v1681_v54 }
 0x3d6   : > { %v1545_v2 = vunpack.c.l.b16 %v1539_v61 }
 0x3dc   : > { %2727 = vmatmul.msk.bf16.vlgmr.msrb.gmra.mxu1 %vm1036_vm0, %v1650_v46 }
 0x3eb   : > { %v1508_v57 = vpop.xlane.xlu1 %1507 }
 0x3ec   : > { %v1516_v58 = vsub.f32 %v1500_v11, %v1508_v57 }
 0x3ee   : > { %v1521_v59 = vmul.f32 1.442695, %v1516_v58 }
 0x3f0   : > { %3103 = vpow2.f32 %v1521_v59 }
 0x3f6   : > { %v3963_v63 = vpop.eup %3103 }
 0x3f7   : > { %v1540_v1 = vpack.c.bf16 %v3963_v63, %v3963_v63 }
 0x3f9   : > { %v1546_v3 = vunpack.c.l.b16 %v1540_v1 }
 0x3fb   : > { %v1547_v4 = vpack.c.b16 %v1546_v3, %v1545_v2  ;;  %v1301_v3 = vsel %vm1101_vm2, %v3950_v25, 0.0  ;;  %v1530_v25 = vsel %vm1101_vm2, %v3963_v63, 0.0 }
 0x3fd   : > { %2715 = vmatmul.msk.bf16.vlgmr.msrb.gmra.mxu2 %vm1101_vm2, %v1547_v4 }
 0x403   : > { %v1574_v7 = vpop.permute.xlu1 %1573 }
 0x404   : > { %1586 = vmatpush.bf16.msra.mxu3 %v1574_v7 }
 0x40d   : > { %2728 = vmatmul.msk.bf16.vlgmr.msra.gmra.mxu2 %vm1036_vm0, %v1674_v5 }
 0x439   : > { %v3969_v8 = vpop.f32.mrf.mxu1 }
 0x43d   : > { %v3971_v10 = vpop.f32.mrf.mxu3 }
 0x441   : > { %v3973_v11 = vpop.f32.mrf.mxu1 }
 0x445   : > { %v3975_v12 = vpop.f32.mrf.mxu3 }
 0x449   : > { %v3977_v6 = vpop.f32.mrf.mxu1 }
 0x44d   : > { %v1490_v13 = vpop.f32.mrf.mxu3 }
 0x44e   : > { %v1497_v14 = vmul.f32 0.17677669, %v1490_v13 }
 0x450   : > { %v1501_v16 = vadd.f32 %v1497_v14, %v3886_v48 }
 0x451   : > { %v3980_v17 = vpop.f32.mrf.mxu1 }
 0x452   : > { %v1509_v18 = vsel %vm1101_vm2, %v1501_v16, -inf }
 0x453   : > { %1510 = vmax.xlane.f32.xlu2 %v1509_v18 }
 0x455   : > { %v1492_v20 = vpop.f32.mrf.mxu3 }
 0x456   : > { %v1498_v21 = vmul.f32 0.17677669, %v1492_v20 }
 0x458   : > { %v1502_v23 = vadd.f32 %v1498_v21, %v3886_v48 }
 0x459   : > { %v1668_v24 = vpop.f32.mrf.mxu1 }
 0x45a   : > { %v1697_v26 = vmul.f32 0.17677669, %v1668_v24  ;;  %v1512_v27 = vsel %vm1101_vm2, %v1502_v23, -inf  ;;  %v2903_v24 = vld [vmem:[#allocation11 + $0x10] sm:$0xff] }
 0x45b   : > { %1513 = vmax.xlane.f32.xlu0 %v1512_v27 }
 0x45c   : > { %v1701_v29 = vadd.f32 %v1697_v26, %v3865_v37 }
 0x45e   : > { %v1705_v30 = vsel %vm1101_vm2, %v1701_v29, -inf }
 0x45f   : > { %1706 = vmax.xlane.f32.xlu1 %v1705_v30 }
 0x461   : > { %v1670_v31 = vpop.f32.mrf.mxu1 }
 0x462   : > { %v1698_v32 = vmul.f32 0.17677669, %v1670_v31 }
 0x464   : > { %v1702_v33 = vadd.f32 %v1698_v32, %v3865_v37 }
 0x466   : > { %v1708_v35 = vsel %vm1101_vm2, %v1702_v33, -inf }
 0x467   : > { %1296 = vadd.xlane.f32.xlu1 %v1295_v34  ;;  %1709 = vmax.xlane.f32.xlu2 %v1708_v35 }
 0x46f   : > { %1299 = vadd.xlane.f32.xlu1 %v1298_v36  ;;  %1750 = vrot.lane.b32.xlu0 %v3839_v60, %s3506_s27 }
 0x480   : > { %v3995_v39 = vpop.f32.mrf.mxu2 }
 0x488   : > { %v3997_v40 = vpop.f32.mrf.mxu2 }
 0x490   : > { %v1692_v41 = vpop.f32.mrf.mxu2 }
 0x491   : > { %v1699_v37 = vmul.f32 0.17677669, %v1692_v41 }
 0x493   : > { %v4000_v42 = vadd.f32 %v1699_v37, %v3886_v48 }
 0x495   : > { %v1711_v19 = vsel %vm1101_vm2, %v4000_v42, -inf }
 0x496   : > { %1712 = vmax.xlane.f32.xlu2 %v1711_v19 }
 0x498   : > { %v1694_v43 = vpop.f32.mrf.mxu2 }
 0x499   : > { %v1700_v38 = vmul.f32 0.17677669, %v1694_v43  ;;  %1293 = vadd.xlane.f32.xlu0 %v1292_v22 }
 0x49b   : > { %v4007_v60 = vadd.f32 %v1700_v38, %v3886_v48 }
 0x49d   : > { %v1714_v44 = vsel %vm1101_vm2, %v4007_v60, -inf }
 0x49e   : > { %1715 = vmax.xlane.f32.xlu2 %v1714_v44 }
 0x4a1   : > { %1528 = vadd.xlane.f32.xlu0 %v1527_v45 }
 0x4b6   : > { %1775 = vrot.lane.b32.xlu2 %v3860_v28, %s3506_s27  ;;  %s4251_s27 = sld [smem:[#allocation41_spill]] }
 0x4c6   : > { %v1511_v46 = vpop.xlane.xlu2 %1510 }
 0x4c7   : > { %v1517_v47 = vsub.f32 %v1501_v16, %v1511_v46 }
 0x4c9   : > { %v1523_v50 = vmul.f32 1.442695, %v1517_v47 }
 0x4cb   : > { %3105 = vpow2.f32 %v1523_v50  ;;  %v2906_v50 = vld [vmem:[#allocation11 + $0x28] sm:$0xff] }
 0x4ce   : > { %v1514_v51 = vpop.xlane.xlu0 %1513 }
 0x4cf   : > { %v1518_v15 = vsub.f32 %v1502_v23, %v1514_v51  ;;  %v2904_v23 = vld [vmem:[#allocation11 + $0x18] sm:$0xff] }
 0x4d0   : > { %1397 = vmatpush.bf16.msra.mxu0 %v2904_v23 }
 0x4d1   : > { %v1525_v49 = vmul.f32 1.442695, %v1518_v15  ;;  %v3106_v53 = vpop.eup %3105  ;;  %v2905_v15 = vld [vmem:[#allocation11 + $0x20] sm:$0xff] }
 0x4d2   : > { %v1707_v52 = vpop.xlane.xlu1 %1706  ;;  %v1541_v55 = vpack.c.bf16 %v3106_v53, %v3106_v53 }
 0x4d3   : > { %3107 = vpow2.f32 %v1525_v49  ;;  %v1717_v48 = vsub.f32 %v1701_v29, %v1707_v52 }
 0x4d4   : > { %v1570_v59 = vunpack.c.l.b16 %v1541_v55  ;;  %1398 = vmatpush.bf16.msra.mxu0 %v2903_v24 }
 0x4d5   : > { %v1721_v54 = vmul.f32 1.442695, %v1717_v48  ;;  %v2908_v48 = vld [vmem:[#allocation11 + $0x38] sm:$0xff] }
 0x4d6   : > { %1834 = vmatpush.bf16.msrb.mxu2 %v2908_v48 }
 0x4d7   : > { %3109 = vpow2.f32 %v1721_v54 }
 0x4d8   : > { %1632 = vmatpush.bf16.msrb.mxu0 %v2906_v50 }
 0x4d9   : > { %v4014_v56 = vpop.eup %3107 }
 0x4da   : > { %v1542_v57 = vpack.c.bf16 %v4014_v56, %v4014_v56  ;;  %v1710_v28 = vpop.xlane.xlu2 %1709  ;;  %v1297_v26 = vpop.xlane.xlu1 %1296  ;;  %v1536_v47 = vsel %vm1101_vm2, %v4014_v56, 0.0 }
 0x4db   : > { %v1718_v58 = vsub.f32 %v1702_v33, %v1710_v28 }
 0x4dc   : > { %v1571_v9 = vunpack.c.l.b16 %v1542_v57  ;;  %1633 = vmatpush.bf16.msrb.mxu0 %v2905_v15 }
 0x4dd   : > { %v3110_v61 = vpop.eup %3109  ;;  %v1723_v1 = vmul.f32 1.442695, %v1718_v58  ;;  %v2907_v58 = vld [vmem:[#allocation11 + $0x30] sm:$0xff] }
 0x4de   : > { %v1572_v2 = vpack.c.b16 %v1571_v9, %v1570_v59  ;;  %v1729_v4 = vsel %vm1101_vm2, %v3110_v61, 0.0  ;;  %v1741_v16 = vpack.c.bf16 %v3110_v61, %v3110_v61  ;;  %1835 = vmatpush.bf16.msrb.mxu2 %v2907_v58  ;;  %v3161_v58 = vld [vmem:[%s3784_s20 + $0x10] sm:$0xff] }
 0x4df   : > { %3111 = vpow2.f32 %v1723_v1  ;;  %1302 = vadd.xlane.f32.xlu2 %v1301_v3  ;;  %1730 = vadd.xlane.f32.xlu1 %v1729_v4 }
 0x4e0   : > { %2716 = vmatmul.msk.bf16.vlgmr.msra.gmra.mxu3 %vm1101_vm2, %v1572_v2  ;;  %v1747_v20 = vunpack.c.l.b16 %v1741_v16  ;;  %3113 = vrcp.f32 %v1297_v26 }
 0x4e1   : > { %v1751_v7 = vpop.permute.xlu0 %1750 }
 0x4e2   : > { %1763 = vmatpush.bf16.msrb.mxu3 %v1751_v7  ;;  %v1300_v51 = vpop.xlane.xlu1 %1299 }
 0x4e5   : > { %v3112_v5 = vpop.eup %3111 }
 0x4e6   : > { %v1742_v13 = vpack.c.bf16 %v3112_v5, %v3112_v5  ;;  %v1732_v14 = vsel %vm1101_vm2, %v3112_v5, 0.0  ;;  %v3114_v32 = vpop.eup %3113 }
 0x4e7   : > { %1733 = vadd.xlane.f32.xlu1 %v1732_v14  ;;  %v1363_v36 = vmul.f32 %v3114_v32, %v3929_v0 }
 0x4e8   : > { %v1748_v18 = vunpack.c.l.b16 %v1742_v13 }
 0x4ea   : > { %v1749_v21 = vpack.c.b16 %v1748_v18, %v1747_v20 }
 0x4ef   : > { %1531 = vadd.xlane.f32.xlu1 %v1530_v25 }
 0x4f0   : > { %2729 = vmatmul.msk.bf16.vlgmr.msrb.gmra.mxu3 %vm1101_vm2, %v1749_v21 }
 0x509   : > { %v1713_v27 = vpop.xlane.xlu2 %1712 }
 0x50a   : > { %v1719_v29 = vsub.f32 %v4000_v42, %v1713_v27 }
 0x50c   : > { %v1725_v30 = vmul.f32 1.442695, %v1719_v29  ;;  %v1294_v31 = vpop.xlane.xlu0 %1293 }
 0x50d   : > { %3115 = vrcp.f32 %v1294_v31 }
 0x50e   : > { %3117 = vpow2.f32 %v1725_v30 }
 0x511   : > { %v1716_v33 = vpop.xlane.xlu2 %1715 }
 0x512   : > { %v1720_v63 = vsub.f32 %v4007_v60, %v1716_v33  ;;  %v1533_v60 = vsel %vm1101_vm2, %v3106_v53, 0.0 }
 0x513   : > { %v3116_v34 = vpop.eup %3115 }
 0x514   : > { %v3118_v35 = vpop.eup %3117  ;;  %v1362_v41 = vmul.f32 %v3116_v34, %v3926_v62  ;;  %v1727_v37 = vmul.f32 1.442695, %v1720_v63  ;;  %v1529_v59 = vpop.xlane.xlu0 %1528 }
 0x515   : > { %v1735_v19 = vsel %vm1101_vm2, %v3118_v35, 0.0  ;;  %v1743_v22 = vpack.c.bf16 %v3118_v35, %v3118_v35 }
 0x516   : > { %v1366_v43 = vpack.c.bf16 %v1363_v36, %v1362_v41  ;;  %3119 = vpow2.f32 %v1727_v37  ;;  %1736 = vadd.xlane.f32.xlu0 %v1735_v19 }
 0x517   : > { %v1772_v62 = vunpack.c.l.b16 %v1743_v22  ;;  %3121 = vrcp.f32 %v1300_v51 }
 0x518   : > { %2701 = vmatmul.msk.bf16.vlgmr.msra.gmra.mxu0 %vm1036_vm0, %v1366_v43 }
 0x519   : > { %v1776_v42 = vpop.permute.xlu2 %1775 }
 0x51a   : > { %1788 = vmatpush.bf16.msra.mxu1 %v1776_v42 }
 0x51c   : > { %v3120_v38 = vpop.eup %3119 }
 0x51d   : > { %v1744_v44 = vpack.c.bf16 %v3120_v38, %v3120_v38  ;;  %v1738_v45 = vsel %vm1101_vm2, %v3120_v38, 0.0  ;;  %v3122_v53 = vpop.eup %3121  ;;  %v3071_v38 = vld [vmem:[%s4190_s9] ss:$0 sm:$0xff] }
 0x51e   : > { %1534 = vadd.xlane.f32.xlu0 %v1533_v60  ;;  %1739 = vadd.xlane.f32.xlu1 %v1738_v45  ;;  %v1364_v57 = vmul.f32 %v3122_v53, %v3971_v10 }
 0x51f   : > { %v1773_v0 = vunpack.c.l.b16 %v1744_v44 }
 0x521   : > { %v1774_v46 = vpack.c.b16 %v1773_v0, %v1772_v62 }
 0x523   : > { %2730 = vmatmul.msk.bf16.vlgmr.msra.gmra.mxu1 %vm1101_vm2, %v1774_v46  ;;  %v3159_v46 = vld [vmem:[%s3784_s20] sm:$0xff] }
 0x526   : > { %1537 = vadd.xlane.f32.xlu1 %v1536_v47 }
 0x552   : > { %v1303_v49 = vpop.xlane.xlu2 %1302  ;;  %v1731_v52 = vpop.xlane.xlu1 %1730 }
 0x553   : > { %3123 = vrcp.f32 %v1303_v49 }
 0x554   : > { %3125 = vrcp.f32 %v1529_v59 }
 0x559   : > { %v3124_v54 = vpop.eup %3123 }
 0x55a   : > { %v1734_v55 = vpop.xlane.xlu1 %1733  ;;  %v1365_v28 = vmul.f32 %v3124_v54, %v3975_v12  ;;  %v3126_v1 = vpop.eup %3125 }
 0x55b   : > { %v1597_v3 = vmul.f32 %v3126_v1, %v3995_v39 }
 0x55c   : > { %v1367_v56 = vpack.c.bf16 %v1365_v28, %v1364_v57 }
 0x55e   : > { %2702 = vmatmul.msk.bf16.gmra.mxu0 %vm1036_vm0, %v1367_v56 }
 0x562   : > { %v1532_v9 = vpop.xlane.xlu1 %1531 }
 0x563   : > { %3127 = vrcp.f32 %v1532_v9  ;;  %v1588_v61 = vpop.f32.mrf.mxu3 }
 0x564   : > { %3129 = vrcp.f32 %v1731_v52 }
 0x565   : > { %3131 = vrcp.f32 %v1734_v55 }
 0x569   : > { %v3128_v2 = vpop.eup %3127 }
 0x56a   : > { %v1598_v4 = vmul.f32 %v3128_v2, %v3997_v40  ;;  %v3130_v5 = vpop.eup %3129 }
 0x56b   : > { %v1590_v7 = vpop.f32.mrf.mxu3  ;;  %v3132_v13 = vpop.eup %3131 }
 0x56c   : > { %v1601_v10 = vpack.c.bf16 %v1598_v4, %v1597_v3  ;;  %v3162_v3 = vld [vmem:[%s3784_s20 + $0x18] sm:$0xff] }
 0x56e   : > { %2725 = vmatmul.msk.bf16.vlgmr.msrb.gmra.mxu0 %vm1036_vm0, %v1601_v10 }
 0x573   : > { %v1765_v12 = vpop.f32.mrf.mxu3 }
 0x574   : > { %v1799_v16 = vmul.f32 %v3130_v5, %v1765_v12 }
 0x57b   : > { %v1767_v14 = vpop.f32.mrf.mxu3 }
 0x57c   : > { %v1800_v18 = vmul.f32 %v3132_v13, %v1767_v14 }
 0x57e   : > { %v1803_v20 = vpack.c.bf16 %v1800_v18, %v1799_v16 }
 0x580   : > { %2739 = vmatmul.msk.bf16.vlgmr.msrb.gmra.mxu2 %vm1036_vm0, %v1803_v20 }
 0x589   : > { %v1737_v21 = vpop.xlane.xlu0 %1736 }
 0x591   : > { %v1740_v25 = vpop.xlane.xlu1 %1739  ;;  %v1535_v39 = vpop.xlane.xlu0 %1534 }
 0x592   : > { %3133 = vrcp.f32 %v1535_v39 }
 0x595   : > { %v1400_v36 = vpop.f32.mrf.mxu0 }
 0x596   : > { %v1438_v42 = vadd.f32 %v3969_v8, %v1400_v36  ;;  %v3160_v8 = vld [vmem:[%s3784_s20 + $0x8] sm:$0xff]  ;;  %v2801_v36 = vld [vmem:[#allocation13 + $0x78] sm:$0xf0]  ;;  %s2407_s20 = scalar_lea.hbm %s4252_s26, %s2942_s24 }
 0x597   : > { %s2410_s25 = sshll.u32 %s2407_s20, 4  ;;  %s2411_s25 = int_to_ptr.hbm [resolvable:$true] %s2410_s25 }
 0x598   : > { %v3134_v23 = vpop.eup %3133 }
 0x599   : > { %v1538_v40 = vpop.xlane.xlu1 %1537  ;;  %v1599_v27 = vmul.f32 %v3134_v23, %v1588_v61 }
 0x59a   : > { %3135 = vrcp.f32 %v1538_v40 }
 0x59b   : > { %3137 = vrcp.f32 %v1737_v21 }
 0x59c   : > { %3139 = vrcp.f32 %v1740_v25 }
 0x59d   : > { %v1402_v41 = vpop.f32.mrf.mxu0 }
 0x59e   : > { %v1440_v0 = vadd.f32 %v3973_v11, %v1402_v41 }
 0x5a0   : > { %v3136_v24 = vpop.eup %3135  ;;  %v1790_v26 = vpop.f32.mrf.mxu1 }
 0x5a1   : > { %v1600_v29 = vmul.f32 %v3136_v24, %v1590_v7  ;;  %v3138_v31 = vpop.eup %3137  ;;  %v3507_v7 = vmov 128.0  }
 0x5a2   : > { %v3140_v32 = vpop.eup %3139  ;;  %v1801_v63 = vmul.f32 %v3138_v31, %v1790_v26  ;;  %3141 = vrcp.f32 %v3507_v7  ;;  %v2743_v7 = vld [vmem:[#allocation13] sm:$0xf] }
 0x5a3   : > { %v1602_v30 = vpack.c.bf16 %v1600_v29, %v1599_v27 }
 0x5a5   : > { %2726 = vmatmul.msk.bf16.gmra.mxu0 %vm1036_vm0, %v1602_v30 }
 0x5a8   : > { %v1792_v33 = vpop.f32.mrf.mxu1 }
 0x5a9   : > { %v1802_v34 = vmul.f32 %v3140_v32, %v1792_v33  ;;  %v2799_v33 = vld [vmem:[#allocation13 + $0x70] sm:$0xf] }
 0x5ab   : > { %v1804_v35 = vpack.c.bf16 %v1802_v34, %v1801_v63  ;;  %v2924_v63 = vld [vmem:[#allocation13 + $0x74] sm:$0xf0]  ;;  %v2923_v34 = vld [vmem:[#allocation13 + $0x74] sm:$0xf] }
 0x5ac   : > { %v2804_v41 = vor.u32 %v2923_v34, %v2801_v36 }
 0x5ad   : > { %2740 = vmatmul.msk.bf16.gmra.mxu2 %vm1036_vm0, %v1804_v35  ;;  %v2800_v35 = vor.u32 %v2924_v63, %v2799_v33 }
 0x5ae   : > { %2089 = vmatpush.bf16.msra.mxu3 %v2804_v41 }
 0x5af   : > { %2070 = vmatpush.bf16.msra.mxu0 %v2800_v35 }
 0x5db   : > { %v1405_v37 = vpop.f32.mrf.mxu0 }
 0x5dc   : > { %v1443_v53 = vadd.f32 %v3977_v6, %v1405_v37  ;;  %v3142_v6 = vpop.eup %3141  ;;  %v2791_v37 = vld [vmem:[#allocation13 + $0x60] sm:$0xf] }
 0x5dd   : > { %v1872_v10 = vmul.f32 128.0, %v3142_v6  ;;  %vm1876_vm4 = vweird.f32 %v3142_v6 }
 0x5df   : > { %v1873_v12 = vsub.f32 1.0, %v1872_v10 }
 0x5e1   : > { %v1874_v5 = vmul.f32 %v3142_v6, %v1873_v12 }
 0x5e3   : > { %v1407_v19 = vpop.f32.mrf.mxu0  ;;  %v1875_v13 = vadd.f32 %v3142_v6, %v1874_v5  ;;  %v2909_v5 = vld [vmem:[#allocation13 + $0x4] sm:$0xf] }
 0x5e4   : > { %v1445_v56 = vadd.f32 %v3980_v17, %v1407_v19  ;;  %v2922_v19 = vld [vmem:[#allocation13 + $0x64] sm:$0xf0] }
 0x5e5   : > { %v4057_v14 = vsel %vm1876_vm4, %v3142_v6, %v1875_v13  ;;  %v2910_v6 = vld [vmem:[#allocation13 + $0x4] sm:$0xf0]  ;;  %v2745_v13 = vld [vmem:[#allocation13 + $0x8] sm:$0xf0] }
 0x5eb   : > { %v1635_v43 = vpop.f32.mrf.mxu0 }
 0x5ec   : > { %v1645_v22 = vadd.f32 %v1635_v43, %v1438_v42  ;;  %v2921_v43 = vld [vmem:[#allocation13 + $0x64] sm:$0xf]  ;;  %v2792_v42 = vor.u32 %v2922_v19, %v2791_v37 }
 0x5ee   : > { %2071 = vmatpush.bf16.msra.mxu0 %v2792_v42 }
 0x5f3   : > { %v1637_v62 = vpop.f32.mrf.mxu0 }
 0x5f4   : > { %v1646_v50 = vadd.f32 %v1637_v62, %v1440_v0  ;;  %v2785_v0 = vld [vmem:[#allocation13 + $0x58] sm:$0xf0] }
 0x603   : > { %v1837_v44 = vpop.f32.mrf.mxu2 }
 0x604   : > { %v1847_v60 = vadd.f32 %v1837_v44, %v1645_v22  ;;  %v2793_v22 = vld [vmem:[#allocation13 + $0x68] sm:$0xf0]  ;;  %v2783_v44 = vld [vmem:[#allocation13 + $0x50] sm:$0xf] }
 0x606   : > { %v1855_v45 = vadd.f32 %v3071_v38, %v1847_v60  ;;  %v2920_v60 = vld [vmem:[#allocation13 + $0x54] sm:$0xf0] }
 0x607   : > { %v2784_v62 = vor.u32 %v2920_v60, %v2783_v44  ;;  %v3073_v60 = vld [vmem:[%s4196_s15] ss:$0 sm:$0xff] }
 0x608   : > { %v1859_v47 = vadd.f32 %v3159_v46, %v1855_v45  ;;  %v2919_v45 = vld [vmem:[#allocation13 + $0x54] sm:$0xf] }
 0x609   : > { %v2788_v46 = vor.u32 %v2919_v45, %v2785_v0  ;;  %2072 = vmatpush.bf16.msra.mxu0 %v2784_v62 }
 0x60a   : > { %1863 = vadd.xlane.f32.xlu2 %v1859_v47 }
 0x60b   : > { %v1839_v51 = vpop.f32.mrf.mxu2 }
 0x60c   : > { %v1848_v15 = vadd.f32 %v1839_v51, %v1646_v50  ;;  %v2918_v50 = vld [vmem:[#allocation13 + $0x44] sm:$0xf0]  ;;  %v2917_v51 = vld [vmem:[#allocation13 + $0x44] sm:$0xf] }
 0x60e   : > { %v1856_v49 = vadd.f32 %v3071_v38, %v1848_v15 }
 0x610   : > { %v1860_v52 = vadd.f32 %v3160_v8, %v1856_v49  ;;  %v2777_v49 = vld [vmem:[#allocation13 + $0x48] sm:$0xf0] }
 0x611   : > { %v2780_v8 = vor.u32 %v2917_v51, %v2777_v49  ;;  %v2940_v51 = vld [vmem:[#allocation14 + $0x78] sm:$0xff] }
 0x612   : > { %1865 = vadd.xlane.f32.xlu0 %v1860_v52  ;;  %2271 = vmatpush.bf16.msra.mxu2 %v2940_v51 }
 0x622   : > { %v1640_v48 = vpop.f32.mrf.mxu0 }
 0x623   : > { %v1647_v54 = vadd.f32 %v1640_v48, %v1443_v53  ;;  %v2916_v48 = vld [vmem:[#allocation13 + $0x34] sm:$0xf0]  ;;  %v2915_v53 = vld [vmem:[#allocation13 + $0x34] sm:$0xf] }
 0x62a   : > { %v1642_v11 = vpop.f32.mrf.mxu0 }
 0x62b   : > { %v1648_v9 = vadd.f32 %v1642_v11, %v1445_v56  ;;  %v2914_v11 = vld [vmem:[#allocation13 + $0x24] sm:$0xf0]  ;;  %v2913_v56 = vld [vmem:[#allocation13 + $0x24] sm:$0xf] }
 0x630   : > { %v1842_v55 = vpop.f32.mrf.mxu2 }
 0x631   : > { %v1849_v57 = vadd.f32 %v1842_v55, %v1647_v54  ;;  %v2769_v55 = vld [vmem:[#allocation13 + $0x38] sm:$0xf0] }
 0x633   : > { %v1857_v28 = vadd.f32 %v3071_v38, %v1849_v57  ;;  %v2772_v57 = vor.u32 %v2915_v53, %v2769_v55  ;;  %v2930_v55 = vld [vmem:[#allocation14 + $0x28] sm:$0xff] }
 0x635   : > { %v1861_v59 = vadd.f32 %v3161_v58, %v1857_v28  ;;  %v2759_v28 = vld [vmem:[#allocation13 + $0x20] sm:$0xf] }
 0x636   : > { %v2760_v58 = vor.u32 %v2914_v11, %v2759_v28 }
 0x637   : > { %1867 = vadd.xlane.f32.xlu1 %v1861_v59 }
 0x638   : > { %v1844_v61 = vpop.f32.mrf.mxu2 }
 0x639   : > { %v1850_v1 = vadd.f32 %v1844_v61, %v1648_v9  ;;  %v2751_v61 = vld [vmem:[#allocation13 + $0x10] sm:$0xf] }
 0x63b   : > { %v1858_v2 = vadd.f32 %v3071_v38, %v1850_v1  ;;  %v2796_v38 = vor.u32 %v2921_v43, %v2793_v22  ;;  %v2912_v1 = vld [vmem:[#allocation13 + $0x14] sm:$0xf0]  ;;  %v3072_v43 = vld [vmem:[%s4195_s14] ss:$0 sm:$0xff] }
 0x63d   : > { %v1862_v4 = vadd.f32 %v3162_v3, %v1858_v2  ;;  %2090 = vmatpush.bf16.msra.mxu3 %v2796_v38  ;;  %v2911_v2 = vld [vmem:[#allocation13 + $0x14] sm:$0xf]  ;;  %v2752_v3 = vor.u32 %v2912_v1, %v2751_v61 }
 0x63f   : > { %1869 = vadd.xlane.f32.xlu2 %v1862_v4 }
 0x641   : > { %2091 = vmatpush.bf16.msra.mxu3 %v2788_v46 }
 0x645   : > { %2092 = vmatpush.bf16.msra.mxu3 %v2780_v8  ;;  %v2931_v8 = vld [vmem:[#allocation14 + $0x30] sm:$0xff] }
 0x649   : > { %2093 = vmatpush.bf16.msra.mxu3 %v2772_v57  ;;  %v2938_v57 = vld [vmem:[#allocation14 + $0x68] sm:$0xff] }
 0x67d   : > { %v1864_v17 = vpop.xlane.xlu2 %1863 }
 0x67e   : > { %v1878_v16 = vmul.f32 %v4057_v14, %v1864_v17 }
 0x680   : > { %v4060_v18 = vsub.f32 %v1859_v47, %v1878_v16  ;;  %v2775_v47 = vld [vmem:[#allocation13 + $0x40] sm:$0xf]  ;;  %v2744_v16 = vor.u32 %v2910_v6, %v2743_v7 }
 0x681   : > { %v2776_v15 = vor.u32 %v2918_v50, %v2775_v47 }
 0x682   : > { %v1886_v20 = vmul.f32 %v4060_v18, %v4060_v18 }
 0x683   : > { %2073 = vmatpush.bf16.msra.mxu0 %v2776_v15 }
 0x684   : > { %1890 = vadd.xlane.f32.xlu0 %v1886_v20  ;;  %v2748_v20 = vor.u32 %v2909_v5, %v2745_v13 }
 0x685   : > { %v1866_v21 = vpop.xlane.xlu0 %1865 }
 0x686   : > { %v1879_v25 = vmul.f32 %v4057_v14, %v1866_v21 }
 0x688   : > { %v4065_v39 = vsub.f32 %v1860_v52, %v1879_v25  ;;  %v2767_v52 = vld [vmem:[#allocation13 + $0x30] sm:$0xf] }
 0x689   : > { %v2768_v54 = vor.u32 %v2916_v48, %v2767_v52  ;;  %v2939_v52 = vld [vmem:[#allocation14 + $0x70] sm:$0xff] }
 0x68a   : > { %v1887_v40 = vmul.f32 %v4065_v39, %v4065_v39  ;;  %2272 = vmatpush.bf16.msra.mxu2 %v2939_v52 }
 0x68b   : > { %2074 = vmatpush.bf16.msra.mxu0 %v2768_v54 }
 0x68c   : > { %1892 = vadd.xlane.f32.xlu1 %v1887_v40 }
 0x68e   : > { %2273 = vmatpush.bf16.msra.mxu2 %v2938_v57 }
 0x68f   : > { %2075 = vmatpush.bf16.msra.mxu0 %v2760_v58 }
 0x693   : > { %2076 = vmatpush.bf16.msra.mxu0 %v2752_v3 }
 0x697   : > { %2077 = vmatpush.bf16.msra.mxu0 %v2744_v16 }
 0x6aa   : > { %v1868_v23 = vpop.xlane.xlu1 %1867 }
 0x6ab   : > { %v1880_v24 = vmul.f32 %v4057_v14, %v1868_v23 }
 0x6ad   : > { %v4070_v26 = vsub.f32 %v1861_v59, %v1880_v24  ;;  %v2761_v59 = vld [vmem:[#allocation13 + $0x28] sm:$0xf0] }
 0x6ae   : > { %v2764_v9 = vor.u32 %v2913_v56, %v2761_v59  ;;  %v2929_v56 = vld [vmem:[#allocation14 + $0x20] sm:$0xff] }
 0x6af   : > { %v1888_v27 = vmul.f32 %v4070_v26, %v4070_v26 }
 0x6b0   : > { %2094 = vmatpush.bf16.msra.mxu3 %v2764_v9 }
 0x6b1   : > { %1894 = vadd.xlane.f32.xlu2 %v1888_v27 }
 0x6b2   : > { %v1870_v29 = vpop.xlane.xlu2 %1869 }
 0x6b3   : > { %v1881_v30 = vmul.f32 %v4057_v14, %v1870_v29 }
 0x6b5   : > { %v4075_v31 = vsub.f32 %v1862_v4, %v1881_v30  ;;  %v2753_v4 = vld [vmem:[#allocation13 + $0x18] sm:$0xf0] }
 0x6b6   : > { %v2756_v12 = vor.u32 %v2911_v2, %v2753_v4 }
 0x6b7   : > { %v1889_v32 = vmul.f32 %v4075_v31, %v4075_v31 }
 0x6b8   : > { %2095 = vmatpush.bf16.msra.mxu3 %v2756_v12 }
 0x6b9   : > { %1896 = vadd.xlane.f32.xlu0 %v1889_v32 }
 0x6bc   : > { %2096 = vmatpush.bf16.msra.mxu3 %v2748_v20 }
 0x6f7   : > { %v1891_v10 = vpop.xlane.xlu0 %1890 }
 0x6f8   : > { %v1898_v17 = vmul.f32 %v1891_v10, %v4057_v14 }
 0x6fa   : > { %v1902_v21 = vadd.f32 1e-05, %v1898_v17 }
 0x6fc   : > { %3143 = vrsqrt.f32 %v1902_v21  ;;  %vm1912_vm6 = vweird.f32 %v1902_v21 }
 0x6ff   : > { %v1893_v25 = vpop.xlane.xlu1 %1892 }
 0x700   : > { %v1899_v40 = vmul.f32 %v1893_v25, %v4057_v14  ;;  %v2927_v25 = vld [vmem:[#allocation14 + $0x10] sm:$0xff] }
 0x702   : > { %v3144_v23 = vpop.eup %3143  ;;  %v1903_v24 = vadd.f32 1e-05, %v1899_v40  ;;  %v2936_v40 = vld [vmem:[#allocation14 + $0x58] sm:$0xff] }
 0x703   : > { %v1907_v27 = vmul.f32 %v3144_v23, %v1902_v21  ;;  %vm1913_vm5 = vweird.f32 %v3144_v23  ;;  %v2928_v21 = vld [vmem:[#allocation14 + $0x18] sm:$0xff] }
 0x704   : > { %3145 = vrsqrt.f32 %v1903_v24  ;;  %vm1914_vm7 = vmor %vm1912_vm6, %vm1913_vm5  ;;  %vm1922_vm9 = vweird.f32 %v1903_v24 }
 0x705   : > { %v1908_v29 = vmul.f32 %v3144_v23, %v1907_v27  ;;  %v2934_v27 = vld [vmem:[#allocation14 + $0x48] sm:$0xff] }
 0x707   : > { %v1909_v30 = vmul.f32 0.5, %v1908_v29  ;;  %v2933_v29 = vld [vmem:[#allocation14 + $0x40] sm:$0xff] }
 0x709   : > { %v1910_v32 = vsub.f32 1.5, %v1909_v30  ;;  %v1984_v30 = vld [vmem:[%s4248_s19] sm:$0x3]  ;;  %s3417_s19 = sshra.s32 %s2411_s25, 4  ;;  %s3418_s19 = int_to_ptr.hbm [resolvable:$true] %s3417_s19 }
 0x70a   : > { %v3146_v33 = vpop.eup %3145  ;;  %s3419_s13 = scalar_lea.hbm %s3418_s19, 32  ;;  %p3424_p7 = scmp.lt.s32.totalorder %s3418_s19, %s4252_s26 }
 0x70b   : > { %v1911_v63 = vmul.f32 %v3144_v23, %v1910_v32  ;;  %v1917_v34 = vmul.f32 %v3146_v33, %v1903_v24  ;;  %vm1923_vm8 = vweird.f32 %v3146_v33  ;;  %v2925_v24 = vld [vmem:[#allocation14] sm:$0xff]  ;;  %p3420_p1 = scmp.ne.s32.totalorder %s3418_s19, %s3419_s13  ;;  %p3425_p9 = scmp.lt.s32.totalorder %s3423_s8, %s3419_s13 }
 0x70c   : > { %vm1924_vm10 = vmor %vm1922_vm9, %vm1923_vm8 }
 0x70d   : > { %v1918_v35 = vmul.f32 %v3146_v33, %v1917_v34  ;;  %v1915_v36 = vsel %vm1914_vm7, %v3144_v23, %v1911_v63  ;;  %v2935_v23 = vld [vmem:[#allocation14 + $0x50] sm:$0xff]  ;;  %p3421_p3 = pnand %p3420_p1, %p3722_p4  ;;  %p3426_p5 = por %p3425_p9, %p3424_p7 }
 0x70e   : > { %v1946_v19 = vmul.f32 %v1915_v36, %v4060_v18  ;;  %v1987_v36 = vperm.slane %v1984_v30, 1 }
 0x70f   : > { %v1919_v41 = vmul.f32 0.5, %v1918_v35  ;;  %p3422_p12 = pneg %p3421_p3 }
 0x710   : > { %v1954_v44 = vmul.f32 %v3072_v43, %v1946_v19 }
 0x711   : > { %v1920_v37 = vsub.f32 1.5, %v1919_v41  ;;  %p3427_p8 = pnand %p3426_p5, %p3422_p12 }
 0x712   : > { %v4089_v62 = vadd.f32 %v3073_v60, %v1954_v44 }
 0x713   : > { %v1921_v42 = vmul.f32 %v3146_v33, %v1920_v37 }
 0x715   : > { %v1925_v22 = vsel %vm1924_vm10, %v3146_v33, %v1921_v42  ;;  %v1986_v33 = vperm.slane %v1984_v30, 0 }
 0x716   : > { %v1947_v38 = vmul.f32 %v1925_v22, %v4065_v39  ;;  %v2932_v39 = vld [vmem:[#allocation14 + $0x38] sm:$0xff] }
 0x717   : > { %2252 = vmatpush.bf16.msrb.mxu1 %v2932_v39 }
 0x718   : > { %v1955_v45 = vmul.f32 %v3072_v43, %v1947_v38 }
 0x71a   : > { %v4091_v0 = vadd.f32 %v3073_v60, %v1955_v45 }
 0x71b   : > { %2253 = vmatpush.bf16.msrb.mxu1 %v2931_v8 }
 0x71c   : > { %v1966_v18 = vpack.c.bf16 %v4091_v0, %v4089_v62 }
 0x71e   : > { %2078 = vmatmul.bf16.vlgmr.msra.gmra.mxu0 %v1966_v18  ;;  %2097 = vmatmul.bf16.vlgmr.msra.gmra.mxu3 %v1966_v18 }
 0x71f   : > { %2254 = vmatpush.bf16.msrb.mxu1 %v2930_v55 }
 0x723   : > { %2255 = vmatpush.bf16.msrb.mxu1 %v2929_v56 }
 0x724   : > { %v1895_v46 = vpop.xlane.xlu2 %1894 }
 0x725   : > { %v1900_v47 = vmul.f32 %v1895_v46, %v4057_v14 }
 0x727   : > { %v1904_v50 = vadd.f32 1e-05, %v1900_v47  ;;  %2256 = vmatpush.bf16.msrb.mxu1 %v2928_v21 }
 0x729   : > { %3147 = vrsqrt.f32 %v1904_v50  ;;  %vm1932_vm12 = vweird.f32 %v1904_v50 }
 0x72b   : > { %2257 = vmatpush.bf16.msrb.mxu1 %v2927_v25 }
 0x72c   : > { %v1897_v15 = vpop.xlane.xlu0 %1896 }
 0x72d   : > { %v1901_v49 = vmul.f32 %v1897_v15, %v4057_v14 }
 0x72f   : > { %v3148_v48 = vpop.eup %3147  ;;  %v1905_v53 = vadd.f32 1e-05, %v1901_v49 }
 0x730   : > { %v1927_v54 = vmul.f32 %v3148_v48, %v1904_v50  ;;  %vm1933_vm11 = vweird.f32 %v3148_v48 }
 0x731   : > { %3149 = vrsqrt.f32 %v1905_v53  ;;  %vm1934_vm13 = vmor %vm1932_vm12, %vm1933_vm11  ;;  %vm1942_vm15 = vweird.f32 %v1905_v53 }
 0x732   : > { %v1928_v28 = vmul.f32 %v3148_v48, %v1927_v54 }
 0x734   : > { %v1929_v11 = vmul.f32 0.5, %v1928_v28  ;;  %v3074_v28 = vld [vmem:[%s4249_s4] ss:$0 sm:$0xff] }
 0x736   : > { %v1930_v58 = vsub.f32 1.5, %v1929_v11 }
 0x737   : > { %v3150_v59 = vpop.eup %3149 }
 0x738   : > { %v1931_v9 = vmul.f32 %v3148_v48, %v1930_v58  ;;  %v1937_v61 = vmul.f32 %v3150_v59, %v1905_v53  ;;  %vm1943_vm14 = vweird.f32 %v3150_v59 }
 0x739   : > { %vm1944_vm0 = vmor %vm1942_vm15, %vm1943_vm14 }
 0x73a   : > { %v1938_v1 = vmul.f32 %v3150_v59, %v1937_v61  ;;  %v1935_v3 = vsel %vm1934_vm13, %v3148_v48, %v1931_v9 }
 0x73b   : > { %v1948_v7 = vmul.f32 %v1935_v3, %v4070_v26  ;;  %v2937_v26 = vld [vmem:[#allocation14 + $0x60] sm:$0xff] }
 0x73c   : > { %v1939_v2 = vmul.f32 0.5, %v1938_v1  ;;  %2274 = vmatpush.bf16.msra.mxu2 %v2937_v26 }
 0x73d   : > { %v1956_v5 = vmul.f32 %v3072_v43, %v1948_v7 }
 0x73e   : > { %v1940_v4 = vsub.f32 1.5, %v1939_v2 }
 0x73f   : > { %v4099_v17 = vadd.f32 %v3073_v60, %v1956_v5 }
 0x740   : > { %v1941_v6 = vmul.f32 %v3150_v59, %v1940_v4  ;;  %2275 = vmatpush.bf16.msra.mxu2 %v2936_v40 }
 0x742   : > { %v1945_v10 = vsel %vm1944_vm0, %v3150_v59, %v1941_v6 }
 0x743   : > { %v1949_v12 = vmul.f32 %v1945_v10, %v4075_v31  ;;  %v2926_v31 = vld [vmem:[#allocation14 + $0x8] sm:$0xff] }
 0x744   : > { %2258 = vmatpush.bf16.msrb.mxu1 %v2926_v31  ;;  %2276 = vmatpush.bf16.msra.mxu2 %v2935_v23 }
 0x745   : > { %v1957_v13 = vmul.f32 %v3072_v43, %v1949_v12 }
 0x747   : > { %v4101_v16 = vadd.f32 %v3073_v60, %v1957_v13 }
 0x748   : > { %2259 = vmatpush.bf16.msrb.mxu1 %v2925_v24  ;;  %2277 = vmatpush.bf16.msra.mxu2 %v2934_v27 }
 0x749   : > { %v1967_v20 = vpack.c.bf16 %v4101_v16, %v4099_v17 }
 0x74b   : > { %2083 = vmatmul.bf16.gmra.mxu0 %v1967_v20  ;;  %2102 = vmatmul.bf16.gmra.mxu3 %v1967_v20 }
 0x74c   : > { %2278 = vmatpush.bf16.msra.mxu2 %v2933_v29 }
 0x79b   : > { %v2079_v32 = vpop.f32.mrf.mxu0 }
 0x79c   : > { %v2080_v34 = vadd.f32 %v2079_v32, %v1986_v33 }
 0x79e   : > { %v2108_v37 = vmax.f32 %v2080_v34, 0.0 }
 0x7a1   : > { %v2098_v63 = vpop.f32.mrf.mxu3 }
 0x7a2   : > { %v2099_v43 = vadd.f32 %v2098_v63, %v1987_v36 }
 0x7a3   : > { %v2081_v35 = vpop.f32.mrf.mxu0 }
 0x7a4   : > { %v2082_v41 = vadd.f32 %v2081_v35, %v1986_v33  ;;  %v2109_v44 = vmax.f32 %v2099_v43, 0.0 }
 0x7a6   : > { %v2110_v19 = vmax.f32 %v2082_v41, 0.0 }
 0x7a8   : > { %v2116_v42 = vpack.c.bf16 %v2110_v19, %v2108_v37 }
 0x7a9   : > { %v2100_v22 = vpop.f32.mrf.mxu3 }
 0x7aa   : > { %v2101_v38 = vadd.f32 %v2100_v22, %v1987_v36  ;;  %2260 = vmatmul.bf16.vlgmr.msrb.gmra.mxu1 %v2116_v42 }
 0x7ac   : > { %v2111_v60 = vmax.f32 %v2101_v38, 0.0 }
 0x7ae   : > { %v2117_v45 = vpack.c.bf16 %v2111_v60, %v2109_v44 }
 0x7b0   : > { %2279 = vmatmul.bf16.vlgmr.msra.gmra.mxu2 %v2117_v45 }
 0x7c8   : > { %v2084_v18 = vpop.f32.mrf.mxu0 }
 0x7c9   : > { %v2085_v47 = vadd.f32 %v2084_v18, %v1986_v33 }
 0x7cb   : > { %v2112_v51 = vmax.f32 %v2085_v47, 0.0  ;;  %v3075_v47 = vld [vmem:[%s4250_s6] ss:$0 sm:$0xff] }
 0x7ce   : > { %v2103_v46 = vpop.f32.mrf.mxu3 }
 0x7cf   : > { %v2104_v49 = vadd.f32 %v2103_v46, %v1987_v36 }
 0x7d0   : > { %v2086_v50 = vpop.f32.mrf.mxu0 }
 0x7d1   : > { %v2087_v39 = vadd.f32 %v2086_v50, %v1986_v33  ;;  %v2113_v53 = vmax.f32 %v2104_v49, 0.0 }
 0x7d3   : > { %v2114_v15 = vmax.f32 %v2087_v39, 0.0 }
 0x7d5   : > { %v2118_v8 = vpack.c.bf16 %v2114_v15, %v2112_v51  ;;  %v3076_v51 = vld [vmem:[%s4251_s27] ss:$0 sm:$0xff] }
 0x7d6   : > { %v2105_v52 = vpop.f32.mrf.mxu3 }
 0x7d7   : > { %v2106_v48 = vadd.f32 %v2105_v52, %v1987_v36  ;;  %2265 = vmatmul.bf16.gmra.mxu1 %v2118_v8 }
 0x7d9   : > { %v2115_v54 = vmax.f32 %v2106_v48, 0.0 }
 0x7db   : > { %v2119_v55 = vpack.c.bf16 %v2115_v54, %v2113_v53 }
 0x7dd   : > { %2284 = vmatmul.bf16.gmra.mxu2 %v2119_v55 }
 0x827   : > { %v2261_v57 = vpop.f32.mrf.mxu1 }
 0x828   : > { %v2262_v11 = vadd.f32 %v3074_v28, %v2261_v57 }
 0x82f   : > { %v2263_v9 = vpop.f32.mrf.mxu1 }
 0x830   : > { %v2264_v61 = vadd.f32 %v3074_v28, %v2263_v9 }
 0x833   : > { %v2280_v56 = vpop.f32.mrf.mxu2 }
 0x834   : > { %v2281_v58 = vadd.f32 %v2280_v56, %v2262_v11 }
 0x836   : > { %v2290_v59 = vadd.f32 %v2281_v58, %v4089_v62 }
 0x838   : > { %2294 = vadd.xlane.f32.xlu1 %v2290_v59 }
 0x83b   : > { %v2282_v1 = vpop.f32.mrf.mxu2 }
 0x83c   : > { %v2283_v2 = vadd.f32 %v2282_v1, %v2264_v61 }
 0x83e   : > { %v2291_v3 = vadd.f32 %v2283_v2, %v4091_v0 }
 0x840   : > { %2296 = vadd.xlane.f32.xlu2 %v2291_v3 }
 0x854   : > { %v2266_v4 = vpop.f32.mrf.mxu1 }
 0x855   : > { %v2267_v7 = vadd.f32 %v3074_v28, %v2266_v4 }
 0x85c   : > { %v2268_v5 = vpop.f32.mrf.mxu1 }
 0x85d   : > { %v2269_v13 = vadd.f32 %v3074_v28, %v2268_v5 }
 0x860   : > { %v2285_v6 = vpop.f32.mrf.mxu2 }
 0x861   : > { %v2286_v10 = vadd.f32 %v2285_v6, %v2267_v7 }
 0x863   : > { %v2292_v12 = vadd.f32 %v2286_v10, %v4099_v17 }
 0x865   : > { %2298 = vadd.xlane.f32.xlu0 %v2292_v12 }
 0x868   : > { %v2287_v20 = vpop.f32.mrf.mxu2 }
 0x869   : > { %v2288_v21 = vadd.f32 %v2287_v20, %v2269_v13 }
 0x86b   : > { %v2293_v62 = vadd.f32 %v2288_v21, %v4101_v16 }
 0x86d   : > { %2300 = vadd.xlane.f32.xlu1 %v2293_v62 }
 0x8ab   : > { %v2295_v26 = vpop.xlane.xlu1 %2294 }
 0x8ac   : > { %v2302_v25 = vmul.f32 %v2295_v26, %v4057_v14 }
 0x8ae   : > { %v2306_v40 = vsub.f32 %v2290_v59, %v2302_v25 }
 0x8b0   : > { %v2310_v0 = vmul.f32 %v2306_v40, %v2306_v40 }
 0x8b2   : > { %2314 = vadd.xlane.f32.xlu2 %v2310_v0 }
 0x8b3   : > { %v2297_v31 = vpop.xlane.xlu2 %2296 }
 0x8b4   : > { %v2303_v23 = vmul.f32 %v2297_v31, %v4057_v14 }
 0x8b6   : > { %v2307_v24 = vsub.f32 %v2291_v3, %v2303_v23 }
 0x8b8   : > { %v2311_v27 = vmul.f32 %v2307_v24, %v2307_v24 }
 0x8ba   : > { %2316 = vadd.xlane.f32.xlu0 %v2311_v27 }
 0x8d8   : > { %v2299_v17 = vpop.xlane.xlu0 %2298 }
 0x8d9   : > { %v2304_v29 = vmul.f32 %v2299_v17, %v4057_v14 }
 0x8db   : > { %v4118_v30 = vsub.f32 %v2292_v12, %v2304_v29 }
 0x8dd   : > { %v2312_v16 = vmul.f32 %v4118_v30, %v4118_v30 }
 0x8df   : > { %2318 = vadd.xlane.f32.xlu1 %v2312_v16 }
 0x8e0   : > { %v2301_v32 = vpop.xlane.xlu1 %2300 }
 0x8e1   : > { %v2305_v33 = vmul.f32 %v2301_v32, %v4057_v14 }
 0x8e3   : > { %v4123_v63 = vsub.f32 %v2293_v62, %v2305_v33 }
 0x8e5   : > { %v2313_v34 = vmul.f32 %v4123_v63, %v4123_v63 }
 0x8e7   : > { %2320 = vadd.xlane.f32.xlu2 %v2313_v34 }
 0x925   : > { %v2315_v35 = vpop.xlane.xlu2 %2314 }
 0x926   : > { %v2322_v36 = vmul.f32 %v2315_v35, %v4057_v14 }
 0x928   : > { %v2326_v41 = vadd.f32 1e-05, %v2322_v36 }
 0x92a   : > { %3151 = vrsqrt.f32 %v2326_v41  ;;  %vm2336_vm2 = vweird.f32 %v2326_v41 }
 0x92d   : > { %v2317_v37 = vpop.xlane.xlu0 %2316 }
 0x92e   : > { %v2323_v19 = vmul.f32 %v2317_v37, %v4057_v14 }
 0x930   : > { %v3152_v43 = vpop.eup %3151  ;;  %v2327_v42 = vadd.f32 1e-05, %v2323_v19 }
 0x931   : > { %v2331_v22 = vmul.f32 %v3152_v43, %v2326_v41  ;;  %vm2337_vm1 = vweird.f32 %v3152_v43 }
 0x932   : > { %3153 = vrsqrt.f32 %v2327_v42  ;;  %vm2338_vm3 = vmor %vm2336_vm2, %vm2337_vm1  ;;  %vm2346_vm5 = vweird.f32 %v2327_v42 }
 0x933   : > { %v2332_v38 = vmul.f32 %v3152_v43, %v2331_v22 }
 0x935   : > { %v2333_v44 = vmul.f32 0.5, %v2332_v38 }
 0x937   : > { %v2334_v60 = vsub.f32 1.5, %v2333_v44 }
 0x938   : > { %v3154_v45 = vpop.eup %3153 }
 0x939   : > { %v2335_v18 = vmul.f32 %v3152_v43, %v2334_v60  ;;  %v2341_v46 = vmul.f32 %v3154_v45, %v2327_v42  ;;  %vm2347_vm4 = vweird.f32 %v3154_v45 }
 0x93a   : > { %vm2348_vm6 = vmor %vm2346_vm5, %vm2347_vm4 }
 0x93b   : > { %v2339_v50 = vsel %vm2338_vm3, %v3152_v43, %v2335_v18  ;;  %v2342_v39 = vmul.f32 %v3154_v45, %v2341_v46 }
 0x93c   : > { %v2370_v15 = vmul.f32 %v2339_v50, %v2306_v40 }
 0x93d   : > { %v2343_v49 = vmul.f32 0.5, %v2342_v39 }
 0x93e   : > { %v2378_v8 = vmul.f32 %v3075_v47, %v2370_v15 }
 0x93f   : > { %v2344_v52 = vsub.f32 1.5, %v2343_v49 }
 0x940   : > { %v2386_v48 = vadd.f32 %v3076_v51, %v2378_v8 }
 0x941   : > { %v2345_v53 = vmul.f32 %v3154_v45, %v2344_v52 }
 0x942   : > { %2390 = vst [vmem:[%s4137_s16] sm:$0xff] %v2386_v48 }
 0x943   : > { %v2349_v54 = vsel %vm2348_vm6, %v3154_v45, %v2345_v53 }
 0x944   : > { %v2371_v55 = vmul.f32 %v2349_v54, %v2307_v24 }
 0x946   : > { %v2379_v57 = vmul.f32 %v3075_v47, %v2371_v55 }
 0x948   : > { %v2387_v28 = vadd.f32 %v3076_v51, %v2379_v57 }
 0x94a   : > { %2391 = vst [vmem:[%s4137_s16 + $0x8] sm:$0xff] %v2387_v28 }
 0x952   : > { %v2319_v11 = vpop.xlane.xlu1 %2318 }
 0x953   : > { %v2324_v56 = vmul.f32 %v2319_v11, %v4057_v14 }
 0x955   : > { %v2328_v58 = vadd.f32 1e-05, %v2324_v56 }
 0x957   : > { %3155 = vrsqrt.f32 %v2328_v58  ;;  %vm2356_vm8 = vweird.f32 %v2328_v58 }
 0x95a   : > { %v2321_v59 = vpop.xlane.xlu2 %2320 }
 0x95b   : > { %v2325_v9 = vmul.f32 %v2321_v59, %v4057_v14 }
 0x95d   : > { %v3156_v61 = vpop.eup %3155  ;;  %v2329_v1 = vadd.f32 1e-05, %v2325_v9 }
 0x95e   : > { %v2351_v2 = vmul.f32 %v3156_v61, %v2328_v58  ;;  %vm2357_vm7 = vweird.f32 %v3156_v61 }
 0x95f   : > { %3157 = vrsqrt.f32 %v2329_v1  ;;  %vm2358_vm9 = vmor %vm2356_vm8, %vm2357_vm7  ;;  %vm2366_vm11 = vweird.f32 %v2329_v1 }
 0x960   : > { %v2352_v3 = vmul.f32 %v3156_v61, %v2351_v2 }
 0x962   : > { %v2353_v4 = vmul.f32 0.5, %v2352_v3 }
 0x964   : > { %v2354_v7 = vsub.f32 1.5, %v2353_v4 }
 0x965   : > { %v3158_v6 = vpop.eup %3157 }
 0x966   : > { %v2355_v10 = vmul.f32 %v3156_v61, %v2354_v7  ;;  %v2361_v12 = vmul.f32 %v3158_v6, %v2329_v1  ;;  %vm2367_vm10 = vweird.f32 %v3158_v6 }
 0x967   : > { %vm2368_vm12 = vmor %vm2366_vm11, %vm2367_vm10 }
 0x968   : > { %v2359_v5 = vsel %vm2358_vm9, %v3156_v61, %v2355_v10  ;;  %v2362_v13 = vmul.f32 %v3158_v6, %v2361_v12 }
 0x969   : > { %v2372_v14 = vmul.f32 %v2359_v5, %v4118_v30 }
 0x96a   : > { %v2363_v20 = vmul.f32 0.5, %v2362_v13 }
 0x96b   : > { %v2380_v21 = vmul.f32 %v3075_v47, %v2372_v14 }
 0x96c   : > { %v2364_v62 = vsub.f32 1.5, %v2363_v20 }
 0x96d   : > { %v2388_v26 = vadd.f32 %v3076_v51, %v2380_v21 }
 0x96e   : > { %v2365_v25 = vmul.f32 %v3158_v6, %v2364_v62 }
 0x96f   : > { %2392 = vst [vmem:[%s4137_s16 + $0x10] sm:$0xff] %v2388_v26 }
 0x970   : > { %v2369_v40 = vsel %vm2368_vm12, %v3158_v6, %v2365_v25 }
 0x971   : > { %v2373_v0 = vmul.f32 %v2369_v40, %v4123_v63 }
 0x973   : > { %v2381_v31 = vmul.f32 %v3075_v47, %v2373_v0 }
 0x975   : > { %v2389_v23 = vadd.f32 %v3076_v51, %v2381_v31 }
 0x977   : > { %2393 = vst [vmem:[%s4137_s16 + $0x18] sm:$0xff] %v2389_v23 }
 0x978   : > { %3430 = shalt.err (!%p3427_p8)
}
 0x979   : > { %s3508_s2 = smov 128   ;;  %s3509_s29 = smov 8  }
 0x97a   : > { %2971 = dma.vmem_to_hbm [thread:$0]  (%p3722_p4), %s2409_s22, 512, %s2411_s25, %s2395_s21, %s3508_s2, %s3508_s2, %s3509_s29  }
 0x97b PF: > { %s4254_s18 = sld [smem:[#allocation24_spill]]  ;;  %p4256_p10 = scmp.ge.s32.totalorder %s3489_s30, 2 }
 0x97d   : > { %p3000_p13 = pnand %p4256_p10, %p3726_p6 }
 0x97f   : > { %p3001_p11 = pneg %p3000_p13 }
 0x981   : > { %s2425_s16 = sand.u32 1, %s4254_s18  }
 0x982   : > { %s2426_s24 = scalar_lea.sflag [#allocation4], %s2425_s16 }
 0x983   : > { %3472 = dma.done.wait (%p3001_p11), %s2426_s24, 512  }
 0x984   : > { %3474 = vsyncadd (%p3001_p11), %s2426_s24, 4294966784  ;;  %s4257_s30 = sld [smem:[#allocation26_spill]]  ;;  %s4260_s27 = smov %s3481_s28 }
 0x985   : > { %s4258_s11 = sld [smem:[#allocation25_spill]] }
 0x986   : > { %s4259_s29 = sld [smem:[#allocation27_spill]] }
 0x98a   : > { %p37_p0 = scmp.ge.s32.totalorder %s4257_s30, 4  }
 0x98b   : > { %s4261_s28 = smov %s4258_s11 }
 0x98c   :  { %39 = sbr.rel (!%p37_p0) target bundleno = 24 (0x18), region = 177 }
 0x991   :  { %2432 = vsyncpa [#allocation3], 1 }
 0x992   :  { %2434 = vsyncpa [#allocation3 + $0x1], 1 }
 0x993   :  { %2435 = vsyncpa [#allocation6], 1 }
 0x994   :  { %2437 = vsyncpa [#allocation6 + $0x1], 1 }
 0x995   :  { %2438 = vsyncpa [#allocation9], 1 }
 0x996   :  { %2439 = vsyncpa [#allocation12], 1 }
 0x997   :  { %2440 = vsyncpa [#allocation15], 1 }
 0x998   :  { %2441 = vsyncpa [#allocation4], 1 }
 0x999   :  { %2443 = vsyncpa [#allocation4 + $0x1], 1 }

</bundles_post_ra>
